<compile_context>
chip_gen: v7x
topology: tpu7x:2x2x1
jax: 0.10.0
libtpu: 0.0.40
codegen_flags: <defaults>
</compile_context>

<pallas_src>
import jax
import jax.numpy as jnp
from jax.experimental import pallas as pl
from jax.experimental.pallas import tpu as pltpu

EPS = 1e-6
NUM_SUBLAYERS = 3


# ----------------------------- fused kernel ---------------------------------

def decoder_layer_kernel(x_ref, w_ref, b_ref, o_ref):
    """One (tm, D) row-tile of the fused 3-sublayer DecoderLayer.

    x_ref : (tm, D)              f32   residual stream rows
    w_ref : (3, D, D)            bf16  gamma-folded sublayer weights
    b_ref : (3, 1, D)            f32   beta-folded sublayer biases
    o_ref : (tm, D)              f32
    """
    x = x_ref[...]                                    # (tm, D) f32
    d = x.shape[-1]
    inv_nm1 = 1.0 / (d - 1)                           # unbiased std divisor
    for l in range(NUM_SUBLAYERS):                    # unrolled: 3 residual blocks
        # ---- LayerNorm (torch semantics: unbiased std, eps added to std) ---
        mean = jnp.mean(x, axis=-1, keepdims=True)
        diff = x - mean
        var = jnp.sum(diff * diff, axis=-1, keepdims=True) * inv_nm1
        inv = 1.0 / (jnp.sqrt(var) + EPS)             # exact divide (hidden under HBM bound)
        z = diff * inv                                # gamma/beta folded into w/b (wrapper)
        # ---- sublayer Linear(D, D): bf16 operands on the MXU, f32 accum ----
        y = jnp.dot(z.astype(jnp.bfloat16), w_ref[l],
                    preferred_element_type=jnp.float32) + b_ref[l]
        # ---- dropout (eval mode = identity) + residual ----------------------
        # TODO(synk): training-mode dropout would need pltpu.prng_* masking.
        x = x + y
    o_ref[...] = x


# ----------------------------- wrapper helpers -------------------------------

def _round_up(n, m):
    return (n + m - 1) // m * m


def _choose_tile(rows, tm_max=512, min_steps=2):
    """Pick (row_tile, padded_rows).

    Prefers the largest tile that divides `rows` exactly (no jnp.pad HBM round
    trip) while keeping >= min_steps grid steps so the "parallel" grid axis can
    shard across v7x's two TensorCores.  Tiny inputs collapse to a single
    padded tile.  (On v5e, single TC, min_steps=1 would also be fine.)
    """
    tm_max = max(8, tm_max - tm_max % 8)
    cands = [c for c in (1024, 512, 256, 128) if c <= tm_max] or [tm_max]
    for c in cands:
        if rows % c == 0 and rows // c >= min_steps:
            return c, rows
    if rows <= max(cands):                 # tiny input: one padded tile
        tm = _round_up(rows, 8)
        return tm, tm
    # TODO(synk): ragged large row counts fall back to padding; an in-kernel
    # masked final tile would avoid the extra HBM pass of jnp.pad.
    c = max(cands)
    return c, _round_up(rows, c)


def fold_sublayer_params(sublayer_params):
    """Fold LayerNorm affine params into each sublayer Linear.

        xn @ W + b  with  xn = gamma*(diff*inv) + beta
      ==  (diff*inv) @ (diag(gamma) @ W)  +  (beta @ W + b)

    Returns stacked (L, D, D) bf16 weights and (L, 1, D) f32 biases.
    Shared by the kernel wrapper and the math-matched reference.
    """
    ws, bs = [], []
    for gamma, beta, w, b in sublayer_params:
        gamma = gamma.astype(jnp.float32)
        beta = beta.astype(jnp.float32)
        w = w.astype(jnp.float32)
        b = b.astype(jnp.float32)
        ws.append((gamma[:, None] * w).astype(jnp.bfloat16))
        bs.append((jnp.dot(beta, w, precision=jax.lax.Precision.HIGHEST) + b)[None, :])
    return jnp.stack(ws), jnp.stack(bs)


def _decoder_layer_call(rows_pad, d, tm):
    grid_spec = pltpu.PrefetchScalarGridSpec(
        num_scalar_prefetch=0,
        grid=(rows_pad // tm,),
        in_specs=[
            pl.BlockSpec((tm, d), lambda i: (i, 0)),                   # x rows
            pl.BlockSpec((NUM_SUBLAYERS, d, d), lambda i: (0, 0, 0)),  # folded W (bf16)
            pl.BlockSpec((NUM_SUBLAYERS, 1, d), lambda i: (0, 0, 0)),  # folded bias
        ],
        out_specs=pl.BlockSpec((tm, d), lambda i: (i, 0)),
    )
    return pl.pallas_call(
        decoder_layer_kernel,
        out_shape=jax.ShapeDtypeStruct((rows_pad, d), jnp.float32),
        grid_spec=grid_spec,
        compiler_params=pltpu.CompilerParams(
            dimension_semantics=("parallel",)),
    )


def decoder_layer(x, memory, src_mask, tgt_mask, sublayer_params, *, tm=512):
    """DecoderLayer.forward for the inference path (layer_past=None).

    TODO(synk): self_attn / src_attn / feed_forward are nn.Modules injected
    into DecoderLayer's constructor and are not defined in the spec; each
    sublayer is realised as Linear(size, size), so `memory`, `src_mask` and
    `tgt_mask` are kept for signature fidelity but unused.  The layer_past
    (cached decoding) branch is not implemented.
    """
    del memory, src_mask, tgt_mask
    assert len(sublayer_params) == NUM_SUBLAYERS
    B, S, D = x.shape
    assert D >= 2, "unbiased std needs at least 2 features"
    rows = B * S

    x2 = x.reshape(rows, D).astype(jnp.float32)
    tm_eff, rows_pad = _choose_tile(rows, tm_max=tm)
    if rows_pad != rows:
        x2 = jnp.pad(x2, ((0, rows_pad - rows), (0, 0)))

    w_fold, b_fold = fold_sublayer_params(sublayer_params)
    out = _decoder_layer_call(rows_pad, D, tm_eff)(x2, w_fold, b_fold)

    if rows_pad != rows:
        out = out[:rows]
    return out.reshape(B, S, D)


# ----------------------------- pure-JAX references ---------------------------

def _reference_decoder_layer_f32(x, sublayer_params):
    """Torch-exact semantics (unbiased std, eps on std), full-f32 matmul."""
    d = x.shape[-1]
    for gamma, beta, w, b in sublayer_params:
        mean = jnp.mean(x, axis=-1, keepdims=True)
        diff = x - mean
        std = jnp.sqrt(jnp.sum(diff * diff, axis=-1, keepdims=True) / (d - 1))
        xn = gamma * diff / (std + EPS) + beta
        x = x + (jnp.dot(xn, w, precision=jax.lax.Precision.HIGHEST) + b)
    return x


def _reference_decoder_layer_folded_bf16(x, sublayer_params):
    """Mirror of the kernel math: same folded params, bf16 matmul operands."""
    w_fold, b_fold = fold_sublayer_params(sublayer_params)
    d = x.shape[-1]
    inv_nm1 = 1.0 / (d - 1)
    for l in range(NUM_SUBLAYERS):
        mean = jnp.mean(x, axis=-1, keepdims=True)
        diff = x - mean
        var = jnp.sum(diff * diff, axis=-1, keepdims=True) * inv_nm1
        inv = 1.0 / (jnp.sqrt(var) + EPS)
        z = diff * inv
        y = jnp.dot(z.astype(jnp.bfloat16), w_fold[l],
                    preferred_element_type=jnp.float32) + b_fold[l]
        x = x + y
    return x


# ------------------------------------ demo -----------------------------------

if __name__ == "__main__":
    # rows = B*S = 512 -> tile 256, 2 "parallel" grid steps (feeds both v7x TCs),
    # no row padding.  D = 128 keeps the output lane-dense.
    B, S, D = 4, 128, 128
    S_MEM = 64                      # encoder memory length (unused by proxies)

    key = jax.random.PRNGKey(0)
    kx, km, *pkeys = jax.random.split(key, 2 + 4 * NUM_SUBLAYERS)

    x = jax.random.normal(kx, (B, S, D), dtype=jnp.float32)
    memory = jax.random.normal(km, (B, S_MEM, D), dtype=jnp.float32)

    sublayer_params = []
    for l in range(NUM_SUBLAYERS):
        kg, kbeta, kw, kb = pkeys[4 * l: 4 * l + 4]
        gamma = (jnp.ones((D,), jnp.float32)
                 + 0.05 * jax.random.normal(kg, (D,), jnp.float32))
        beta = 0.05 * jax.random.normal(kbeta, (D,), jnp.float32)
        w = jax.random.normal(kw, (D, D), jnp.float32) / jnp.sqrt(D)
        b = 0.05 * jax.random.normal(kb, (D,), jnp.float32)
        sublayer_params.append((gamma, beta, w, b))

    # Full decoder layer: three chained pre-norm residual sublayers, one kernel.
    out = decoder_layer(x, memory, None, None, sublayer_params)
    out = jax.block_until_ready(out)
    assert out.shape == (B, S, D)
    assert bool(jnp.all(jnp.isfinite(out))), "non-finite output"

    # (1) Tight check vs a reference that mirrors the kernel math exactly
    #     (shared folded params, identical bf16 matmul-operand rounding).
    ref_match = _reference_decoder_layer_folded_bf16(x, sublayer_params)
    assert jnp.allclose(out, ref_match, atol=2e-2, rtol=2e-2), \
        "mismatch vs math-matched (folded, bf16-matmul) reference"

    # (2) Torch-exact f32 reference: the only intentional deviation is the bf16
    #     matmul-operand rounding; its relative error must stay small.
    ref_f32 = _reference_decoder_layer_f32(x, sublayer_params)
    rel_err = jnp.linalg.norm(out - ref_f32) / jnp.linalg.norm(ref_f32)
    assert float(rel_err) < 1e-2, \
        f"relative error vs torch-exact f32 reference too large: {float(rel_err)}"

    # (3) Tiny ragged shape (rows = 14): exercises the tile clamp + padding path.
    xs = jax.random.normal(jax.random.PRNGKey(1), (2, 7, D), dtype=jnp.float32)
    outs = jax.block_until_ready(decoder_layer(xs, None, None, None, sublayer_params))
    refs = _reference_decoder_layer_folded_bf16(xs, sublayer_params)
    assert outs.shape == (2, 7, D)
    assert jnp.allclose(outs, refs, atol=2e-2, rtol=2e-2), \
        "mismatch vs math-matched reference (small ragged shape)"

    print("KERNEL_OK")
</pallas_src>

<mosaic_0001>
module attributes {stable_mosaic.version = 11 : i64} {
  func.func @decoder_layer_kernel(%arg0: i32, %arg1: memref<256x128xf32, #tpu.memory_space<vmem>>, %arg2: memref<3x128x128xbf16, #tpu.memory_space<vmem>>, %arg3: memref<3x1x128xf32, #tpu.memory_space<vmem>>, %arg4: memref<256x128xf32, #tpu.memory_space<vmem>>) attributes {dimension_semantics = [#tpu.dimension_semantics<parallel>], iteration_bounds = array<i64: 2>, scalar_prefetch = 0 : i64, scratch_operands = 0 : i64, tpu.core_type = #tpu.core_type<tc>, window_params = [{transform_indices = @transform_0, window_bounds = array<i64: 256, 128>}, {pipeline_mode = #tpu.pipeline_mode<synchronous>, transform_indices = @transform_1, window_bounds = array<i64: 3, 128, 128>}, {pipeline_mode = #tpu.pipeline_mode<synchronous>, transform_indices = @transform_2, window_bounds = array<i64: 3, 1, 128>}, {transform_indices = @transform_3, window_bounds = array<i64: 256, 128>}]} {
    %c0 = arith.constant 0 : index
    %c0_0 = arith.constant 0 : index
    %0 = vector.load %arg1[%c0, %c0_0] : memref<256x128xf32, #tpu.memory_space<vmem>>, vector<256x128xf32>
    %cst = arith.constant dense<0.000000e+00> : vector<256xf32>
    %1 = vector.multi_reduction <add>, %0, %cst [1] : vector<256x128xf32> to vector<256xf32>
    %2 = vector.shape_cast %1 : vector<256xf32> to vector<256x1xf32>
    %cst_1 = arith.constant 1.280000e+02 : f32
    %3 = vector.broadcast %cst_1 : f32 to vector<256x1xf32>
    %4 = arith.divf %2, %3 : vector<256x1xf32>
    %5 = vector.broadcast %4 : vector<256x1xf32> to vector<256x128xf32>
    %6 = arith.subf %0, %5 : vector<256x128xf32>
    %7 = arith.mulf %6, %6 : vector<256x128xf32>
    %cst_2 = arith.constant dense<0.000000e+00> : vector<256xf32>
    %8 = vector.multi_reduction <add>, %7, %cst_2 [1] : vector<256x128xf32> to vector<256xf32>
    %9 = vector.shape_cast %8 : vector<256xf32> to vector<256x1xf32>
    %cst_3 = arith.constant 0.00787401571 : f32
    %10 = vector.broadcast %cst_3 : f32 to vector<256x1xf32>
    %11 = arith.mulf %9, %10 : vector<256x1xf32>
    %12 = math.sqrt %11 : vector<256x1xf32>
    %cst_4 = arith.constant 9.99999997E-7 : f32
    %13 = vector.broadcast %cst_4 : f32 to vector<256x1xf32>
    %14 = arith.addf %12, %13 : vector<256x1xf32>
    %cst_5 = arith.constant 1.000000e+00 : f32
    %15 = vector.broadcast %cst_5 : f32 to vector<256x1xf32>
    %16 = arith.divf %15, %14 : vector<256x1xf32>
    %17 = vector.broadcast %16 : vector<256x1xf32> to vector<256x128xf32>
    %18 = arith.mulf %6, %17 : vector<256x128xf32>
    %19 = arith.truncf %18 : vector<256x128xf32> to vector<256x128xbf16>
    %c0_6 = arith.constant 0 : index
    %c0_7 = arith.constant 0 : index
    %c0_8 = arith.constant 0 : index
    %20 = vector.load %arg2[%c0_6, %c0_7, %c0_8] : memref<3x128x128xbf16, #tpu.memory_space<vmem>>, vector<1x128x128xbf16>
    %21 = vector.shape_cast %20 : vector<1x128x128xbf16> to vector<128x128xbf16>
    %cst_9 = arith.constant dense<0.000000e+00> : vector<256x128xf32>
    %22 = tpu.matmul %19, %21, %cst_9 {dimension_numbers = #tpu.dot_dimension_numbers<[1], [0], [0], [1], [0, 0, 1, 1], [], []>} : vector<256x128xbf16>, vector<128x128xbf16>, vector<256x128xf32> -> vector<256x128xf32>
    %c0_10 = arith.constant 0 : index
    %c0_11 = arith.constant 0 : index
    %c0_12 = arith.constant 0 : index
    %23 = vector.load %arg3[%c0_10, %c0_11, %c0_12] : memref<3x1x128xf32, #tpu.memory_space<vmem>>, vector<1x1x128xf32>
    %24 = vector.shape_cast %23 : vector<1x1x128xf32> to vector<1x128xf32>
    %25 = vector.broadcast %24 : vector<1x128xf32> to vector<256x128xf32>
    %26 = arith.addf %22, %25 : vector<256x128xf32>
    %27 = arith.addf %0, %26 : vector<256x128xf32>
    %cst_13 = arith.constant dense<0.000000e+00> : vector<256xf32>
    %28 = vector.multi_reduction <add>, %27, %cst_13 [1] : vector<256x128xf32> to vector<256xf32>
    %29 = vector.shape_cast %28 : vector<256xf32> to vector<256x1xf32>
    %cst_14 = arith.constant 1.280000e+02 : f32
    %30 = vector.broadcast %cst_14 : f32 to vector<256x1xf32>
    %31 = arith.divf %29, %30 : vector<256x1xf32>
    %32 = vector.broadcast %31 : vector<256x1xf32> to vector<256x128xf32>
    %33 = arith.subf %27, %32 : vector<256x128xf32>
    %34 = arith.mulf %33, %33 : vector<256x128xf32>
    %cst_15 = arith.constant dense<0.000000e+00> : vector<256xf32>
    %35 = vector.multi_reduction <add>, %34, %cst_15 [1] : vector<256x128xf32> to vector<256xf32>
    %36 = vector.shape_cast %35 : vector<256xf32> to vector<256x1xf32>
    %cst_16 = arith.constant 0.00787401571 : f32
    %37 = vector.broadcast %cst_16 : f32 to vector<256x1xf32>
    %38 = arith.mulf %36, %37 : vector<256x1xf32>
    %39 = math.sqrt %38 : vector<256x1xf32>
    %cst_17 = arith.constant 9.99999997E-7 : f32
    %40 = vector.broadcast %cst_17 : f32 to vector<256x1xf32>
    %41 = arith.addf %39, %40 : vector<256x1xf32>
    %cst_18 = arith.constant 1.000000e+00 : f32
    %42 = vector.broadcast %cst_18 : f32 to vector<256x1xf32>
    %43 = arith.divf %42, %41 : vector<256x1xf32>
    %44 = vector.broadcast %43 : vector<256x1xf32> to vector<256x128xf32>
    %45 = arith.mulf %33, %44 : vector<256x128xf32>
    %46 = arith.truncf %45 : vector<256x128xf32> to vector<256x128xbf16>
    %c1 = arith.constant 1 : index
    %c0_19 = arith.constant 0 : index
    %c0_20 = arith.constant 0 : index
    %47 = vector.load %arg2[%c1, %c0_19, %c0_20] : memref<3x128x128xbf16, #tpu.memory_space<vmem>>, vector<1x128x128xbf16>
    %48 = vector.shape_cast %47 : vector<1x128x128xbf16> to vector<128x128xbf16>
    %cst_21 = arith.constant dense<0.000000e+00> : vector<256x128xf32>
    %49 = tpu.matmul %46, %48, %cst_21 {dimension_numbers = #tpu.dot_dimension_numbers<[1], [0], [0], [1], [0, 0, 1, 1], [], []>} : vector<256x128xbf16>, vector<128x128xbf16>, vector<256x128xf32> -> vector<256x128xf32>
    %c1_22 = arith.constant 1 : index
    %c0_23 = arith.constant 0 : index
    %c0_24 = arith.constant 0 : index
    %50 = vector.load %arg3[%c1_22, %c0_23, %c0_24] : memref<3x1x128xf32, #tpu.memory_space<vmem>>, vector<1x1x128xf32>
    %51 = vector.shape_cast %50 : vector<1x1x128xf32> to vector<1x128xf32>
    %52 = vector.broadcast %51 : vector<1x128xf32> to vector<256x128xf32>
    %53 = arith.addf %49, %52 : vector<256x128xf32>
    %54 = arith.addf %27, %53 : vector<256x128xf32>
    %cst_25 = arith.constant dense<0.000000e+00> : vector<256xf32>
    %55 = vector.multi_reduction <add>, %54, %cst_25 [1] : vector<256x128xf32> to vector<256xf32>
    %56 = vector.shape_cast %55 : vector<256xf32> to vector<256x1xf32>
    %cst_26 = arith.constant 1.280000e+02 : f32
    %57 = vector.broadcast %cst_26 : f32 to vector<256x1xf32>
    %58 = arith.divf %56, %57 : vector<256x1xf32>
    %59 = vector.broadcast %58 : vector<256x1xf32> to vector<256x128xf32>
    %60 = arith.subf %54, %59 : vector<256x128xf32>
    %61 = arith.mulf %60, %60 : vector<256x128xf32>
    %cst_27 = arith.constant dense<0.000000e+00> : vector<256xf32>
    %62 = vector.multi_reduction <add>, %61, %cst_27 [1] : vector<256x128xf32> to vector<256xf32>
    %63 = vector.shape_cast %62 : vector<256xf32> to vector<256x1xf32>
    %cst_28 = arith.constant 0.00787401571 : f32
    %64 = vector.broadcast %cst_28 : f32 to vector<256x1xf32>
    %65 = arith.mulf %63, %64 : vector<256x1xf32>
    %66 = math.sqrt %65 : vector<256x1xf32>
    %cst_29 = arith.constant 9.99999997E-7 : f32
    %67 = vector.broadcast %cst_29 : f32 to vector<256x1xf32>
    %68 = arith.addf %66, %67 : vector<256x1xf32>
    %cst_30 = arith.constant 1.000000e+00 : f32
    %69 = vector.broadcast %cst_30 : f32 to vector<256x1xf32>
    %70 = arith.divf %69, %68 : vector<256x1xf32>
    %71 = vector.broadcast %70 : vector<256x1xf32> to vector<256x128xf32>
    %72 = arith.mulf %60, %71 : vector<256x128xf32>
    %73 = arith.truncf %72 : vector<256x128xf32> to vector<256x128xbf16>
    %c2 = arith.constant 2 : index
    %c0_31 = arith.constant 0 : index
    %c0_32 = arith.constant 0 : index
    %74 = vector.load %arg2[%c2, %c0_31, %c0_32] : memref<3x128x128xbf16, #tpu.memory_space<vmem>>, vector<1x128x128xbf16>
    %75 = vector.shape_cast %74 : vector<1x128x128xbf16> to vector<128x128xbf16>
    %cst_33 = arith.constant dense<0.000000e+00> : vector<256x128xf32>
    %76 = tpu.matmul %73, %75, %cst_33 {dimension_numbers = #tpu.dot_dimension_numbers<[1], [0], [0], [1], [0, 0, 1, 1], [], []>} : vector<256x128xbf16>, vector<128x128xbf16>, vector<256x128xf32> -> vector<256x128xf32>
    %c2_34 = arith.constant 2 : index
    %c0_35 = arith.constant 0 : index
    %c0_36 = arith.constant 0 : index
    %77 = vector.load %arg3[%c2_34, %c0_35, %c0_36] : memref<3x1x128xf32, #tpu.memory_space<vmem>>, vector<1x1x128xf32>
    %78 = vector.shape_cast %77 : vector<1x1x128xf32> to vector<1x128xf32>
    %79 = vector.broadcast %78 : vector<1x128xf32> to vector<256x128xf32>
    %80 = arith.addf %76, %79 : vector<256x128xf32>
    %81 = arith.addf %54, %80 : vector<256x128xf32>
    %c0_37 = arith.constant 0 : index
    %c0_38 = arith.constant 0 : index
    %82 = vector.load %arg4[%c0_37, %c0_38] : memref<256x128xf32, #tpu.memory_space<vmem>>, vector<256x128xf32>
    tpu.vector_store %arg4[%c0_37, %c0_38], %81 {strides = array<i32>} : memref<256x128xf32, #tpu.memory_space<vmem>>, vector<256x128xf32>,
    return
  }
  func.func @transform_0(%arg0: i32) -> (i32, i32) {
    %c0_i32 = arith.constant 0 : i32
    %c0_i32_0 = arith.constant 0 : i32
    return %arg0, %c0_i32 : i32, i32
  }
  func.func @transform_1(%arg0: i32) -> (i32, i32, i32) {
    %c0_i32 = arith.constant 0 : i32
    %c0_i32_0 = arith.constant 0 : i32
    %c0_i32_1 = arith.constant 0 : i32
    %c0_i32_2 = arith.constant 0 : i32
    return %c0_i32, %c0_i32_0, %c0_i32_1 : i32, i32, i32
  }
  func.func @transform_2(%arg0: i32) -> (i32, i32, i32) {
    %c0_i32 = arith.constant 0 : i32
    %c0_i32_0 = arith.constant 0 : i32
    %c0_i32_1 = arith.constant 0 : i32
    %c0_i32_2 = arith.constant 0 : i32
    return %c0_i32, %c0_i32_0, %c0_i32_1 : i32, i32, i32
  }
  func.func @transform_3(%arg0: i32) -> (i32, i32) {
    %c0_i32 = arith.constant 0 : i32
    %c0_i32_0 = arith.constant 0 : i32
    return %arg0, %c0_i32 : i32, i32
  }
}

</mosaic_0001>

<bundles_post_ra>
// kernel: tpu_custom_call.1
= control target key start
LH: loop header
LB: loop body
LE: loop exit
PB: predicated region body
PF: predicated region fallthrough
CT: control target
= control target key end

     0   :  { %8 = vsyncpa [#allocation3], 0  ;;  %s6416_s0 = inlined_call_operand.hbm [shape: f32[512,128], index: 0, kind: input, shape index: {}]   ;;  %s6417_s1 = inlined_call_operand.hbm [shape: bf16[3,128,128], index: 1, kind: input, shape index: {}]   ;;  %s6418_s2 = inlined_call_operand.vmem [shape: f32[3,1,128], index: 2, kind: input, shape index: {}]   ;;  %s6419_s3 = inlined_call_operand.hbm [shape: f32[512,128], index: 3, kind: output, shape index: {}]  }
   0x1   :  { %10 = vsyncpa [#allocation3 + $0x1], 0 }
   0x2   :  { %11 = vsyncpa [#allocation6], 0 }
   0x3   :  { %12 = vsyncpa [#allocation4], 0 }
   0x4   :  { %14 = vsyncpa [#allocation4 + $0x1], 0  ;;  %s3978_s12 = smov 0   ;;  %s3980_s13 = smov 0  }
   0x5   :  { %s3982_s14 = smov 0   ;;  %s3984_s15 = smov 0  }
   0x6 LB: > { %s3999_s16 = sadd.s32 4294967295, %s3947_s15   ;;  %s3037_s17 = sadd.s32 4294967294, %s3947_s15   ;;  %s3947_s15 = sphi %s3984_s15, %s6705_s15   ;;  %s3943_s14 = sphi %s3982_s14, %s6704_s14   ;;  %s3939_s13 = sphi %s3980_s13, %s6703_s13   ;;  %s3935_s12 = sphi %s3978_s12, %s6702_s12  }
   0x7   : > { %p40_p0 = scmp.ne.s32.totalorder %s3939_s13, %s3935_s12  ;;  %p6420_p1 = scmp.eq.s32.totalorder %s3999_s16, 0 }
   0x8   : > { %p112_p3 = scmp.eq.s32.totalorder %s3037_s17, 1  ;;  %p3038_p5 = scmp.ge.s32.totalorder %s3947_s15, 1 }
   0x9   : > { %p4008_p4 = por %p6420_p1, %p40_p0  ;;  %p119_p7 = scmp.lt.s32.totalorder %s3947_s15, 3 }
   0xa   : > { %p4013_p6 = por %p112_p3, %p40_p0  ;;  %s3949_s21 = smov [#allocation5]  }
   0xb   : > { %s6495_s18 = scalar_select %p4008_p4, 1, 0 }
   0xc   : > { %s6496_s19 = scalar_select %p4013_p6, 1, 0 }
   0xd   : > { %p4018_p8 = pnand %p3038_p5, %p119_p7  ;;  %s131_s22 = sshll.u32 %s3949_s21, 4  ;;  %s4022_s22 = int_to_ptr.vmem [resolvable:$true] %s131_s22 }
   0xe   : > { %s4034_s24 = sadd.s32 1, %s3947_s15   ;;  %s27_s25 = sadd.s32 1, %s3943_s14 }
   0xf   : > { %s6497_s20 = scalar_select %p4018_p8, 1, 0 }
  0x10   : > { %p3324_p9 = pneg %p4018_p8  ;;  %s24_s26 = ssub.s32 %s3947_s15, %s4034_s24 }
  0x11   : > { %s3819_s29 = scalar_lea.hbm %s6417_s1, 3072 }
  0x12   : > { %p4029_p11 = pnand %p3324_p9, %p6420_p1  ;;  %p3820_p12 = scmp.ne.s32.totalorder %s6417_s1, %s3819_s29 }
  0x13   : > { %p3826_p5 = scmp.lt.u32.totalorder %s3819_s29, %s6417_s1 }
  0x14   : > { %p3821_p13 = pneg %p4029_p11 }
  0x16   : > { %p3822_p0 = pnand %p3821_p13, %p3820_p12 }
  0x18   : > { %p3823_p3 = pneg %p3822_p0 }
  0x1a   : > { %p3828_p7 = pnand %p3826_p5, %p3823_p3 }
  0x1c   : > { %3831 = shalt.err (!%p3828_p7)
}
  0x1d   : > { %s3832_s7 = scalar_lea.vmem %s4022_s22, 3072  ;;  %p3840_p2 = scmp.lt.s32.totalorder %s4022_s22, %s4022_s22 }
  0x1e   : > { %p3833_p9 = scmp.ne.s32.totalorder %s4022_s22, %s3832_s7  ;;  %p3841_p6 = scmp.lt.s32.totalorder %s3832_s7, %s3832_s7 }
  0x20   : > { %p3835_p10 = pnand %p3833_p9, %p3821_p13  ;;  %p3842_p4 = por %p3841_p6, %p3840_p2 }
  0x22   : > { %p3836_p1 = pneg %p3835_p10 }
  0x24   : > { %p3843_p8 = pnand %p3842_p4, %p3836_p1 }
  0x26   : > { %3846 = shalt.err (!%p3843_p8)
}
  0x27   : > { %s3950_s8 = smov 64   ;;  %s3951_s9 = smov 4  }
  0x28   : > { %3327 = dma.hbm_to_vmem [thread:$0]  (!%p4029_p11), %s6417_s1, 3072, %s4022_s22, [#allocation6], %s3950_s8, %s3950_s8, %s3951_s9  }
  0x29   : > { %p25_p2 = scmp.eq.s32.totalorder %s24_s26, 0  ;;  %p34_p1 = scmp.ne.s32.totalorder %s3943_s14, %s3939_s13 }
  0x2a   : > { %p35_p4 = scmp.eq.s32.totalorder %s3947_s15, 0  ;;  %p3337_p6 = scmp.lt.s32.totalorder %s3947_s15, 2 }
  0x2b   : > { %s4065_s17 = scalar_select %p25_p2, %s3943_s14, %s27_s25  }
  0x2c   : > { %p36_p8 = por %p35_p4, %p34_p1  ;;  %p6499_p10 = scmp.eq.s32.totalorder %s3999_s16, 1 }
  0x2d   : > { %s148_s27 = sand.u32 1, %s3943_s14   ;;  %s3082_s28 = sshll.u32 %s3947_s15, 12 }
  0x2e   : > { %p4069_p12 = por %p6499_p10, %p34_p1  ;;  %s3041_s29 = sshll.u32 %s148_s27, 8 }
  0x2f   : > { %s4078_s4 = scalar_lea.hbm %s6416_s0, %s3082_s28  ;;  %s152_s22 = scalar_lea.vmem [#allocation2], %s3041_s29 }
  0x30   : > { %s159_s25 = sshll.u32 %s152_s22, 4  ;;  %p4080_p11 = pnand %p3337_p6, %p36_p8  ;;  %s4084_s25 = int_to_ptr.vmem [resolvable:$true] %s159_s25 }
  0x31   : > { %s4086_s5 = scalar_lea.sflag [#allocation3], %s148_s27  ;;  %s3847_s6 = scalar_lea.hbm %s4078_s4, 4096 }
  0x32   : > { %p3848_p13 = scmp.ne.s32.totalorder %s4078_s4, %s3847_s6  ;;  %p3849_p0 = pneg %p4080_p11 }
  0x33   : > { %s3852_s9 = scalar_lea.hbm %s6416_s0, 8192  ;;  %p3853_p7 = scmp.lt.u32.totalorder %s4078_s4, %s6416_s0 }
  0x34   : > { %p3850_p3 = pnand %p3849_p0, %p3848_p13  ;;  %p3854_p9 = scmp.lt.u32.totalorder %s3852_s9, %s3847_s6 }
  0x35   : > { %p3856_p1 = scmp.lt.u32.totalorder %s3847_s6, %s4078_s4 }
  0x36   : > { %p3851_p5 = pneg %p3850_p3  ;;  %p3855_p2 = por %p3854_p9, %p3853_p7 }
  0x38   : > { %p3857_p4 = por %p3856_p1, %p3855_p2 }
  0x3a   : > { %p3858_p6 = pnand %p3857_p4, %p3851_p5 }
  0x3c   : > { %3861 = shalt.err (!%p3858_p6)
}
  0x3d   : > { %s3862_s27 = scalar_lea.vmem %s4084_s25, 4096  ;;  %s3952_s28 = smov [#allocation2]  }
  0x3e   : > { %p3863_p8 = scmp.ne.s32.totalorder %s4084_s25, %s3862_s27  ;;  %s3867_s29 = sshll.u32 %s3952_s28, 4  ;;  %s3868_s29 = int_to_ptr.vmem [resolvable:$false] %s3867_s29 }
  0x3f   : > { %s3869_s23 = scalar_lea.vmem %s3868_s29, 8192  ;;  %p3870_p3 = scmp.lt.s32.totalorder %s4084_s25, %s3868_s29 }
  0x40   : > { %p3865_p10 = pnand %p3863_p8, %p3849_p0  ;;  %p3871_p7 = scmp.lt.s32.totalorder %s3869_s23, %s3862_s27 }
  0x42   : > { %p3866_p13 = pneg %p3865_p10  ;;  %p3872_p9 = por %p3871_p7, %p3870_p3 }
  0x44   : > { %p3873_p2 = pnand %p3872_p9, %p3866_p13 }
  0x46   : > { %3876 = shalt.err (!%p3873_p2)
}
  0x47   : > { %s3953_s30 = smov 128   ;;  %s3954_s22 = smov 8  }
  0x48   : > { %3331 = dma.hbm_to_vmem [thread:$0]  (!%p4080_p11), %s4078_s4, 4096, %s4084_s25, %s4086_s5, %s3953_s30, %s3953_s30, %s3954_s22  }
  0x49   : > { %p6502_p0 = scmp.ne.s32.totalorder %s6497_s20, 0 }
  0x4b   : > { %171 = sbr.rel (%p6502_p0) target bundleno = 1879 (0x757), region = 32 }
  0x52   : > { %s4117_s6 = sand.u32 1, %s3939_s13   ;;  %p6503_p5 = scmp.ne.s32.totalorder %s6495_s18, 0 }
  0x53   : > { %s3045_s7 = sshll.u32 %s4117_s6, 8  ;;  %s174_s8 = scalar_lea.sflag [#allocation3], %s4117_s6 }
  0x54   : > { %s4123_s9 = scalar_lea.vmem [#allocation2], %s3045_s7 }
  0x55   : > { %3922 = dma.done.wait (%p6503_p5), %s174_s8, 4096  }
  0x56   : > { %3924 = vsyncadd (%p6503_p5), %s174_s8, 4294963200  ;;  %p6504_p11 = scmp.eq.s32.totalorder %s3999_s16, 0 }
  0x58   : > { %3926 = dma.done.wait (%p6504_p11), [#allocation6], 3072   ;;  %p6505_p1 = pmov %p6504_p11 }
  0x59   : > { %v4134_v0 = vld [vmem:[%s4123_s9] sm:$0xff]  ;;  %v4137_v1 = vld [vmem:[%s4123_s9 + $0x10] sm:$0xff]  ;;  %v4142_v2 = vld [vmem:[%s4123_s9 + $0x8] sm:$0xff]  ;;  %s6273_s10 = scalar_lea.vmem [#allocation7], %s3045_s7  ;;  %s3083_s11 = sshll.u32 %s3999_s16, 12 }
  0x5a   : > { %3928 = vsyncadd (%p6505_p1), [#allocation6], 4294964224  ;;  %239 = vadd.xlane.f32.xlu0 %v4134_v0  ;;  %243 = vadd.xlane.f32.xlu1 %v4137_v1  ;;  %v4145_v3 = vld [vmem:[%s4123_s9 + $0x18] sm:$0xff]  ;;  %v4150_v4 = vld [vmem:[%s4123_s9 + $0x20] sm:$0xff]  ;;  %s2954_s27 = sshll.u32 %s6273_s10, 4  ;;  %s6366_s23 = scalar_lea.hbm %s6419_s3, %s3083_s11  ;;  %s6368_s27 = int_to_ptr.vmem [resolvable:$true] %s2954_s27 }
  0x5b   : > { %v4153_v5 = vld [vmem:[%s4123_s9 + $0x28] sm:$0xff]  ;;  %v4158_v6 = vld [vmem:[%s4123_s9 + $0x30] sm:$0xff]  ;;  %v4161_v7 = vld [vmem:[%s4123_s9 + $0x38] sm:$0xff]  ;;  %s2941_s16 = scalar_lea.sflag [#allocation4], %s4117_s6  ;;  %s3877_s30 = scalar_lea.vmem %s6368_s27, 4096 }
  0x5c   : > { %v4164_v8 = vld [vmem:[%s4123_s9 + $0x40] sm:$0xff]  ;;  %v4167_v9 = vld [vmem:[%s4123_s9 + $0x48] sm:$0xff]  ;;  %v4172_v10 = vld [vmem:[%s4123_s9 + $0x50] sm:$0xff]  ;;  %p3878_p4 = scmp.ne.s32.totalorder %s6368_s27, %s3877_s30  ;;  %s3955_s22 = smov [#allocation7]  }
  0x5d   : > { %v4175_v11 = vld [vmem:[%s4123_s9 + $0x58] sm:$0xff]  ;;  %v4180_v12 = vld [vmem:[%s4123_s9 + $0x60] sm:$0xff]  ;;  %v4183_v13 = vld [vmem:[%s4123_s9 + $0x68] sm:$0xff]  ;;  %s3881_s7 = sshll.u32 %s3955_s22, 4  ;;  %s3882_s7 = int_to_ptr.vmem [resolvable:$false] %s3881_s7 }
  0x5e   : > { %241 = vadd.xlane.f32.xlu0 %v4142_v2  ;;  %245 = vadd.xlane.f32.xlu1 %v4145_v3  ;;  %v4188_v14 = vld [vmem:[%s4123_s9 + $0x70] sm:$0xff]  ;;  %v4193_v15 = vld [vmem:[%s4123_s9 + $0x78] sm:$0xff]  ;;  %v4198_v16 = vld [vmem:[%s4123_s9 + $0x80] sm:$0xff]  ;;  %p3879_p6 = pnand %p3878_p4, %p4069_p12  ;;  %s3883_s8 = scalar_lea.vmem %s3882_s7, 8192 }
  0x5f   : > { %v4201_v17 = vld [vmem:[%s4123_s9 + $0x88] sm:$0xff]  ;;  %v4206_v18 = vld [vmem:[%s4123_s9 + $0x90] sm:$0xff]  ;;  %v4209_v19 = vld [vmem:[%s4123_s9 + $0x98] sm:$0xff]  ;;  %p3884_p10 = scmp.lt.s32.totalorder %s6368_s27, %s3882_s7  ;;  %p3885_p13 = scmp.lt.s32.totalorder %s3883_s8, %s3877_s30 }
  0x60   : > { %v4214_v20 = vld [vmem:[%s4123_s9 + $0xa0] sm:$0xff]  ;;  %v4217_v21 = vld [vmem:[%s4123_s9 + $0xa8] sm:$0xff]  ;;  %v4222_v22 = vld [vmem:[%s4123_s9 + $0xb0] sm:$0xff]  ;;  %p3880_p8 = pneg %p3879_p6 }
  0x61   : > { %v4225_v23 = vld [vmem:[%s4123_s9 + $0xb8] sm:$0xff]  ;;  %v4230_v24 = vld [vmem:[%s4123_s9 + $0xc0] sm:$0xff]  ;;  %v4233_v25 = vld [vmem:[%s4123_s9 + $0xc8] sm:$0xff]  ;;  %p3886_p3 = por %p3885_p13, %p3884_p10 }
  0x62   : > { %247 = vadd.xlane.f32.xlu0 %v4150_v4  ;;  %249 = vadd.xlane.f32.xlu1 %v4153_v5  ;;  %v4238_v26 = vld [vmem:[%s4123_s9 + $0xd0] sm:$0xff]  ;;  %v4241_v27 = vld [vmem:[%s4123_s9 + $0xd8] sm:$0xff]  ;;  %v4246_v28 = vld [vmem:[%s4123_s9 + $0xe0] sm:$0xff] }
  0x63   : > { %v4249_v29 = vld [vmem:[%s4123_s9 + $0xe8] sm:$0xff]  ;;  %v4254_v30 = vld [vmem:[%s4123_s9 + $0xf0] sm:$0xff]  ;;  %v4257_v31 = vld [vmem:[%s4123_s9 + $0xf8] sm:$0xff]  ;;  %p3887_p7 = pnand %p3886_p3, %p3880_p8 }
  0x66   : > { %251 = vadd.xlane.f32.xlu0 %v4158_v6  ;;  %253 = vadd.xlane.f32.xlu1 %v4161_v7 }
  0x6a   : > { %255 = vadd.xlane.f32.xlu0 %v4164_v8  ;;  %257 = vadd.xlane.f32.xlu1 %v4167_v9 }
  0x6e   : > { %259 = vadd.xlane.f32.xlu0 %v4172_v10  ;;  %261 = vadd.xlane.f32.xlu1 %v4175_v11 }
  0x72   : > { %263 = vadd.xlane.f32.xlu0 %v4180_v12  ;;  %265 = vadd.xlane.f32.xlu1 %v4183_v13 }
  0x76   : > { %267 = vadd.xlane.f32.xlu0 %v4188_v14  ;;  %269 = vadd.xlane.f32.xlu1 %v4193_v15 }
  0x7a   : > { %271 = vadd.xlane.f32.xlu0 %v4198_v16  ;;  %273 = vadd.xlane.f32.xlu1 %v4201_v17 }
  0x7e   : > { %275 = vadd.xlane.f32.xlu0 %v4206_v18  ;;  %277 = vadd.xlane.f32.xlu1 %v4209_v19 }
  0x82   : > { %279 = vadd.xlane.f32.xlu0 %v4214_v20  ;;  %281 = vadd.xlane.f32.xlu1 %v4217_v21 }
  0x86   : > { %283 = vadd.xlane.f32.xlu0 %v4222_v22  ;;  %285 = vadd.xlane.f32.xlu1 %v4225_v23 }
  0x8a   : > { %287 = vadd.xlane.f32.xlu0 %v4230_v24  ;;  %289 = vadd.xlane.f32.xlu1 %v4233_v25 }
  0x8e   : > { %291 = vadd.xlane.f32.xlu0 %v4238_v26  ;;  %293 = vadd.xlane.f32.xlu1 %v4241_v27 }
  0x92   : > { %295 = vadd.xlane.f32.xlu0 %v4246_v28  ;;  %297 = vadd.xlane.f32.xlu1 %v4249_v29 }
  0x96   : > { %299 = vadd.xlane.f32.xlu0 %v4254_v30  ;;  %301 = vadd.xlane.f32.xlu1 %v4257_v31 }
  0xe7   : > { %v240_v32 = vpop.xlane.xlu0 %239  ;;  %v244_v33 = vpop.xlane.xlu1 %243 }
  0xe8   : > { %v304_v34 = vmul.f32 0.0078125, %v240_v32  ;;  %v306_v35 = vmul.f32 0.0078125, %v244_v33 }
  0xea   : > { %v4262_v36 = vsub.f32 %v4134_v0, %v304_v34  ;;  %v4265_v37 = vsub.f32 %v4137_v1, %v306_v35 }
  0xeb   : > { %v242_v38 = vpop.xlane.xlu0 %241  ;;  %v246_v39 = vpop.xlane.xlu1 %245 }
  0xec   : > { %v305_v40 = vmul.f32 0.0078125, %v242_v38  ;;  %v368_v41 = vmul.f32 %v4262_v36, %v4262_v36  ;;  %v307_v42 = vmul.f32 0.0078125, %v246_v39  ;;  %v370_v43 = vmul.f32 %v4265_v37, %v4265_v37 }
  0xee   : > { %400 = vadd.xlane.f32.xlu0 %v368_v41  ;;  %v4272_v44 = vsub.f32 %v4142_v2, %v305_v40  ;;  %v4275_v45 = vsub.f32 %v4145_v3, %v307_v42 }
  0xef   : > { %v248_v46 = vpop.xlane.xlu0 %247  ;;  %v250_v47 = vpop.xlane.xlu1 %249 }
  0xf0   : > { %v308_v48 = vmul.f32 0.0078125, %v248_v46  ;;  %v369_v49 = vmul.f32 %v4272_v44, %v4272_v44  ;;  %v309_v50 = vmul.f32 0.0078125, %v250_v47  ;;  %v371_v51 = vmul.f32 %v4275_v45, %v4275_v45 }
  0xf2   : > { %404 = vadd.xlane.f32.xlu0 %v370_v43  ;;  %402 = vadd.xlane.f32.xlu1 %v369_v49  ;;  %v4282_v52 = vsub.f32 %v4150_v4, %v308_v48  ;;  %v4285_v53 = vsub.f32 %v4153_v5, %v309_v50 }
  0xf3   : > { %v252_v54 = vpop.xlane.xlu0 %251  ;;  %v254_v55 = vpop.xlane.xlu1 %253 }
  0xf4   : > { %v310_v56 = vmul.f32 0.0078125, %v252_v54  ;;  %v372_v57 = vmul.f32 %v4282_v52, %v4282_v52  ;;  %v311_v58 = vmul.f32 0.0078125, %v254_v55  ;;  %v373_v59 = vmul.f32 %v4285_v53, %v4285_v53 }
  0xf6   : > { %406 = vadd.xlane.f32.xlu1 %v371_v51  ;;  %408 = vadd.xlane.f32.xlu0 %v372_v57  ;;  %v4292_v60 = vsub.f32 %v4158_v6, %v310_v56  ;;  %v4295_v61 = vsub.f32 %v4161_v7, %v311_v58  ;;  %v3379_v51 = vld [vmem:[#allocation5] sm:$0xff]  }
  0xf7   : > { %v256_v62 = vpop.xlane.xlu0 %255  ;;  %v258_v63 = vpop.xlane.xlu1 %257  ;;  %3156 = vmatprep.subr.bf16.mxu0 %v3379_v51  ;;  %3300 = vmatprep.subr.bf16.mxu1 %v3379_v51 }
  0xf8   : > { %v312_v0 = vmul.f32 0.0078125, %v256_v62  ;;  %v374_v1 = vmul.f32 %v4292_v60, %v4292_v60  ;;  %v313_v2 = vmul.f32 0.0078125, %v258_v63  ;;  %v375_v3 = vmul.f32 %v4295_v61, %v4295_v61  ;;  %3157 = vmatpush3.bf16.msra.mxu0 %v3379_v51  ;;  %3308 = vmatpush3.bf16.msra.mxu1 %v3379_v51  ;;  %v3380_v62 = vld [vmem:[#allocation5 + $0x8] sm:$0xff]  }
  0xf9   : > { %3158 = vmatprep.subr.bf16.mxu0 %v3380_v62  ;;  %3301 = vmatprep.subr.bf16.mxu1 %v3380_v62 }
  0xfa   : > { %410 = vadd.xlane.f32.xlu1 %v373_v59  ;;  %412 = vadd.xlane.f32.xlu0 %v374_v1  ;;  %v4302_v4 = vsub.f32 %v4164_v8, %v312_v0  ;;  %v4305_v5 = vsub.f32 %v4167_v9, %v313_v2 }
  0xfb   : > { %v260_v6 = vpop.xlane.xlu0 %259  ;;  %v262_v7 = vpop.xlane.xlu1 %261 }
  0xfc   : > { %v314_v32 = vmul.f32 0.0078125, %v260_v6  ;;  %v376_v33 = vmul.f32 %v4302_v4, %v4302_v4  ;;  %v315_v34 = vmul.f32 0.0078125, %v262_v7  ;;  %v377_v35 = vmul.f32 %v4305_v5, %v4305_v5  ;;  %3159 = vmatpush3.bf16.msra.mxu0 %v3380_v62  ;;  %3309 = vmatpush3.bf16.msra.mxu1 %v3380_v62  ;;  %v3381_v7 = vld [vmem:[#allocation5 + $0x10] sm:$0xff]  }
  0xfd   : > { %3160 = vmatprep.subr.bf16.mxu0 %v3381_v7  ;;  %3302 = vmatprep.subr.bf16.mxu1 %v3381_v7 }
  0xfe   : > { %414 = vadd.xlane.f32.xlu1 %v375_v3  ;;  %416 = vadd.xlane.f32.xlu0 %v376_v33  ;;  %v4312_v38 = vsub.f32 %v4172_v10, %v314_v32  ;;  %v4315_v8 = vsub.f32 %v4175_v11, %v315_v34 }
  0xff   : > { %v264_v9 = vpop.xlane.xlu0 %263  ;;  %v266_v39 = vpop.xlane.xlu1 %265 }
 0x100   : > { %v316_v40 = vmul.f32 0.0078125, %v264_v9  ;;  %v378_v41 = vmul.f32 %v4312_v38, %v4312_v38  ;;  %v317_v42 = vmul.f32 0.0078125, %v266_v39  ;;  %v379_v43 = vmul.f32 %v4315_v8, %v4315_v8  ;;  %3161 = vmatpush3.bf16.msra.mxu0 %v3381_v7  ;;  %3310 = vmatpush3.bf16.msra.mxu1 %v3381_v7 }
 0x102   : > { %418 = vadd.xlane.f32.xlu1 %v377_v35  ;;  %420 = vadd.xlane.f32.xlu0 %v378_v41  ;;  %v4322_v46 = vsub.f32 %v4180_v12, %v316_v40  ;;  %v4325_v10 = vsub.f32 %v4183_v13, %v317_v42  ;;  %v3382_v40 = vld [vmem:[#allocation5 + $0x18] sm:$0xff]  }
 0x103   : > { %v268_v11 = vpop.xlane.xlu0 %267  ;;  %v270_v47 = vpop.xlane.xlu1 %269  ;;  %3162 = vmatprep.subr.bf16.mxu0 %v3382_v40  ;;  %3303 = vmatprep.subr.bf16.mxu1 %v3382_v40 }
 0x104   : > { %v318_v48 = vmul.f32 0.0078125, %v268_v11  ;;  %v380_v49 = vmul.f32 %v4322_v46, %v4322_v46  ;;  %v319_v50 = vmul.f32 0.0078125, %v270_v47  ;;  %v381_v54 = vmul.f32 %v4325_v10, %v4325_v10  ;;  %3163 = vmatpush3.bf16.msra.mxu0 %v3382_v40  ;;  %3311 = vmatpush3.bf16.msra.mxu1 %v3382_v40 }
 0x106   : > { %422 = vadd.xlane.f32.xlu1 %v379_v43  ;;  %424 = vadd.xlane.f32.xlu0 %v380_v49  ;;  %v4332_v55 = vsub.f32 %v4188_v14, %v318_v48  ;;  %v4335_v12 = vsub.f32 %v4193_v15, %v319_v50  ;;  %v3383_v49 = vld [vmem:[#allocation5 + $0x20] sm:$0xff]  }
 0x107   : > { %v272_v13 = vpop.xlane.xlu0 %271  ;;  %v274_v56 = vpop.xlane.xlu1 %273  ;;  %3164 = vmatprep.subr.bf16.mxu0 %v3383_v49  ;;  %3304 = vmatprep.subr.bf16.mxu1 %v3383_v49 }
 0x108   : > { %v320_v57 = vmul.f32 0.0078125, %v272_v13  ;;  %v382_v58 = vmul.f32 %v4332_v55, %v4332_v55  ;;  %v321_v59 = vmul.f32 0.0078125, %v274_v56  ;;  %v383_v14 = vmul.f32 %v4335_v12, %v4335_v12  ;;  %3165 = vmatpush3.bf16.msra.mxu0 %v3383_v49  ;;  %3312 = vmatpush3.bf16.msra.mxu1 %v3383_v49 }
 0x10a   : > { %426 = vadd.xlane.f32.xlu1 %v381_v54  ;;  %428 = vadd.xlane.f32.xlu0 %v382_v58  ;;  %v4342_v15 = vsub.f32 %v4198_v16, %v320_v57  ;;  %v4345_v63 = vsub.f32 %v4201_v17, %v321_v59  ;;  %v3384_v58 = vld [vmem:[#allocation5 + $0x28] sm:$0xff]  }
 0x10b   : > { %v276_v0 = vpop.xlane.xlu0 %275  ;;  %v278_v1 = vpop.xlane.xlu1 %277  ;;  %3166 = vmatprep.subr.bf16.mxu0 %v3384_v58  ;;  %3305 = vmatprep.subr.bf16.mxu1 %v3384_v58 }
 0x10c   : > { %v322_v2 = vmul.f32 0.0078125, %v276_v0  ;;  %v384_v3 = vmul.f32 %v4342_v15, %v4342_v15  ;;  %v323_v6 = vmul.f32 0.0078125, %v278_v1  ;;  %v385_v16 = vmul.f32 %v4345_v63, %v4345_v63  ;;  %3167 = vmatpush3.bf16.msra.mxu0 %v3384_v58  ;;  %3313 = vmatpush3.bf16.msra.mxu1 %v3384_v58 }
 0x10e   : > { %430 = vadd.xlane.f32.xlu1 %v383_v14  ;;  %432 = vadd.xlane.f32.xlu0 %v384_v3  ;;  %v4352_v17 = vsub.f32 %v4206_v18, %v322_v2  ;;  %v4355_v32 = vsub.f32 %v4209_v19, %v323_v6  ;;  %v3385_v3 = vld [vmem:[#allocation5 + $0x30] sm:$0xff]  }
 0x10f   : > { %v280_v33 = vpop.xlane.xlu0 %279  ;;  %v282_v34 = vpop.xlane.xlu1 %281  ;;  %3168 = vmatprep.subr.bf16.mxu0 %v3385_v3  ;;  %3306 = vmatprep.subr.bf16.mxu1 %v3385_v3 }
 0x110   : > { %v324_v35 = vmul.f32 0.0078125, %v280_v33  ;;  %v386_v9 = vmul.f32 %v4352_v17, %v4352_v17  ;;  %v325_v39 = vmul.f32 0.0078125, %v282_v34  ;;  %v387_v18 = vmul.f32 %v4355_v32, %v4355_v32  ;;  %3169 = vmatpush3.bf16.msra.mxu0 %v3385_v3  ;;  %3314 = vmatpush3.bf16.msra.mxu1 %v3385_v3 }
 0x112   : > { %434 = vadd.xlane.f32.xlu1 %v385_v16  ;;  %436 = vadd.xlane.f32.xlu0 %v386_v9  ;;  %v4362_v19 = vsub.f32 %v4214_v20, %v324_v35  ;;  %v4365_v41 = vsub.f32 %v4217_v21, %v325_v39  ;;  %v3386_v9 = vld [vmem:[#allocation5 + $0x38] sm:$0xff]  }
 0x113   : > { %v284_v42 = vpop.xlane.xlu0 %283  ;;  %v286_v43 = vpop.xlane.xlu1 %285  ;;  %3170 = vmatprep.subr.bf16.mxu0 %v3386_v9  ;;  %3307 = vmatprep.subr.bf16.mxu1 %v3386_v9 }
 0x114   : > { %v326_v11 = vmul.f32 0.0078125, %v284_v42  ;;  %v388_v47 = vmul.f32 %v4362_v19, %v4362_v19  ;;  %v327_v48 = vmul.f32 0.0078125, %v286_v43  ;;  %v389_v20 = vmul.f32 %v4365_v41, %v4365_v41  ;;  %3171 = vmatpush3.bf16.msra.mxu0 %v3386_v9  ;;  %3315 = vmatpush3.bf16.msra.mxu1 %v3386_v9 }
 0x116   : > { %438 = vadd.xlane.f32.xlu1 %v387_v18  ;;  %440 = vadd.xlane.f32.xlu0 %v388_v47  ;;  %v4372_v21 = vsub.f32 %v4222_v22, %v326_v11  ;;  %v4375_v50 = vsub.f32 %v4225_v23, %v327_v48 }
 0x117   : > { %v288_v51 = vpop.xlane.xlu0 %287  ;;  %v290_v54 = vpop.xlane.xlu1 %289 }
 0x118   : > { %v328_v13 = vmul.f32 0.0078125, %v288_v51  ;;  %v390_v56 = vmul.f32 %v4372_v21, %v4372_v21  ;;  %v329_v57 = vmul.f32 0.0078125, %v290_v54  ;;  %v391_v22 = vmul.f32 %v4375_v50, %v4375_v50 }
 0x11a   : > { %442 = vadd.xlane.f32.xlu1 %v389_v20  ;;  %444 = vadd.xlane.f32.xlu0 %v390_v56  ;;  %v4382_v23 = vsub.f32 %v4230_v24, %v328_v13  ;;  %v4385_v59 = vsub.f32 %v4233_v25, %v329_v57 }
 0x11b   : > { %v292_v62 = vpop.xlane.xlu0 %291  ;;  %v294_v14 = vpop.xlane.xlu1 %293 }
 0x11c   : > { %v330_v0 = vmul.f32 0.0078125, %v292_v62  ;;  %v392_v1 = vmul.f32 %v4382_v23, %v4382_v23  ;;  %v331_v2 = vmul.f32 0.0078125, %v294_v14  ;;  %v393_v24 = vmul.f32 %v4385_v59, %v4385_v59 }
 0x11e   : > { %446 = vadd.xlane.f32.xlu1 %v391_v22  ;;  %448 = vadd.xlane.f32.xlu0 %v392_v1  ;;  %v4392_v25 = vsub.f32 %v4238_v26, %v330_v0  ;;  %v4395_v6 = vsub.f32 %v4241_v27, %v331_v2 }
 0x11f   : > { %v296_v7 = vpop.xlane.xlu0 %295  ;;  %v298_v16 = vpop.xlane.xlu1 %297 }
 0x120   : > { %6506 = vst [vmem:[#allocation11_spill] sm:$0xff] %v4392_v25  ;;  %6507 = vst [vmem:[#allocation12_spill] sm:$0xff] %v4395_v6  ;;  %v332_v33 = vmul.f32 0.0078125, %v296_v7  ;;  %v394_v34 = vmul.f32 %v4392_v25, %v4392_v25  ;;  %v333_v35 = vmul.f32 0.0078125, %v298_v16  ;;  %v395_v26 = vmul.f32 %v4395_v6, %v4395_v6 }
 0x122   : > { %450 = vadd.xlane.f32.xlu1 %v393_v24  ;;  %452 = vadd.xlane.f32.xlu0 %v394_v34  ;;  %v4402_v27 = vsub.f32 %v4246_v28, %v332_v33  ;;  %v4405_v39 = vsub.f32 %v4249_v29, %v333_v35 }
 0x123   : > { %v300_v40 = vpop.xlane.xlu0 %299  ;;  %v302_v18 = vpop.xlane.xlu1 %301 }
 0x124   : > { %6508 = vst [vmem:[#allocation13_spill] sm:$0xff] %v4402_v27  ;;  %6509 = vst [vmem:[#allocation14_spill] sm:$0xff] %v4405_v39  ;;  %v334_v42 = vmul.f32 0.0078125, %v300_v40  ;;  %v396_v43 = vmul.f32 %v4402_v27, %v4402_v27  ;;  %v335_v11 = vmul.f32 0.0078125, %v302_v18  ;;  %v397_v28 = vmul.f32 %v4405_v39, %v4405_v39 }
 0x126   : > { %454 = vadd.xlane.f32.xlu1 %v395_v26  ;;  %456 = vadd.xlane.f32.xlu0 %v396_v43  ;;  %v4412_v47 = vsub.f32 %v4254_v30, %v334_v42  ;;  %v4415_v29 = vsub.f32 %v4257_v31, %v335_v11 }
 0x128   : > { %6510 = vst [vmem:[#allocation15_spill] sm:$0xff] %v4412_v47  ;;  %6511 = vst [vmem:[#allocation16_spill] sm:$0xff] %v4415_v29  ;;  %v398_v48 = vmul.f32 %v4412_v47, %v4412_v47  ;;  %v399_v49 = vmul.f32 %v4415_v29, %v4415_v29 }
 0x12a   : > { %458 = vadd.xlane.f32.xlu1 %v397_v28  ;;  %460 = vadd.xlane.f32.xlu0 %v398_v48 }
 0x12e   : > { %462 = vadd.xlane.f32.xlu1 %v399_v49 }
 0x17b   : > { %v401_v20 = vpop.xlane.xlu0 %400 }
 0x17c   : > { %v464_v51 = vmul.f32 0.007874016, %v401_v20 }
 0x17e   : > { %3403 = vrsqrt.f32 %v464_v51  ;;  %vm498_vm0 = vcmp.eq.f32.partialorder %v464_v51, inf  ;;  %v501_v18 = vand.u32 2147483648, %v464_v51  ;;  %vm500_vm2 = vcmp.eq.f32.partialorder %v464_v51, 0.0 }
 0x17f   : > { %v403_v54 = vpop.xlane.xlu1 %402  ;;  %v405_v13 = vpop.xlane.xlu0 %404 }
 0x180   : > { %v465_v56 = vmul.f32 0.007874016, %v403_v54  ;;  %v4421_v30 = vmul.f32 0.007874016, %v405_v13 }
 0x182   : > { %3405 = vrsqrt.f32 %v465_v56  ;;  %vm505_vm1 = vcmp.eq.f32.partialorder %v465_v56, inf  ;;  %v508_v20 = vand.u32 2147483648, %v465_v56  ;;  %vm512_vm3 = vcmp.eq.f32.partialorder %v4421_v30, inf }
 0x183   : > { %v407_v31 = vpop.xlane.xlu1 %406  ;;  %v409_v57 = vpop.xlane.xlu0 %408  ;;  %3407 = vrsqrt.f32 %v4421_v30  ;;  %vm514_vm4 = vcmp.eq.f32.partialorder %v4421_v30, 0.0  ;;  %vm507_vm5 = vcmp.eq.f32.partialorder %v465_v56, 0.0 }
 0x184   : > { %v4423_v58 = vmul.f32 0.007874016, %v407_v31  ;;  %v4427_v14 = vmul.f32 0.007874016, %v409_v57 }
 0x186   : > { %3409 = vrsqrt.f32 %v4423_v58  ;;  %vm519_vm6 = vcmp.eq.f32.partialorder %v4423_v58, inf  ;;  %vm521_vm7 = vcmp.eq.f32.partialorder %v4423_v58, 0.0  ;;  %vm526_vm8 = vcmp.eq.f32.partialorder %v4427_v14, inf }
 0x187   : > { %v411_v22 = vpop.xlane.xlu1 %410  ;;  %v413_v62 = vpop.xlane.xlu0 %412  ;;  %3411 = vrsqrt.f32 %v4427_v14  ;;  %vm528_vm9 = vcmp.eq.f32.partialorder %v4427_v14, 0.0 }
 0x188   : > { %v3404_v0 = vpop.eup %3403  ;;  %v4429_v1 = vmul.f32 0.007874016, %v411_v22  ;;  %v4433_v35 = vmul.f32 0.007874016, %v413_v62  ;;  %v515_v22 = vand.u32 2147483648, %v4421_v30 }
 0x189   : > { %v497_v7 = vmul.f32 %v3404_v0, %v464_v51 }
 0x18a   : > { %3413 = vrsqrt.f32 %v4429_v1  ;;  %vm533_vm10 = vcmp.eq.f32.partialorder %v4429_v1, inf  ;;  %vm535_vm11 = vcmp.eq.f32.partialorder %v4429_v1, 0.0  ;;  %vm540_vm12 = vcmp.eq.f32.partialorder %v4433_v35, inf }
 0x18b   : > { %v415_v2 = vpop.xlane.xlu1 %414  ;;  %v417_v3 = vpop.xlane.xlu0 %416  ;;  %v499_v26 = vsel %vm498_vm0, %v464_v51, %v497_v7  ;;  %3415 = vrsqrt.f32 %v4433_v35  ;;  %vm542_vm13 = vcmp.eq.f32.partialorder %v4433_v35, 0.0 }
 0x18c   : > { %v3406_v24 = vpop.eup %3405  ;;  %v4435_v40 = vmul.f32 0.007874016, %v415_v2  ;;  %v502_v49 = vsel %vm500_vm2, %v501_v18, %v499_v26  ;;  %v4441_v54 = vmul.f32 0.007874016, %v417_v3 }
 0x18d   : > { %v504_v16 = vmul.f32 %v3406_v24, %v465_v56  ;;  %v3408_v9 = vpop.eup %3407  ;;  %v720_v2 = vadd.f32 1e-06, %v502_v49  ;;  %v522_v24 = vand.u32 2147483648, %v4423_v58 }
 0x18e   : > { %v511_v48 = vmul.f32 %v3408_v9, %v4421_v30  ;;  %3417 = vrsqrt.f32 %v4435_v40  ;;  %vm547_vm14 = vcmp.eq.f32.partialorder %v4435_v40, inf  ;;  %vm549_vm15 = vcmp.eq.f32.partialorder %v4435_v40, 0.0 }
 0x18f   : > { %v419_v33 = vpop.xlane.xlu1 %418  ;;  %v421_v34 = vpop.xlane.xlu0 %420  ;;  %v506_v28 = vsel %vm505_vm1, %v465_v56, %v504_v16  ;;  %v529_v16 = vand.u32 2147483648, %v4427_v14  ;;  %3419 = vrsqrt.f32 %v4441_v54  ;;  %vm554_vm0 = vcmp.eq.f32.partialorder %v4441_v54, inf }
 0x190   : > { %v3410_v42 = vpop.eup %3409  ;;  %v4445_v31 = vmul.f32 0.007874016, %v419_v33  ;;  %v509_v51 = vsel %vm507_vm5, %v508_v20, %v506_v28  ;;  %v513_v56 = vsel %vm512_vm3, %v4421_v30, %v511_v48  ;;  %v4455_v7 = vmul.f32 0.007874016, %v421_v34 }
 0x191   : > { %v518_v13 = vmul.f32 %v3410_v42, %v4423_v58  ;;  %v3412_v57 = vpop.eup %3411  ;;  %v721_v33 = vadd.f32 1e-06, %v509_v51  ;;  %v516_v49 = vsel %vm514_vm4, %v515_v22, %v513_v56 }
 0x192   : > { %v525_v26 = vmul.f32 %v3412_v57, %v4427_v14  ;;  %3421 = vrsqrt.f32 %v4445_v31  ;;  %v722_v57 = vadd.f32 1e-06, %v516_v49  ;;  %vm561_vm1 = vcmp.eq.f32.partialorder %v4445_v31, inf }
 0x193   : > { %v423_v43 = vpop.xlane.xlu1 %422  ;;  %v425_v11 = vpop.xlane.xlu0 %424  ;;  %v520_v9 = vsel %vm519_vm6, %v4423_v58, %v518_v13  ;;  %3423 = vrcp.f32 %v720_v2  ;;  %vm568_vm2 = vcmp.eq.f32.partialorder %v4455_v7, inf }
 0x194   : > { %v3414_v3 = vpop.eup %3413  ;;  %v4463_v18 = vmul.f32 0.007874016, %v423_v43  ;;  %v4466_v28 = vmul.f32 0.007874016, %v425_v11  ;;  %3425 = vrsqrt.f32 %v4455_v7  ;;  %v536_v43 = vand.u32 2147483648, %v4429_v1 }
 0x195   : > { %v532_v42 = vmul.f32 %v3414_v3, %v4429_v1  ;;  %3427 = vrcp.f32 %v721_v33  ;;  %v523_v11 = vsel %vm521_vm7, %v522_v24, %v520_v9  ;;  %v3416_v51 = vpop.eup %3415  ;;  %v527_v30 = vsel %vm526_vm8, %v4427_v14, %v525_v26 }
 0x196   : > { %3429 = vrsqrt.f32 %v4463_v18  ;;  %v723_v24 = vadd.f32 1e-06, %v523_v11  ;;  %v539_v33 = vmul.f32 %v3416_v51, %v4433_v35  ;;  %v530_v26 = vsel %vm528_vm9, %v529_v16, %v527_v30 }
 0x197   : > { %v427_v62 = vpop.xlane.xlu1 %426  ;;  %v429_v0 = vpop.xlane.xlu0 %428  ;;  %v534_v22 = vsel %vm533_vm10, %v4429_v1, %v532_v42  ;;  %3431 = vrsqrt.f32 %v4466_v28  ;;  %v724_v16 = vadd.f32 1e-06, %v530_v26  ;;  %vm575_vm3 = vcmp.eq.f32.partialorder %v4463_v18, inf }
 0x198   : > { %v4473_v20 = vmul.f32 0.007874016, %v427_v62  ;;  %v4476_v13 = vmul.f32 0.007874016, %v429_v0  ;;  %v543_v62 = vand.u32 2147483648, %v4433_v35  ;;  %v3418_v3 = vpop.eup %3417  ;;  %vm582_vm4 = vcmp.eq.f32.partialorder %v4466_v28, inf }
 0x199   : > { %v3420_v49 = vpop.eup %3419  ;;  %v546_v11 = vmul.f32 %v3418_v3, %v4435_v40  ;;  %vm556_vm7 = vcmp.eq.f32.partialorder %v4441_v54, 0.0  ;;  %vm563_vm8 = vcmp.eq.f32.partialorder %v4445_v31, 0.0  ;;  %vm570_vm10 = vcmp.eq.f32.partialorder %v4455_v7, 0.0 }
 0x19a   : > { %3433 = vrsqrt.f32 %v4473_v20  ;;  %vm589_vm5 = vcmp.eq.f32.partialorder %v4473_v20, inf  ;;  %vm596_vm6 = vcmp.eq.f32.partialorder %v4476_v13, inf }
 0x19b   : > { %v431_v34 = vpop.xlane.xlu1 %430  ;;  %v433_v48 = vpop.xlane.xlu0 %432  ;;  %3435 = vrsqrt.f32 %v4476_v13 }
 0x19c   : > { %v4489_v58 = vmul.f32 0.007874016, %v431_v34  ;;  %v4496_v9 = vmul.f32 0.007874016, %v433_v48  ;;  %3437 = vrcp.f32 %v722_v57  ;;  %v537_v34 = vsel %vm535_vm11, %v536_v43, %v534_v22  ;;  %v3422_v30 = vpop.eup %3421 }
 0x19d   : > { %v3424_v1 = vpop.eup %3423  ;;  %v541_v43 = vsel %vm540_vm12, %v4433_v35, %v539_v33  ;;  %v725_v22 = vadd.f32 1e-06, %v537_v34  ;;  %v553_v33 = vmul.f32 %v3420_v49, %v4441_v54  ;;  %vm577_vm11 = vcmp.eq.f32.partialorder %v4463_v18, 0.0 }
 0x19e   : > { %3439 = vrsqrt.f32 %v4489_v58  ;;  %v544_v49 = vsel %vm542_vm13, %v543_v62, %v541_v43  ;;  %v6512_v43 = vand.u32 2147483648, %v4435_v40  ;;  %vm603_vm9 = vcmp.eq.f32.partialorder %v4489_v58, inf }
 0x19f   : > { %v435_v0 = vpop.xlane.xlu1 %434  ;;  %v437_v2 = vpop.xlane.xlu0 %436  ;;  %3441 = vrcp.f32 %v723_v24  ;;  %v548_v24 = vsel %vm547_vm14, %v4435_v40, %v546_v11  ;;  %v555_v62 = vsel %vm554_vm0, %v4441_v54, %v553_v33  ;;  %vm591_vm0 = vcmp.eq.f32.partialorder %v4473_v20, 0.0 }
 0x1a0   : > { %v4507_v48 = vmul.f32 0.007874016, %v437_v2  ;;  %3443 = vrsqrt.f32 %v4496_v9  ;;  %v3426_v2 = vpop.eup %3425  ;;  %v4528_v34 = vmul.f32 0.007874016, %v435_v0  ;;  %v560_v0 = vmul.f32 %v3422_v30, %v4445_v31 }
 0x1a1   : > { %3445 = vrcp.f32 %v724_v16  ;;  %v816_v16 = vmul.f32 %v3424_v1, %v4262_v36 }
 0x1a2   : > { %3447 = vrsqrt.f32 %v4507_v48  ;;  %v562_v56 = vsel %vm561_vm1, %v4445_v31, %v560_v0  ;;  %vm624_vm12 = vcmp.eq.f32.partialorder %v4507_v48, inf }
 0x1a3   : > { %v439_v51 = vpop.xlane.xlu1 %438  ;;  %v441_v14 = vpop.xlane.xlu0 %440 }
 0x1a4   : > { %v4511_v42 = vmul.f32 0.007874016, %v439_v51  ;;  %v4520_v47 = vmul.f32 0.007874016, %v441_v14  ;;  %v3428_v51 = vpop.eup %3427 }
 0x1a5   : > { %v3430_v14 = vpop.eup %3429  ;;  %v817_v57 = vmul.f32 %v3428_v51, %v4272_v44 }
 0x1a6   : > { %3449 = vrsqrt.f32 %v4511_v42  ;;  %v3432_v11 = vpop.eup %3431  ;;  %v574_v51 = vmul.f32 %v3430_v14, %v4463_v18  ;;  %vm631_vm13 = vcmp.eq.f32.partialorder %v4511_v42, inf  ;;  %vm638_vm14 = vcmp.eq.f32.partialorder %v4520_v47, inf }
 0x1a7   : > { %v443_v3 = vpop.xlane.xlu1 %442  ;;  %v445_v26 = vpop.xlane.xlu0 %444  ;;  %3451 = vrcp.f32 %v725_v22  ;;  %v848_v36 = vpack.c.bf16 %v817_v57, %v816_v16  ;;  %v551_v57 = vsel %vm549_vm15, %v6512_v43, %v548_v24  ;;  %v726_v22 = vadd.f32 1e-06, %v544_v49 }
 0x1a8   : > { %v4540_v29 = vmul.f32 0.007874016, %v443_v3  ;;  %v3434_v27 = vpop.eup %3433  ;;  %3453 = vrsqrt.f32 %v4520_v47  ;;  %v4544_v44 = vmul.f32 0.007874016, %v445_v26  ;;  %v567_v26 = vmul.f32 %v3426_v2, %v4455_v7 }
 0x1a9   : > { %v3436_v35 = vpop.eup %3435  ;;  %3455 = vrsqrt.f32 %v4528_v34  ;;  %3172 = vmatprep.mubr.bf16.mxu0 %v848_v36  ;;  %v581_v25 = vmul.f32 %v3432_v11, %v4466_v28  ;;  %v588_v2 = vmul.f32 %v3434_v27, %v4473_v20  ;;  %v727_v49 = vadd.f32 1e-06, %v551_v57 }
 0x1aa   : > { %v3438_v3 = vpop.eup %3437  ;;  %3457 = vrsqrt.f32 %v4540_v29  ;;  %v595_v43 = vmul.f32 %v3436_v35, %v4476_v13  ;;  %v569_v27 = vsel %vm568_vm2, %v4455_v7, %v567_v26  ;;  %v4580_v57 = vsel %vm575_vm3, %v4463_v18, %v574_v51 }
 0x1ab   : > { %v447_v30 = vpop.xlane.xlu1 %446  ;;  %v449_v1 = vpop.xlane.xlu0 %448  ;;  %3459 = vrsqrt.f32 %v4544_v44  ;;  %v818_v33 = vmul.f32 %v3438_v3, %v4265_v37  ;;  %vm584_vm15 = vcmp.eq.f32.partialorder %v4466_v28, 0.0  ;;  %vm645_vm1 = vcmp.eq.f32.partialorder %v4540_v29, inf }
 0x1ac   : > { %v3440_v16 = vpop.eup %3439  ;;  %v4565_v40 = vmul.f32 0.007874016, %v447_v30  ;;  %3461 = vrcp.f32 %v726_v22  ;;  %v4583_v37 = vmul.f32 0.007874016, %v449_v1  ;;  %v4589_v22 = vsel %vm582_vm4, %v4466_v28, %v581_v25 }
 0x1ad   : > { %v3442_v24 = vpop.eup %3441  ;;  %v602_v3 = vmul.f32 %v3440_v16, %v4489_v58  ;;  %v4597_v1 = vsel %vm589_vm5, %v4473_v20, %v588_v2  ;;  %vm652_vm2 = vcmp.eq.f32.partialorder %v4544_v44, inf  ;;  %vm598_vm4 = vcmp.eq.f32.partialorder %v4476_v13, 0.0 }
 0x1ae   : > { %v3444_v36 = vpop.eup %3443  ;;  %v819_v0 = vmul.f32 %v3442_v24, %v4275_v45  ;;  %3463 = vrsqrt.f32 %v4565_v40  ;;  %vm659_vm3 = vcmp.eq.f32.partialorder %v4565_v40, inf  ;;  %vm605_vm5 = vcmp.eq.f32.partialorder %v4489_v58, 0.0 }
 0x1af   : > { %v451_v11 = vpop.xlane.xlu1 %450  ;;  %v453_v39 = vpop.xlane.xlu0 %452  ;;  %3465 = vrcp.f32 %v727_v49  ;;  %v6513_v49 = vand.u32 2147483648, %v4441_v54 }
 0x1b0   : > { %v3446_v30 = vpop.eup %3445  ;;  %v849_v26 = vpack.c.bf16 %v819_v0, %v818_v33  ;;  %v4601_v25 = vmul.f32 0.007874016, %v451_v11  ;;  %v4606_v33 = vsel %vm596_vm6, %v4476_v13, %v595_v43  ;;  %v4610_v2 = vmul.f32 0.007874016, %v453_v39 }
 0x1b1   : > { %v3448_v45 = vpop.eup %3447  ;;  %v820_v16 = vmul.f32 %v3446_v30, %v4282_v52  ;;  %3467 = vrsqrt.f32 %v4583_v37  ;;  %v558_v11 = vsel %vm556_vm7, %v6513_v49, %v555_v62  ;;  %v6514_v43 = vand.u32 2147483648, %v4445_v31 }
 0x1b2   : > { %v3450_v51 = vpop.eup %3449  ;;  %3173 = vmatmul.mubr.bf16.vlgmr.msra.gmra.mrb[0].mxu0 %v849_v26  ;;  %v4625_v52 = vsel %vm603_vm9, %v4489_v58, %v602_v3  ;;  %3469 = vrsqrt.f32 %v4601_v25  ;;  %v623_v31 = vmul.f32 %v3448_v45, %v4507_v48  ;;  %v648_v62 = vand.u32 2147483648, %v4540_v29 }
 0x1b3   : > { %v3452_v35 = vpop.eup %3451  ;;  %v565_v24 = vsel %vm563_vm8, %v6514_v43, %v562_v56  ;;  %v455_v26 = vpop.xlane.xlu1 %454  ;;  %v630_v56 = vmul.f32 %v3450_v51, %v4511_v42  ;;  %3471 = vrsqrt.f32 %v4610_v2  ;;  %v728_v3 = vadd.f32 1e-06, %v558_v11 }
 0x1b4   : > { %v3454_v0 = vpop.eup %3453  ;;  %v821_v14 = vmul.f32 %v3452_v35, %v4285_v53  ;;  %v4628_v53 = vmul.f32 %v3444_v36, %v4496_v9  ;;  %v457_v54 = vpop.xlane.xlu0 %456  ;;  %v729_v49 = vadd.f32 1e-06, %v565_v24  ;;  %v4645_v51 = vmul.f32 0.007874016, %v455_v26 }
 0x1b5   : > { %v3456_v6 = vpop.eup %3455  ;;  %v637_v36 = vmul.f32 %v3454_v0, %v4520_v47  ;;  %3473 = vrcp.f32 %v728_v3  ;;  %v6515_v0 = vand.u32 2147483648, %v4455_v7  ;;  %v6516_v26 = vand.u32 2147483648, %v4463_v18 }
 0x1b6   : > { %v850_v30 = vpack.c.bf16 %v821_v14, %v820_v16  ;;  %v3458_v35 = vpop.eup %3457  ;;  %v4641_v39 = vmul.f32 %v3456_v6, %v4528_v34  ;;  %v4648_v16 = vmul.f32 0.007874016, %v457_v54  ;;  %v4659_v6 = vsel %vm624_vm12, %v4507_v48, %v623_v31 }
 0x1b7   : > { %v3460_v43 = vpop.eup %3459  ;;  %v572_v24 = vsel %vm570_vm10, %v6515_v0, %v569_v27  ;;  %3475 = vrcp.f32 %v729_v49  ;;  %v579_v54 = vsel %vm577_vm11, %v6516_v26, %v4580_v57  ;;  %v459_v7 = vpop.xlane.xlu1 %458  ;;  %v4675_v31 = vsel %vm638_vm14, %v4520_v47, %v637_v36 }
 0x1b8   : > { %3176 = vmatprep.mubr.bf16.mxu0 %v850_v30  ;;  %v3462_v14 = vpop.eup %3461  ;;  %v4670_v30 = vsel %vm631_vm13, %v4511_v42, %v630_v56  ;;  %v644_v3 = vmul.f32 %v3458_v35, %v4540_v29  ;;  %v461_v0 = vpop.xlane.xlu0 %460  ;;  %v651_v18 = vmul.f32 %v3460_v43, %v4544_v44  ;;  %3477 = vrsqrt.f32 %v4645_v51 }
 0x1b9   : > { %v3464_v27 = vpop.eup %3463  ;;  %v822_v57 = vmul.f32 %v3462_v14, %v4292_v60  ;;  %v730_v26 = vadd.f32 1e-06, %v572_v24  ;;  %vm666_vm6 = vcmp.eq.f32.partialorder %v4583_v37, inf  ;;  %3479 = vrsqrt.f32 %v4648_v16 }
 0x1ba   : > { %v3466_v11 = vpop.eup %3465  ;;  %v731_v36 = vadd.f32 1e-06, %v579_v54  ;;  %v4685_v45 = vmul.f32 0.007874016, %v459_v7  ;;  %v658_v49 = vmul.f32 %v3464_v27, %v4565_v40  ;;  %vm673_vm7 = vcmp.eq.f32.partialorder %v4601_v25, inf }
 0x1bb   : > { %v823_v56 = vmul.f32 %v3466_v11, %v4295_v61  ;;  %v3468_v35 = vpop.eup %3467  ;;  %3481 = vrcp.f32 %v730_v26  ;;  %v4689_v43 = vmul.f32 0.007874016, %v461_v0  ;;  %v6517_v24 = vand.u32 2147483648, %v4466_v28 }
 0x1bc   : > { %v3470_v60 = vpop.eup %3469  ;;  %3483 = vrcp.f32 %v731_v36  ;;  %v6518_v11 = vand.u32 2147483648, %v4473_v20  ;;  %v4704_v7 = vsel %vm645_vm1, %v4540_v29, %v644_v3  ;;  %v676_v27 = vand.u32 2147483648, %v4601_v25 }
 0x1bd   : > { %v851_v14 = vpack.c.bf16 %v823_v56, %v822_v57  ;;  %v586_v61 = vsel %vm584_vm15, %v6517_v24, %v4589_v22  ;;  %vm680_vm8 = vcmp.eq.f32.partialorder %v4610_v2, inf  ;;  %v683_v0 = vand.u32 2147483648, %v4610_v2  ;;  %v463_v57 = vpop.xlane.xlu1 %462  ;;  %v3472_v28 = vpop.eup %3471 }
 0x1be   : > { %v593_v54 = vsel %vm591_vm0, %v6518_v11, %v4597_v1  ;;  %vm626_vm9 = vcmp.eq.f32.partialorder %v4507_v48, 0.0  ;;  %v4713_v20 = vsel %vm652_vm2, %v4544_v44, %v651_v18  ;;  %v665_v22 = vmul.f32 %v3468_v35, %v4583_v37 }
 0x1bf   : > { %3177 = vmatmul.mubr.bf16.gmra.mrb[4].mxu0 %v851_v14  ;;  %v690_v1 = vand.u32 2147483648, %v4645_v51  ;;  %3485 = vrsqrt.f32 %v4685_v45  ;;  %vm633_vm10 = vcmp.eq.f32.partialorder %v4511_v42, 0.0  ;;  %v4722_v3 = vsel %vm659_vm3, %v4565_v40, %v658_v49  ;;  %v3474_v18 = vpop.eup %3473 }
 0x1c0   : > { %v672_v26 = vmul.f32 %v3470_v60, %v4601_v25  ;;  %v732_v56 = vadd.f32 1e-06, %v586_v61  ;;  %v733_v36 = vadd.f32 1e-06, %v593_v54  ;;  %3487 = vrsqrt.f32 %v4689_v43 }
 0x1c1   : > { %v4726_v35 = vmul.f32 0.007874016, %v463_v57  ;;  %v6519_v14 = vand.u32 2147483648, %v4476_v13  ;;  %v6520_v11 = vand.u32 2147483648, %v4489_v58  ;;  %v3476_v60 = vpop.eup %3475  ;;  %vm640_vm11 = vcmp.eq.f32.partialorder %v4520_v47, 0.0 }
 0x1c2   : > { %v679_v61 = vmul.f32 %v3472_v28, %v4610_v2  ;;  %vm687_vm12 = vcmp.eq.f32.partialorder %v4645_v51, inf  ;;  %3489 = vrcp.f32 %v732_v56  ;;  %vm647_vm13 = vcmp.eq.f32.partialorder %v4540_v29, 0.0  ;;  %v3478_v58 = vpop.eup %3477 }
 0x1c3   : > { %v600_v24 = vsel %vm598_vm4, %v6519_v14, %v4606_v33  ;;  %v607_v49 = vsel %vm605_vm5, %v6520_v11, %v4625_v52  ;;  %v824_v13 = vmul.f32 %v3474_v18, %v4302_v4  ;;  %v825_v33 = vmul.f32 %v3476_v60, %v4305_v5  ;;  %v3480_v4 = vpop.eup %3479 }
 0x1c4   : > { %v734_v54 = vadd.f32 1e-06, %v600_v24  ;;  %v735_v57 = vadd.f32 1e-06, %v607_v49  ;;  %v697_v14 = vand.u32 2147483648, %v4648_v16  ;;  %3491 = vrcp.f32 %v733_v36 }
 0x1c5   : > { %vm654_vm14 = vcmp.eq.f32.partialorder %v4544_v44, 0.0  ;;  %v4749_v52 = vsel %vm666_vm6, %v4583_v37, %v665_v22  ;;  %v704_v28 = vand.u32 2147483648, %v4685_v45  ;;  %3493 = vrsqrt.f32 %v4726_v35  ;;  %v3482_v36 = vpop.eup %3481 }
 0x1c6   : > { %vm610_vm15 = vcmp.eq.f32.partialorder %v4496_v9, inf  ;;  %vm661_vm0 = vcmp.eq.f32.partialorder %v4565_v40, 0.0  ;;  %v4758_v5 = vsel %vm673_vm7, %v4601_v25, %v672_v26  ;;  %v852_v56 = vpack.c.bf16 %v825_v33, %v824_v13  ;;  %v3484_v26 = vpop.eup %3483 }
 0x1c7   : > { %3495 = vrcp.f32 %v734_v54  ;;  %v611_v22 = vsel %vm610_vm15, %v4496_v9, %v4628_v53  ;;  %vm668_vm1 = vcmp.eq.f32.partialorder %v4583_v37, 0.0  ;;  %v4766_v18 = vsel %vm680_vm8, %v4610_v2, %v679_v61 }
 0x1c8   : > { %vm694_vm2 = vcmp.eq.f32.partialorder %v4648_v16, inf  ;;  %3497 = vrcp.f32 %v735_v57  ;;  %v613_v24 = vand.u32 2147483648, %v4496_v9  ;;  %vm617_vm3 = vcmp.eq.f32.partialorder %v4528_v34, inf  ;;  %3180 = vmatprep.mubr.bf16.mxu0 %v852_v56 }
 0x1c9   : > { %vm675_vm4 = vcmp.eq.f32.partialorder %v4601_v25, 0.0  ;;  %v686_v53 = vmul.f32 %v3478_v58, %v4645_v51  ;;  %v826_v11 = vmul.f32 %v3482_v36, %v4312_v38  ;;  %vm701_vm5 = vcmp.eq.f32.partialorder %v4685_v45, inf  ;;  %v3486_v33 = vpop.eup %3485 }
 0x1ca   : > { %vm612_vm6 = vcmp.eq.f32.partialorder %v4496_v9, 0.0  ;;  %v618_v49 = vsel %vm617_vm3, %v4528_v34, %v4641_v39  ;;  %v827_v60 = vmul.f32 %v3484_v26, %v4315_v8  ;;  %v620_v54 = vand.u32 2147483648, %v4528_v34 }
 0x1cb   : > { %v614_v61 = vsel %vm612_vm6, %v613_v24, %v611_v22  ;;  %v6521_v57 = vand.u32 2147483648, %v4507_v48  ;;  %vm689_vm7 = vcmp.eq.f32.partialorder %v4645_v51, 0.0  ;;  %vm619_vm8 = vcmp.eq.f32.partialorder %v4528_v34, 0.0  ;;  %v3488_v22 = vpop.eup %3487 }
 0x1cc   : > { %v736_v38 = vadd.f32 1e-06, %v614_v61  ;;  %v6522_v9 = vand.u32 2147483648, %v4511_v42  ;;  %vm682_vm15 = vcmp.eq.f32.partialorder %v4610_v2, 0.0  ;;  %v693_v58 = vmul.f32 %v3480_v4, %v4648_v16  ;;  %v3490_v4 = vpop.eup %3489 }
 0x1cd   : > { %v628_v13 = vsel %vm626_vm9, %v6521_v57, %v4659_v6  ;;  %v853_v56 = vpack.c.bf16 %v827_v60, %v826_v11  ;;  %v621_v48 = vsel %vm619_vm8, %v620_v54, %v618_v49  ;;  %v688_v34 = vsel %vm687_vm12, %v4645_v51, %v686_v53 }
 0x1ce   : > { %v635_v8 = vsel %vm633_vm10, %v6522_v9, %v4670_v30  ;;  %v738_v39 = vadd.f32 1e-06, %v628_v13  ;;  %vm696_vm9 = vcmp.eq.f32.partialorder %v4648_v16, 0.0  ;;  %vm703_vm3 = vcmp.eq.f32.partialorder %v4685_v45, 0.0  ;;  %v3492_v11 = vpop.eup %3491 }
 0x1cf   : > { %v739_v6 = vadd.f32 1e-06, %v635_v8  ;;  %v737_v36 = vadd.f32 1e-06, %v621_v48  ;;  %3499 = vrcp.f32 %v736_v38  ;;  %v6523_v42 = vand.u32 2147483648, %v4520_v47  ;;  %3181 = vmatmul.mubr.bf16.gmra.mrb[8].mxu0 %v853_v56  ;;  %v3494_v61 = vpop.eup %3493 }
 0x1d0   : > { %v700_v24 = vmul.f32 %v3486_v33, %v4685_v45  ;;  %3501 = vrcp.f32 %v738_v39  ;;  %v649_v26 = vsel %vm647_vm13, %v648_v62, %v4704_v7  ;;  %v828_v49 = vmul.f32 %v3490_v4, %v4322_v46 }
 0x1d1   : > { %v642_v30 = vsel %vm640_vm11, %v6523_v42, %v4675_v31  ;;  %3503 = vrcp.f32 %v737_v36  ;;  %v741_v60 = vadd.f32 1e-06, %v649_v26  ;;  %v6524_v47 = vand.u32 2147483648, %v4544_v44  ;;  %v3496_v46 = vpop.eup %3495 }
 0x1d2   : > { %v740_v53 = vadd.f32 1e-06, %v642_v30  ;;  %v829_v54 = vmul.f32 %v3492_v11, %v4325_v10  ;;  %3505 = vrcp.f32 %v739_v6  ;;  %v6525_v29 = vand.u32 2147483648, %v4565_v40 }
 0x1d3   : > { %v656_v31 = vsel %vm654_vm14, %v6524_v47, %v4713_v20  ;;  %v695_v57 = vsel %vm694_vm2, %v4648_v16, %v693_v58  ;;  %v6526_v44 = vand.u32 2147483648, %v4583_v37  ;;  %v3498_v20 = vpop.eup %3497  ;;  %v702_v40 = vsel %vm701_vm5, %v4685_v45, %v700_v24 }
 0x1d4   : > { %v663_v62 = vsel %vm661_vm0, %v6525_v29, %v4722_v3  ;;  %v742_v7 = vadd.f32 1e-06, %v656_v31  ;;  %3507 = vrcp.f32 %v740_v53  ;;  %v854_v3 = vpack.c.bf16 %v829_v54, %v828_v49 }
 0x1d5   : > { %v743_v13 = vadd.f32 1e-06, %v663_v62  ;;  %v670_v10 = vsel %vm668_vm1, %v6526_v44, %v4749_v52  ;;  %3509 = vrcp.f32 %v741_v60  ;;  %v677_v33 = vsel %vm675_vm4, %v676_v27, %v4758_v5 }
 0x1d6   : > { %v830_v38 = vmul.f32 %v3496_v46, %v4332_v55  ;;  %v831_v9 = vmul.f32 %v3498_v20, %v4335_v12  ;;  %3511 = vrcp.f32 %v742_v7  ;;  %v744_v37 = vadd.f32 1e-06, %v670_v10  ;;  %3184 = vmatprep.mubr.bf16.mxu0 %v854_v3  ;;  %v6529_v10 = vld [vmem:[#allocation11_spill] sm:$0xff]  ;;  %v6530_v20 = vld [vmem:[#allocation13_spill] sm:$0xff] }
 0x1d7   : > { %v714_v52 = vmul.f32 %v3494_v61, %v4726_v35  ;;  %3513 = vrcp.f32 %v743_v13  ;;  %v745_v8 = vadd.f32 1e-06, %v677_v33  ;;  %v691_v39 = vsel %vm689_vm7, %v690_v1, %v688_v34  ;;  %v6528_v13 = vld [vmem:[#allocation14_spill] sm:$0xff] }
 0x1d8   : > { %v707_v58 = vmul.f32 %v3488_v22, %v4689_v43  ;;  %v855_v25 = vpack.c.bf16 %v831_v9, %v830_v38  ;;  %3515 = vrcp.f32 %v744_v37  ;;  %v684_v55 = vsel %vm682_vm15, %v683_v0, %v4766_v18  ;;  %v6531_v38 = vld [vmem:[#allocation16_spill] sm:$0xff]  ;;  %v6532_v37 = vld [vmem:[#allocation15_spill] sm:$0xff] }
 0x1d9   : > { %3517 = vrcp.f32 %v745_v8  ;;  %v747_v12 = vadd.f32 1e-06, %v691_v39  ;;  %v698_v27 = vsel %vm696_vm9, %v697_v14, %v695_v57  ;;  %v705_v51 = vsel %vm703_vm3, %v704_v28, %v702_v40  ;;  %v3500_v1 = vpop.eup %3499  ;;  %v6527_v57 = vld [vmem:[#allocation12_spill] sm:$0xff]  ;;  %v4888_v39 = vld [vmem:[%s6418_s2] ss:$0 sm:$0xff] }
 0x1da   : > { %vm715_vm10 = vcmp.eq.f32.partialorder %v4726_v35, inf  ;;  %3185 = vmatmul.mubr.bf16.gmra.mrb[12].mxu0 %v855_v25  ;;  %v749_v5 = vadd.f32 1e-06, %v705_v51  ;;  %v3502_v56 = vpop.eup %3501  ;;  %vm708_vm11 = vcmp.eq.f32.partialorder %v4689_v43, inf  ;;  %vm710_vm12 = vcmp.eq.f32.partialorder %v4689_v43, 0.0 }
 0x1db   : > { %v716_v2 = vsel %vm715_vm10, %v4726_v35, %v714_v52  ;;  %v746_v0 = vadd.f32 1e-06, %v684_v55  ;;  %v3504_v16 = vpop.eup %3503  ;;  %v709_v14 = vsel %vm708_vm11, %v4689_v43, %v707_v58  ;;  %v711_v18 = vand.u32 2147483648, %v4689_v43 }
 0x1dc   : > { %v718_v45 = vand.u32 2147483648, %v4726_v35  ;;  %v748_v28 = vadd.f32 1e-06, %v698_v27  ;;  %v3506_v48 = vpop.eup %3505  ;;  %vm717_vm13 = vcmp.eq.f32.partialorder %v4726_v35, 0.0  ;;  %v832_v6 = vmul.f32 %v3500_v1, %v4342_v15  ;;  %v3787_v1 = vld [vmem:[%s4123_s9] sm:$0xff] }
 0x1dd   : > { %v833_v22 = vmul.f32 %v3504_v16, %v4345_v63  ;;  %3519 = vrcp.f32 %v747_v12  ;;  %v834_v36 = vmul.f32 %v3502_v56, %v4352_v17  ;;  %v835_v42 = vmul.f32 %v3506_v48, %v4355_v32 }
 0x1de   : > { %v3508_v34 = vpop.eup %3507  ;;  %3521 = vrcp.f32 %v749_v5  ;;  %v719_v30 = vsel %vm717_vm13, %v718_v45, %v716_v2  ;;  %v712_v26 = vsel %vm710_vm12, %v711_v18, %v709_v14  ;;  %v3789_v14 = vld [vmem:[%s4123_s9 + $0x10] sm:$0xff]  ;;  %v3790_v45 = vld [vmem:[%s4123_s9 + $0x18] sm:$0xff] }
 0x1df   : > { %v3510_v4 = vpop.eup %3509  ;;  %v856_v24 = vpack.c.bf16 %v833_v22, %v832_v6  ;;  %3523 = vrcp.f32 %v746_v0  ;;  %v857_v35 = vpack.c.bf16 %v835_v42, %v834_v36  ;;  %v836_v15 = vmul.f32 %v3508_v34, %v4362_v19  ;;  %v3788_v0 = vld [vmem:[%s4123_s9 + $0x8] sm:$0xff] }
 0x1e0   : > { %v3512_v53 = vpop.eup %3511  ;;  %v837_v63 = vmul.f32 %v3510_v4, %v4365_v41  ;;  %3525 = vrcp.f32 %v748_v28  ;;  %v751_v17 = vadd.f32 1e-06, %v719_v30  ;;  %v750_v31 = vadd.f32 1e-06, %v712_v26  ;;  %v3791_v30 = vld [vmem:[%s4123_s9 + $0x20] sm:$0xff] }
 0x1e1   : > { %v3514_v11 = vpop.eup %3513  ;;  %3188 = vmatprep.mubr.bf16.mxu1 %v856_v24  ;;  %v838_v43 = vmul.f32 %v3512_v53, %v4372_v21  ;;  %v3792_v53 = vld [vmem:[%s4123_s9 + $0x28] sm:$0xff] }
 0x1e2   : > { %v3516_v49 = vpop.eup %3515  ;;  %3189 = vmatmul.mubr.bf16.vlgmr.msra.gmra.mrb[0].mxu1 %v857_v35  ;;  %v858_v32 = vpack.c.bf16 %v837_v63, %v836_v15  ;;  %v839_v60 = vmul.f32 %v3514_v11, %v4375_v50  ;;  %3527 = vrcp.f32 %v751_v17  ;;  %v3793_v15 = vld [vmem:[%s4123_s9 + $0x30] sm:$0xff]  ;;  %v3794_v11 = vld [vmem:[%s4123_s9 + $0x38] sm:$0xff] }
 0x1e3   : > { %v3518_v47 = vpop.eup %3517  ;;  %v840_v19 = vmul.f32 %v3516_v49, %v4382_v23  ;;  %3529 = vrcp.f32 %v750_v31 }
 0x1e4   : > { %3192 = vmatprep.mubr.bf16.mxu1 %v858_v32  ;;  %v841_v61 = vmul.f32 %v3518_v47, %v4385_v59  ;;  %v859_v41 = vpack.c.bf16 %v839_v60, %v838_v43 }
 0x1e6   : > { %v860_v29 = vpack.c.bf16 %v841_v61, %v840_v19  ;;  %v3795_v61 = vld [vmem:[%s4123_s9 + $0x40] sm:$0xff] }
 0x1e7   : > { %v3520_v54 = vpop.eup %3519 }
 0x1e8   : > { %v3522_v62 = vpop.eup %3521  ;;  %v843_v50 = vmul.f32 %v3520_v54, %v6527_v57 }
 0x1e9   : > { %v3524_v7 = vpop.eup %3523  ;;  %v845_v44 = vmul.f32 %v3522_v62, %v6528_v13 }
 0x1ea   : > { %v3526_v46 = vpop.eup %3525  ;;  %3193 = vmatmul.mubr.bf16.gmra.mrb[4].mxu1 %v859_v41  ;;  %v842_v21 = vmul.f32 %v3524_v7, %v6529_v10  ;;  %v3797_v7 = vld [vmem:[%s4123_s9 + $0x50] sm:$0xff] }
 0x1eb   : > { %3196 = vmatprep.mubr.bf16.mxu1 %v860_v29  ;;  %v844_v59 = vmul.f32 %v3526_v46, %v6530_v20  ;;  %v3796_v29 = vld [vmem:[%s4123_s9 + $0x48] sm:$0xff] }
 0x1ec   : > { %v861_v40 = vpack.c.bf16 %v843_v50, %v842_v21  ;;  %v3528_v23 = vpop.eup %3527  ;;  %v3798_v50 = vld [vmem:[%s4123_s9 + $0x58] sm:$0xff] }
 0x1ed   : > { %v862_v3 = vpack.c.bf16 %v845_v44, %v844_v59  ;;  %v3530_v33 = vpop.eup %3529  ;;  %v847_v9 = vmul.f32 %v3528_v23, %v6531_v38  ;;  %v3800_v38 = vld [vmem:[%s4123_s9 + $0x68] sm:$0xff] }
 0x1ee   : > { %v846_v52 = vmul.f32 %v3530_v33, %v6532_v37  ;;  %v3801_v37 = vld [vmem:[%s4123_s9 + $0x70] sm:$0xff] }
 0x1f0   : > { %v863_v8 = vpack.c.bf16 %v847_v9, %v846_v52 }
 0x1f2   : > { %3197 = vmatmul.mubr.bf16.gmra.mrb[8].mxu1 %v861_v40  ;;  %v3799_v40 = vld [vmem:[%s4123_s9 + $0x60] sm:$0xff] }
 0x1f3   : > { %3200 = vmatprep.mubr.bf16.mxu1 %v862_v3 }
 0x1fa   : > { %3201 = vmatmul.mubr.bf16.gmra.mrb[12].mxu1 %v863_v8 }
 0x285   : > { %v3174_v58 = vpop.f32.mrb[0].mxu0 }
 0x286   : > { %v969_v25 = vpop.f32.mrb[1].mxu0  ;;  %v978_v51 = vadd.f32 %v3174_v58, %v4888_v39 }
 0x287   : > { %v970_v55 = vadd.f32 %v4888_v39, %v969_v25  ;;  %v3175_v12 = vpop.f32.mrb[2].mxu0  ;;  %v3802_v25 = vld [vmem:[%s4123_s9 + $0x78] sm:$0xff] }
 0x288   : > { %v972_v27 = vpop.f32.mrb[3].mxu0  ;;  %v981_v2 = vadd.f32 %v3175_v12, %v4888_v39  ;;  %v4902_v18 = vadd.f32 %v3789_v14, %v978_v51 }
 0x289   : > { %v4893_v5 = vadd.f32 %v3787_v1, %v970_v55  ;;  %v973_v56 = vadd.f32 %v4888_v39, %v972_v27 }
 0x28a   : > { %6535 = vst [vmem:[#allocation11_spill] sm:$0xff] %v4902_v18  ;;  %v4906_v28 = vadd.f32 %v3790_v45, %v981_v2  ;;  %v3804_v45 = vld [vmem:[%s4123_s9 + $0x88] sm:$0xff] }
 0x28b   : > { %6533 = vst [vmem:[#allocation12_spill] sm:$0xff] %v4893_v5  ;;  %v4898_v16 = vadd.f32 %v3788_v0, %v973_v56  ;;  %1128 = vadd.xlane.f32.xlu0 %v4893_v5  ;;  %v3803_v56 = vld [vmem:[%s4123_s9 + $0x80] sm:$0xff] }
 0x28c   : > { %6536 = vst [vmem:[#allocation13_spill] sm:$0xff] %v4906_v28 }
 0x28d   : > { %6534 = vst [vmem:[#allocation14_spill] sm:$0xff] %v4898_v16  ;;  %1130 = vadd.xlane.f32.xlu1 %v4898_v16 }
 0x28f   : > { %1132 = vadd.xlane.f32.xlu0 %v4902_v18 }
 0x291   : > { %1134 = vadd.xlane.f32.xlu1 %v4906_v28 }
 0x292   : > { %v3178_v48 = vpop.f32.mrb[4].mxu0 }
 0x293   : > { %v985_v6 = vpop.f32.mrb[5].mxu0  ;;  %v994_v42 = vadd.f32 %v3178_v48, %v4888_v39 }
 0x294   : > { %v986_v22 = vadd.f32 %v4888_v39, %v985_v6  ;;  %v3179_v34 = vpop.f32.mrb[6].mxu0  ;;  %v3805_v6 = vld [vmem:[%s4123_s9 + $0x90] sm:$0xff] }
 0x295   : > { %v988_v36 = vpop.f32.mrb[7].mxu0  ;;  %v997_v26 = vadd.f32 %v3179_v34, %v4888_v39  ;;  %v4922_v63 = vadd.f32 %v3793_v15, %v994_v42  ;;  %v3806_v42 = vld [vmem:[%s4123_s9 + $0x98] sm:$0xff] }
 0x296   : > { %v4913_v4 = vadd.f32 %v3791_v30, %v986_v22  ;;  %v989_v24 = vadd.f32 %v4888_v39, %v988_v36 }
 0x297   : > { %6539 = vst [vmem:[#allocation17_spill] sm:$0xff] %v4922_v63  ;;  %v4926_v17 = vadd.f32 %v3794_v11, %v997_v26  ;;  %v3807_v11 = vld [vmem:[%s4123_s9 + $0xa0] sm:$0xff] }
 0x298   : > { %6537 = vst [vmem:[#allocation16_spill] sm:$0xff] %v4913_v4  ;;  %v4918_v35 = vadd.f32 %v3792_v53, %v989_v24  ;;  %1136 = vadd.xlane.f32.xlu0 %v4913_v4 }
 0x299   : > { %6540 = vst [vmem:[#allocation18_spill] sm:$0xff] %v4926_v17 }
 0x29a   : > { %6538 = vst [vmem:[#allocation15_spill] sm:$0xff] %v4918_v35  ;;  %1138 = vadd.xlane.f32.xlu1 %v4918_v35 }
 0x29c   : > { %1140 = vadd.xlane.f32.xlu0 %v4922_v63 }
 0x29e   : > { %1142 = vadd.xlane.f32.xlu1 %v4926_v17 }
 0x2a2   : > { %v3182_v49 = vpop.f32.mrb[8].mxu0 }
 0x2a3   : > { %v1001_v32 = vpop.f32.mrb[9].mxu0  ;;  %v1010_v43 = vadd.f32 %v3182_v49, %v4888_v39 }
 0x2a4   : > { %v1002_v60 = vadd.f32 %v4888_v39, %v1001_v32  ;;  %v3183_v47 = vpop.f32.mrb[10].mxu0 }
 0x2a5   : > { %v1004_v31 = vpop.f32.mrb[11].mxu0  ;;  %v1013_v54 = vadd.f32 %v3183_v47, %v4888_v39  ;;  %v4942_v46 = vadd.f32 %v3797_v7, %v1010_v43  ;;  %v3808_v47 = vld [vmem:[%s4123_s9 + $0xa8] sm:$0xff]  ;;  %v3809_v43 = vld [vmem:[%s4123_s9 + $0xb0] sm:$0xff] }
 0x2a6   : > { %v4933_v19 = vadd.f32 %v3795_v61, %v1002_v60  ;;  %v1005_v41 = vadd.f32 %v4888_v39, %v1004_v31 }
 0x2a7   : > { %6543 = vst [vmem:[#allocation21_spill] sm:$0xff] %v4942_v46  ;;  %v4946_v13 = vadd.f32 %v3798_v50, %v1013_v54 }
 0x2a8   : > { %6541 = vst [vmem:[#allocation19_spill] sm:$0xff] %v4933_v19  ;;  %v4938_v62 = vadd.f32 %v3796_v29, %v1005_v41  ;;  %1144 = vadd.xlane.f32.xlu0 %v4933_v19  ;;  %v3810_v29 = vld [vmem:[%s4123_s9 + $0xb8] sm:$0xff] }
 0x2a9   : > { %6544 = vst [vmem:[#allocation22_spill] sm:$0xff] %v4946_v13 }
 0x2aa   : > { %6542 = vst [vmem:[#allocation20_spill] sm:$0xff] %v4938_v62  ;;  %1146 = vadd.xlane.f32.xlu1 %v4938_v62 }
 0x2ac   : > { %1148 = vadd.xlane.f32.xlu0 %v4942_v46 }
 0x2ad   : > { %v3186_v57 = vpop.f32.mrb[12].mxu0 }
 0x2ae   : > { %v1017_v44 = vpop.f32.mrb[13].mxu0  ;;  %1150 = vadd.xlane.f32.xlu1 %v4946_v13  ;;  %v1026_v59 = vadd.f32 %v3186_v57, %v4888_v39 }
 0x2af   : > { %v1018_v10 = vadd.f32 %v4888_v39, %v1017_v44  ;;  %v3187_v21 = vpop.f32.mrb[14].mxu0 }
 0x2b0   : > { %v1020_v20 = vpop.f32.mrb[15].mxu0  ;;  %v1029_v33 = vadd.f32 %v3187_v21, %v4888_v39  ;;  %v4962_v52 = vadd.f32 %v3801_v37, %v1026_v59  ;;  %v3811_v21 = vld [vmem:[%s4123_s9 + $0xc0] sm:$0xff] }
 0x2b1   : > { %v4953_v23 = vadd.f32 %v3799_v40, %v1018_v10  ;;  %v1021_v3 = vadd.f32 %v4888_v39, %v1020_v20 }
 0x2b2   : > { %6547 = vst [vmem:[#allocation25_spill] sm:$0xff] %v4962_v52  ;;  %v4966_v55 = vadd.f32 %v3802_v25, %v1029_v33  ;;  %v3814_v25 = vld [vmem:[%s4123_s9 + $0xd8] sm:$0xff] }
 0x2b3   : > { %6545 = vst [vmem:[#allocation23_spill] sm:$0xff] %v4953_v23  ;;  %v4958_v9 = vadd.f32 %v3800_v38, %v1021_v3  ;;  %1152 = vadd.xlane.f32.xlu0 %v4953_v23  ;;  %v3812_v3 = vld [vmem:[%s4123_s9 + $0xc8] sm:$0xff]  ;;  %v3813_v38 = vld [vmem:[%s4123_s9 + $0xd0] sm:$0xff] }
 0x2b4   : > { %6548 = vst [vmem:[#allocation26_spill] sm:$0xff] %v4966_v55 }
 0x2b5   : > { %6546 = vst [vmem:[#allocation24_spill] sm:$0xff] %v4958_v9  ;;  %1154 = vadd.xlane.f32.xlu1 %v4958_v9  ;;  %v3190_v8 = vpop.f32.mrb[0].mxu1 }
 0x2b6   : > { %v1033_v58 = vpop.f32.mrb[1].mxu1  ;;  %v1042_v1 = vadd.f32 %v3190_v8, %v4888_v39 }
 0x2b7   : > { %v1034_v12 = vadd.f32 %v4888_v39, %v1033_v58  ;;  %1156 = vadd.xlane.f32.xlu0 %v4962_v52  ;;  %v3191_v27 = vpop.f32.mrb[2].mxu1 }
 0x2b8   : > { %v1036_v51 = vpop.f32.mrb[3].mxu1  ;;  %v1045_v14 = vadd.f32 %v3191_v27, %v4888_v39  ;;  %v4982_v22 = vadd.f32 %v3805_v6, %v1042_v1 }
 0x2b9   : > { %v4972_v2 = vadd.f32 %v3803_v56, %v1034_v12  ;;  %v1037_v0 = vadd.f32 %v4888_v39, %v1036_v51  ;;  %1158 = vadd.xlane.f32.xlu1 %v4966_v55 }
 0x2ba   : > { %6551 = vst [vmem:[#allocation29_spill] sm:$0xff] %v4982_v22  ;;  %v4986_v30 = vadd.f32 %v3806_v42, %v1045_v14  ;;  %v3817_v42 = vld [vmem:[%s4123_s9 + $0xf0] sm:$0xff] }
 0x2bb   : > { %6549 = vst [vmem:[#allocation27_spill] sm:$0xff] %v4972_v2  ;;  %v4978_v48 = vadd.f32 %v3804_v45, %v1037_v0  ;;  %1160 = vadd.xlane.f32.xlu0 %v4972_v2  ;;  %v3815_v0 = vld [vmem:[%s4123_s9 + $0xe0] sm:$0xff] }
 0x2bc   : > { %6552 = vst [vmem:[#allocation30_spill] sm:$0xff] %v4986_v30 }
 0x2bd   : > { %6550 = vst [vmem:[#allocation28_spill] sm:$0xff] %v4978_v48  ;;  %1162 = vadd.xlane.f32.xlu1 %v4978_v48  ;;  %v3194_v34 = vpop.f32.mrb[4].mxu1 }
 0x2be   : > { %v1049_v36 = vpop.f32.mrb[5].mxu1  ;;  %v1058_v15 = vadd.f32 %v3194_v34, %v4888_v39  ;;  %v3816_v34 = vld [vmem:[%s4123_s9 + $0xe8] sm:$0xff] }
 0x2bf   : > { %v1050_v24 = vadd.f32 %v4888_v39, %v1049_v36  ;;  %1164 = vadd.xlane.f32.xlu0 %v4982_v22  ;;  %v3195_v26 = vpop.f32.mrb[6].mxu1 }
 0x2c0   : > { %v1052_v53 = vpop.f32.mrb[7].mxu1  ;;  %v1061_v60 = vadd.f32 %v3195_v26, %v4888_v39  ;;  %v5002_v61 = vadd.f32 %v3809_v43, %v1058_v15  ;;  %v3818_v26 = vld [vmem:[%s4123_s9 + $0xf8] sm:$0xff] }
 0x2c1   : > { %v4992_v49 = vadd.f32 %v3807_v11, %v1050_v24  ;;  %v1053_v32 = vadd.f32 %v4888_v39, %v1052_v53  ;;  %1166 = vadd.xlane.f32.xlu1 %v4986_v30 }
 0x2c2   : > { %6555 = vst [vmem:[#allocation33_spill] sm:$0xff] %v5002_v61  ;;  %v5006_v7 = vadd.f32 %v3810_v29, %v1061_v60 }
 0x2c3   : > { %6553 = vst [vmem:[#allocation31_spill] sm:$0xff] %v4992_v49  ;;  %v4998_v31 = vadd.f32 %v3808_v47, %v1053_v32  ;;  %1168 = vadd.xlane.f32.xlu0 %v4992_v49 }
 0x2c4   : > { %6556 = vst [vmem:[#allocation34_spill] sm:$0xff] %v5006_v7 }
 0x2c5   : > { %6554 = vst [vmem:[#allocation32_spill] sm:$0xff] %v4998_v31  ;;  %1170 = vadd.xlane.f32.xlu1 %v4998_v31  ;;  %v3198_v41 = vpop.f32.mrb[8].mxu1 }
 0x2c6   : > { %v1065_v54 = vpop.f32.mrb[9].mxu1  ;;  %v1074_v10 = vadd.f32 %v3198_v41, %v4888_v39 }
 0x2c7   : > { %v1066_v57 = vadd.f32 %v4888_v39, %v1065_v54  ;;  %1172 = vadd.xlane.f32.xlu0 %v5002_v61  ;;  %v3199_v50 = vpop.f32.mrb[10].mxu1 }
 0x2c8   : > { %v1068_v44 = vpop.f32.mrb[11].mxu1  ;;  %v1077_v40 = vadd.f32 %v3199_v50, %v4888_v39  ;;  %v5022_v37 = vadd.f32 %v3813_v38, %v1074_v10 }
 0x2c9   : > { %v5012_v20 = vadd.f32 %v3811_v21, %v1066_v57  ;;  %v1069_v59 = vadd.f32 %v4888_v39, %v1068_v44  ;;  %1174 = vadd.xlane.f32.xlu1 %v5006_v7 }
 0x2ca   : > { %6559 = vst [vmem:[#allocation37_spill] sm:$0xff] %v5022_v37  ;;  %v5026_v12 = vadd.f32 %v3814_v25, %v1077_v40 }
 0x2cb   : > { %6557 = vst [vmem:[#allocation35_spill] sm:$0xff] %v5012_v20  ;;  %v5018_v33 = vadd.f32 %v3812_v3, %v1069_v59  ;;  %1176 = vadd.xlane.f32.xlu0 %v5012_v20 }
 0x2cc   : > { %6560 = vst [vmem:[#allocation38_spill] sm:$0xff] %v5026_v12 }
 0x2cd   : > { %6558 = vst [vmem:[#allocation36_spill] sm:$0xff] %v5018_v33  ;;  %1178 = vadd.xlane.f32.xlu1 %v5018_v33  ;;  %v3202_v8 = vpop.f32.mrb[12].mxu1 }
 0x2ce   : > { %v1081_v58 = vpop.f32.mrb[13].mxu1  ;;  %v1090_v56 = vadd.f32 %v3202_v8, %v4888_v39 }
 0x2cf   : > { %v1082_v27 = vadd.f32 %v4888_v39, %v1081_v58  ;;  %1180 = vadd.xlane.f32.xlu0 %v5022_v37  ;;  %v3203_v51 = vpop.f32.mrb[14].mxu1 }
 0x2d0   : > { %v1084_v1 = vpop.f32.mrb[15].mxu1  ;;  %v1093_v6 = vadd.f32 %v3203_v51, %v4888_v39  ;;  %v5042_v24 = vadd.f32 %v3817_v42, %v1090_v56 }
 0x2d1   : > { %v5032_v14 = vadd.f32 %v3815_v0, %v1082_v27  ;;  %v1085_v45 = vadd.f32 %v4888_v39, %v1084_v1  ;;  %1182 = vadd.xlane.f32.xlu1 %v5026_v12 }
 0x2d2   : > { %6563 = vst [vmem:[#allocation41_spill] sm:$0xff] %v5042_v24  ;;  %v5046_v53 = vadd.f32 %v3818_v26, %v1093_v6 }
 0x2d3   : > { %6561 = vst [vmem:[#allocation39_spill] sm:$0xff] %v5032_v14  ;;  %v5038_v36 = vadd.f32 %v3816_v34, %v1085_v45  ;;  %1184 = vadd.xlane.f32.xlu0 %v5032_v14 }
 0x2d4   : > { %6564 = vst [vmem:[#allocation42_spill] sm:$0xff] %v5046_v53 }
 0x2d5   : > { %6562 = vst [vmem:[#allocation40_spill] sm:$0xff] %v5038_v36  ;;  %1186 = vadd.xlane.f32.xlu1 %v5038_v36 }
 0x2d7   : > { %1188 = vadd.xlane.f32.xlu0 %v5042_v24 }
 0x2d9   : > { %1190 = vadd.xlane.f32.xlu1 %v5046_v53 }
 0x318   : > { %v1129_v15 = vpop.xlane.xlu0 %1128 }
 0x319   : > { %v1192_v11 = vmul.f32 0.0078125, %v1129_v15 }
 0x31a   : > { %v1131_v39 = vpop.xlane.xlu1 %1130 }
 0x31b   : > { %v1193_v32 = vmul.f32 0.0078125, %v1131_v39  ;;  %v5051_v60 = vsub.f32 %v4893_v5, %v1192_v11 }
 0x31c   : > { %v1133_v47 = vpop.xlane.xlu0 %1132 }
 0x31d   : > { %v1194_v43 = vmul.f32 0.0078125, %v1133_v47  ;;  %v1256_v41 = vmul.f32 %v5051_v60, %v5051_v60  ;;  %v5056_v54 = vsub.f32 %v4898_v16, %v1193_v32 }
 0x31e   : > { %v1135_v29 = vpop.xlane.xlu1 %1134 }
 0x31f   : > { %v5059_v57 = vsub.f32 %v4902_v18, %v1194_v43  ;;  %v1195_v50 = vmul.f32 0.0078125, %v1135_v29  ;;  %1288 = vadd.xlane.f32.xlu0 %v1256_v41  ;;  %v1257_v44 = vmul.f32 %v5056_v54, %v5056_v54 }
 0x321   : > { %v5064_v10 = vsub.f32 %v4906_v28, %v1195_v50  ;;  %1290 = vadd.xlane.f32.xlu1 %v1257_v44  ;;  %v1258_v21 = vmul.f32 %v5059_v57, %v5059_v57 }
 0x323   : > { %1292 = vadd.xlane.f32.xlu0 %v1258_v21  ;;  %v1259_v59 = vmul.f32 %v5064_v10, %v5064_v10 }
 0x325   : > { %1294 = vadd.xlane.f32.xlu1 %v1259_v59  ;;  %v1137_v40 = vpop.xlane.xlu0 %1136 }
 0x326   : > { %v1196_v3 = vmul.f32 0.0078125, %v1137_v40 }
 0x327   : > { %v1139_v38 = vpop.xlane.xlu1 %1138 }
 0x328   : > { %v5071_v8 = vsub.f32 %v4913_v4, %v1196_v3  ;;  %v1197_v58 = vmul.f32 0.0078125, %v1139_v38 }
 0x329   : > { %v1141_v25 = vpop.xlane.xlu0 %1140 }
 0x32a   : > { %v5074_v27 = vsub.f32 %v4918_v35, %v1197_v58  ;;  %v1198_v51 = vmul.f32 0.0078125, %v1141_v25  ;;  %v1260_v1 = vmul.f32 %v5071_v8, %v5071_v8 }
 0x32b   : > { %v1143_v56 = vpop.xlane.xlu1 %1142 }
 0x32c   : > { %v5079_v0 = vsub.f32 %v4922_v63, %v1198_v51  ;;  %v1199_v45 = vmul.f32 0.0078125, %v1143_v56  ;;  %1296 = vadd.xlane.f32.xlu0 %v1260_v1  ;;  %v1261_v6 = vmul.f32 %v5074_v27, %v5074_v27 }
 0x32e   : > { %v5084_v34 = vsub.f32 %v4926_v17, %v1199_v45  ;;  %1298 = vadd.xlane.f32.xlu1 %v1261_v6  ;;  %v1262_v42 = vmul.f32 %v5079_v0, %v5079_v0 }
 0x330   : > { %1300 = vadd.xlane.f32.xlu0 %v1262_v42  ;;  %v1263_v26 = vmul.f32 %v5084_v34, %v5084_v34 }
 0x332   : > { %1302 = vadd.xlane.f32.xlu1 %v1263_v26 }
 0x335   : > { %v1145_v15 = vpop.xlane.xlu0 %1144 }
 0x336   : > { %v1200_v11 = vmul.f32 0.0078125, %v1145_v15 }
 0x337   : > { %v1147_v39 = vpop.xlane.xlu1 %1146 }
 0x338   : > { %v5091_v32 = vsub.f32 %v4933_v19, %v1200_v11  ;;  %v1201_v47 = vmul.f32 0.0078125, %v1147_v39 }
 0x339   : > { %v1149_v43 = vpop.xlane.xlu0 %1148 }
 0x33a   : > { %v5094_v41 = vsub.f32 %v4938_v62, %v1201_v47  ;;  %v1202_v29 = vmul.f32 0.0078125, %v1149_v43  ;;  %v1264_v50 = vmul.f32 %v5091_v32, %v5091_v32 }
 0x33b   : > { %v1151_v44 = vpop.xlane.xlu1 %1150 }
 0x33c   : > { %v5099_v21 = vsub.f32 %v4942_v46, %v1202_v29  ;;  %v1203_v59 = vmul.f32 0.0078125, %v1151_v44  ;;  %1304 = vadd.xlane.f32.xlu0 %v1264_v50  ;;  %v1265_v40 = vmul.f32 %v5094_v41, %v5094_v41 }
 0x33e   : > { %v5104_v3 = vsub.f32 %v4946_v13, %v1203_v59  ;;  %1306 = vadd.xlane.f32.xlu1 %v1265_v40  ;;  %v1266_v58 = vmul.f32 %v5099_v21, %v5099_v21 }
 0x340   : > { %v1153_v38 = vpop.xlane.xlu0 %1152  ;;  %1308 = vadd.xlane.f32.xlu0 %v1266_v58  ;;  %v1267_v1 = vmul.f32 %v5104_v3, %v5104_v3 }
 0x341   : > { %v1204_v25 = vmul.f32 0.0078125, %v1153_v38 }
 0x342   : > { %v1155_v51 = vpop.xlane.xlu1 %1154  ;;  %1310 = vadd.xlane.f32.xlu1 %v1267_v1 }
 0x343   : > { %v5111_v56 = vsub.f32 %v4953_v23, %v1204_v25  ;;  %v1205_v45 = vmul.f32 0.0078125, %v1155_v51  ;;  %v3387_v51 = vld [vmem:[#allocation5 + $0x40] sm:$0xff]  }
 0x344   : > { %v1157_v6 = vpop.xlane.xlu0 %1156  ;;  %3204 = vmatprep.subr.bf16.mxu1 %v3387_v51 }
 0x345   : > { %v5114_v42 = vsub.f32 %v4958_v9, %v1205_v45  ;;  %v1206_v26 = vmul.f32 0.0078125, %v1157_v6  ;;  %v1268_v15 = vmul.f32 %v5111_v56, %v5111_v56  ;;  %3205 = vmatpush3.bf16.msra.mxu1 %v3387_v51 }
 0x346   : > { %v1159_v11 = vpop.xlane.xlu1 %1158 }
 0x347   : > { %v5119_v39 = vsub.f32 %v4962_v52, %v1206_v26  ;;  %v1207_v47 = vmul.f32 0.0078125, %v1159_v11  ;;  %1312 = vadd.xlane.f32.xlu0 %v1268_v15  ;;  %v1269_v43 = vmul.f32 %v5114_v42, %v5114_v42 }
 0x348   : > { %v1161_v29 = vpop.xlane.xlu0 %1160 }
 0x349   : > { %v5124_v50 = vsub.f32 %v4966_v55, %v1207_v47  ;;  %v1208_v44 = vmul.f32 0.0078125, %v1161_v29  ;;  %1314 = vadd.xlane.f32.xlu1 %v1269_v43  ;;  %v1270_v59 = vmul.f32 %v5119_v39, %v5119_v39 }
 0x34a   : > { %v1163_v40 = vpop.xlane.xlu1 %1162 }
 0x34b   : > { %v5129_v38 = vsub.f32 %v4972_v2, %v1208_v44  ;;  %v1209_v58 = vmul.f32 0.0078125, %v1163_v40  ;;  %1316 = vadd.xlane.f32.xlu0 %v1270_v59  ;;  %v1271_v25 = vmul.f32 %v5124_v50, %v5124_v50 }
 0x34c   : > { %v1165_v1 = vpop.xlane.xlu0 %1164 }
 0x34d   : > { %v5134_v45 = vsub.f32 %v4978_v48, %v1209_v58  ;;  %v1210_v6 = vmul.f32 0.0078125, %v1165_v1  ;;  %1318 = vadd.xlane.f32.xlu1 %v1271_v25  ;;  %v1272_v26 = vmul.f32 %v5129_v38, %v5129_v38  ;;  %v3388_v58 = vld [vmem:[#allocation5 + $0x48] sm:$0xff]  }
 0x34e   : > { %v1167_v15 = vpop.xlane.xlu1 %1166  ;;  %3206 = vmatprep.subr.bf16.mxu1 %v3388_v58 }
 0x34f   : > { %v5139_v11 = vsub.f32 %v4982_v22, %v1210_v6  ;;  %v1211_v47 = vmul.f32 0.0078125, %v1167_v15  ;;  %1320 = vadd.xlane.f32.xlu0 %v1272_v26  ;;  %v1273_v43 = vmul.f32 %v5134_v45, %v5134_v45  ;;  %3207 = vmatpush3.bf16.msra.mxu1 %v3388_v58 }
 0x350   : > { %v1169_v29 = vpop.xlane.xlu0 %1168 }
 0x351   : > { %v5144_v44 = vsub.f32 %v4986_v30, %v1211_v47  ;;  %v1212_v59 = vmul.f32 0.0078125, %v1169_v29  ;;  %1322 = vadd.xlane.f32.xlu1 %v1273_v43  ;;  %v1274_v40 = vmul.f32 %v5139_v11, %v5139_v11  ;;  %v3389_v30 = vld [vmem:[#allocation5 + $0x50] sm:$0xff]  }
 0x352   : > { %v1171_v25 = vpop.xlane.xlu1 %1170  ;;  %3208 = vmatprep.subr.bf16.mxu1 %v3389_v30 }
 0x353   : > { %v5149_v51 = vsub.f32 %v4992_v49, %v1212_v59  ;;  %v1213_v1 = vmul.f32 0.0078125, %v1171_v25  ;;  %1324 = vadd.xlane.f32.xlu0 %v1274_v40  ;;  %v1275_v6 = vmul.f32 %v5144_v44, %v5144_v44  ;;  %3209 = vmatpush3.bf16.msra.mxu1 %v3389_v30  ;;  %v3390_v30 = vld [vmem:[#allocation5 + $0x58] sm:$0xff]  }
 0x354   : > { %v1173_v26 = vpop.xlane.xlu0 %1172  ;;  %3210 = vmatprep.subr.bf16.mxu1 %v3390_v30 }
 0x355   : > { %v5154_v15 = vsub.f32 %v4998_v31, %v1213_v1  ;;  %v1214_v47 = vmul.f32 0.0078125, %v1173_v26  ;;  %1326 = vadd.xlane.f32.xlu1 %v1275_v6  ;;  %v1276_v43 = vmul.f32 %v5149_v51, %v5149_v51 }
 0x356   : > { %v1175_v29 = vpop.xlane.xlu1 %1174 }
 0x357   : > { %v5159_v59 = vsub.f32 %v5002_v61, %v1214_v47  ;;  %v1215_v40 = vmul.f32 0.0078125, %v1175_v29  ;;  %1328 = vadd.xlane.f32.xlu0 %v1276_v43  ;;  %v1277_v25 = vmul.f32 %v5154_v15, %v5154_v15  ;;  %3211 = vmatpush3.bf16.msra.mxu1 %v3390_v30 }
 0x358   : > { %v1177_v49 = vpop.xlane.xlu0 %1176 }
 0x359   : > { %v5164_v58 = vsub.f32 %v5006_v7, %v1215_v40  ;;  %v1216_v1 = vmul.f32 0.0078125, %v1177_v49  ;;  %1330 = vadd.xlane.f32.xlu1 %v1277_v25  ;;  %v1278_v6 = vmul.f32 %v5159_v59, %v5159_v59 }
 0x35a   : > { %v1179_v26 = vpop.xlane.xlu1 %1178 }
 0x35b   : > { %v5169_v47 = vsub.f32 %v5012_v20, %v1216_v1  ;;  %v1217_v29 = vmul.f32 0.0078125, %v1179_v26  ;;  %1332 = vadd.xlane.f32.xlu0 %v1278_v6  ;;  %v1279_v43 = vmul.f32 %v5164_v58, %v5164_v58  ;;  %v3391_v20 = vld [vmem:[#allocation5 + $0x60] sm:$0xff]  }
 0x35c   : > { %v1181_v61 = vpop.xlane.xlu0 %1180  ;;  %3212 = vmatprep.subr.bf16.mxu1 %v3391_v20 }
 0x35d   : > { %v5174_v31 = vsub.f32 %v5018_v33, %v1217_v29  ;;  %v1218_v40 = vmul.f32 0.0078125, %v1181_v61  ;;  %1334 = vadd.xlane.f32.xlu1 %v1279_v43  ;;  %v1280_v49 = vmul.f32 %v5169_v47, %v5169_v47  ;;  %3213 = vmatpush3.bf16.msra.mxu1 %v3391_v20  ;;  %v3393_v20 = vld [vmem:[#allocation5 + $0x70] sm:$0xff]  }
 0x35e   : > { %v1183_v25 = vpop.xlane.xlu1 %1182 }
 0x35f   : > { %v5179_v7 = vsub.f32 %v5022_v37, %v1218_v40  ;;  %v1219_v1 = vmul.f32 0.0078125, %v1183_v25  ;;  %1336 = vadd.xlane.f32.xlu0 %v1280_v49  ;;  %v1281_v6 = vmul.f32 %v5174_v31, %v5174_v31 }
 0x360   : > { %v1185_v26 = vpop.xlane.xlu0 %1184 }
 0x361   : > { %6565 = vst [vmem:[#allocation43_spill] sm:$0xff] %v5179_v7  ;;  %v5184_v29 = vsub.f32 %v5026_v12, %v1219_v1  ;;  %v1220_v61 = vmul.f32 0.0078125, %v1185_v26  ;;  %1338 = vadd.xlane.f32.xlu1 %v1281_v6  ;;  %v1282_v43 = vmul.f32 %v5179_v7, %v5179_v7  ;;  %v3392_v12 = vld [vmem:[#allocation5 + $0x68] sm:$0xff]  }
 0x362   : > { %v1187_v33 = vpop.xlane.xlu1 %1186  ;;  %3214 = vmatprep.subr.bf16.mxu1 %v3392_v12 }
 0x363   : > { %v5189_v40 = vsub.f32 %v5032_v14, %v1220_v61  ;;  %v1221_v49 = vmul.f32 0.0078125, %v1187_v33  ;;  %1340 = vadd.xlane.f32.xlu0 %v1282_v43  ;;  %v1283_v25 = vmul.f32 %v5184_v29, %v5184_v29  ;;  %3215 = vmatpush3.bf16.msra.mxu1 %v3392_v12 }
 0x364   : > { %v1189_v37 = vpop.xlane.xlu0 %1188  ;;  %3216 = vmatprep.subr.bf16.mxu1 %v3393_v20 }
 0x365   : > { %6566 = vst [vmem:[#allocation44_spill] sm:$0xff] %v5189_v40  ;;  %v5194_v1 = vsub.f32 %v5038_v36, %v1221_v49  ;;  %v1222_v6 = vmul.f32 0.0078125, %v1189_v37  ;;  %1342 = vadd.xlane.f32.xlu1 %v1283_v25  ;;  %v1284_v30 = vmul.f32 %v5189_v40, %v5189_v40 }
 0x366   : > { %v1191_v26 = vpop.xlane.xlu1 %1190 }
 0x367   : > { %v5199_v61 = vsub.f32 %v5042_v24, %v1222_v6  ;;  %v1223_v33 = vmul.f32 0.0078125, %v1191_v26  ;;  %1344 = vadd.xlane.f32.xlu0 %v1284_v30  ;;  %v1285_v43 = vmul.f32 %v5194_v1, %v5194_v1  ;;  %3217 = vmatpush3.bf16.msra.mxu1 %v3393_v20  ;;  %v3394_v6 = vld [vmem:[#allocation5 + $0x78] sm:$0xff]  }
 0x368   : > { %3218 = vmatprep.subr.bf16.mxu1 %v3394_v6 }
 0x369   : > { %6567 = vst [vmem:[#allocation45_spill] sm:$0xff] %v5199_v61  ;;  %v5204_v49 = vsub.f32 %v5046_v53, %v1223_v33  ;;  %1346 = vadd.xlane.f32.xlu1 %v1285_v43  ;;  %v1286_v37 = vmul.f32 %v5199_v61, %v5199_v61 }
 0x36b   : > { %6568 = vst [vmem:[#allocation46_spill] sm:$0xff] %v5204_v49  ;;  %1348 = vadd.xlane.f32.xlu0 %v1286_v37  ;;  %v1287_v25 = vmul.f32 %v5204_v49, %v5204_v49  ;;  %3219 = vmatpush3.bf16.msra.mxu1 %v3394_v6 }
 0x36d   : > { %1350 = vadd.xlane.f32.xlu1 %v1287_v25 }
 0x3ac   : > { %v1289_v30 = vpop.xlane.xlu0 %1288 }
 0x3ad   : > { %v1352_v26 = vmul.f32 0.007874016, %v1289_v30 }
 0x3ae   : > { %v1291_v33 = vpop.xlane.xlu1 %1290 }
 0x3af   : > { %3531 = vrsqrt.f32 %v1352_v26  ;;  %v1353_v43 = vmul.f32 0.007874016, %v1291_v33  ;;  %vm1386_vm14 = vcmp.eq.f32.partialorder %v1352_v26, inf  ;;  %v1389_v48 = vand.u32 2147483648, %v1352_v26 }
 0x3b0   : > { %v1293_v53 = vpop.xlane.xlu0 %1292  ;;  %vm1388_vm0 = vcmp.eq.f32.partialorder %v1352_v26, 0.0 }
 0x3b1   : > { %v1354_v24 = vmul.f32 0.007874016, %v1293_v53  ;;  %3533 = vrsqrt.f32 %v1353_v43  ;;  %vm1393_vm1 = vcmp.eq.f32.partialorder %v1353_v43, inf  ;;  %vm1395_vm2 = vcmp.eq.f32.partialorder %v1353_v43, 0.0 }
 0x3b2   : > { %v1295_v12 = vpop.xlane.xlu1 %1294 }
 0x3b3   : > { %3535 = vrsqrt.f32 %v1354_v24  ;;  %v1355_v37 = vmul.f32 0.007874016, %v1295_v12  ;;  %vm1400_vm4 = vcmp.eq.f32.partialorder %v1354_v24, inf  ;;  %vm1402_vm5 = vcmp.eq.f32.partialorder %v1354_v24, 0.0 }
 0x3b5   : > { %3537 = vrsqrt.f32 %v1355_v37  ;;  %vm1407_vm6 = vcmp.eq.f32.partialorder %v1355_v37, inf  ;;  %vm1409_vm7 = vcmp.eq.f32.partialorder %v1355_v37, 0.0 }
 0x3b9   : > { %v3532_v36 = vpop.eup %3531  ;;  %v1297_v22 = vpop.xlane.xlu0 %1296 }
 0x3ba   : > { %v1385_v14 = vmul.f32 %v3532_v36, %v1352_v26  ;;  %v5210_v20 = vmul.f32 0.007874016, %v1297_v22  ;;  %v1403_v36 = vand.u32 2147483648, %v1354_v24 }
 0x3bb   : > { %v3534_v25 = vpop.eup %3533  ;;  %v1299_v30 = vpop.xlane.xlu1 %1298 }
 0x3bc   : > { %v1387_v6 = vsel %vm1386_vm14, %v1352_v26, %v1385_v14  ;;  %v1392_v33 = vmul.f32 %v3534_v25, %v1353_v43  ;;  %3539 = vrsqrt.f32 %v5210_v20  ;;  %v1357_v12 = vmul.f32 0.007874016, %v1299_v30 }
 0x3bd   : > { %v3536_v2 = vpop.eup %3535  ;;  %v1301_v55 = vpop.xlane.xlu0 %1300  ;;  %v1390_v52 = vsel %vm1388_vm0, %v1389_v48, %v1387_v6  ;;  %v1396_v25 = vand.u32 2147483648, %v1353_v43  ;;  %vm1414_vm15 = vcmp.eq.f32.partialorder %v5210_v20, inf  ;;  %vm1416_vm3 = vcmp.eq.f32.partialorder %v5210_v20, 0.0 }
 0x3be   : > { %v1399_v53 = vmul.f32 %v3536_v2, %v1354_v24  ;;  %v5213_v9 = vmul.f32 0.007874016, %v1301_v55  ;;  %v1608_v22 = vadd.f32 1e-06, %v1390_v52  ;;  %v1394_v14 = vsel %vm1393_vm1, %v1353_v43, %v1392_v33 }
 0x3bf   : > { %v3538_v23 = vpop.eup %3537  ;;  %3541 = vrsqrt.f32 %v1357_v12  ;;  %v1303_v26 = vpop.xlane.xlu1 %1302  ;;  %v1410_v2 = vand.u32 2147483648, %v1355_v37  ;;  %v1397_v52 = vsel %vm1395_vm2, %v1396_v25, %v1394_v14  ;;  %vm1421_vm8 = vcmp.eq.f32.partialorder %v1357_v12, inf }
 0x3c0   : > { %v1401_v13 = vsel %vm1400_vm4, %v1354_v24, %v1399_v53  ;;  %v1406_v62 = vmul.f32 %v3538_v23, %v1355_v37  ;;  %3543 = vrsqrt.f32 %v5213_v9  ;;  %v5216_v6 = vmul.f32 0.007874016, %v1303_v26 }
 0x3c1   : > { %v1404_v46 = vsel %vm1402_vm5, %v1403_v36, %v1401_v13  ;;  %3545 = vrcp.f32 %v1608_v22  ;;  %v1609_v24 = vadd.f32 1e-06, %v1397_v52  ;;  %v1424_v25 = vand.u32 2147483648, %v1357_v12 }
 0x3c2   : > { %v1610_v19 = vadd.f32 1e-06, %v1404_v46  ;;  %v1408_v48 = vsel %vm1407_vm6, %v1355_v37, %v1406_v62  ;;  %vm1423_vm9 = vcmp.eq.f32.partialorder %v1357_v12, 0.0  ;;  %vm1428_vm10 = vcmp.eq.f32.partialorder %v5213_v9, inf }
 0x3c3   : > { %v1411_v55 = vsel %vm1409_vm7, %v1410_v2, %v1408_v48  ;;  %v1417_v48 = vand.u32 2147483648, %v5210_v20  ;;  %vm1430_vm11 = vcmp.eq.f32.partialorder %v5213_v9, 0.0  ;;  %vm1435_vm12 = vcmp.eq.f32.partialorder %v5216_v6, inf }
 0x3c4   : > { %3547 = vrcp.f32 %v1610_v19  ;;  %v1611_v30 = vadd.f32 1e-06, %v1411_v55  ;;  %vm1437_vm13 = vcmp.eq.f32.partialorder %v5216_v6, 0.0 }
 0x3c5   : > { %3549 = vrsqrt.f32 %v5216_v6 }
 0x3c6   : > { %3551 = vrcp.f32 %v1609_v24  ;;  %v3540_v13 = vpop.eup %3539 }
 0x3c7   : > { %3553 = vrcp.f32 %v1611_v30  ;;  %v1413_v53 = vmul.f32 %v3540_v13, %v5210_v20 }
 0x3c9   : > { %v1305_v46 = vpop.xlane.xlu0 %1304  ;;  %v3542_v33 = vpop.eup %3541  ;;  %v1415_v26 = vsel %vm1414_vm15, %v5210_v20, %v1413_v53  ;;  %v1431_v20 = vand.u32 2147483648, %v5213_v9 }
 0x3ca   : > { %v1420_v62 = vmul.f32 %v3542_v33, %v1357_v12  ;;  %v3544_v36 = vpop.eup %3543  ;;  %v1418_v17 = vsel %vm1416_vm3, %v1417_v48, %v1415_v26 }
 0x3cb   : > { %v1307_v23 = vpop.xlane.xlu1 %1306  ;;  %v3546_v43 = vpop.eup %3545  ;;  %v1427_v55 = vmul.f32 %v3544_v36, %v5213_v9 }
 0x3cc   : > { %v1422_v19 = vsel %vm1421_vm8, %v1357_v12, %v1420_v62  ;;  %v5227_v62 = vmul.f32 0.007874016, %v1305_v46  ;;  %v5230_v53 = vmul.f32 0.007874016, %v1307_v23  ;;  %v1704_v26 = vmul.f32 %v3546_v43, %v5051_v60 }
 0x3cd   : > { %v1309_v37 = vpop.xlane.xlu0 %1308  ;;  %v1425_v30 = vsel %vm1423_vm9, %v1424_v25, %v1422_v19  ;;  %v1429_v46 = vsel %vm1428_vm10, %v5213_v9, %v1427_v55  ;;  %v1612_v25 = vadd.f32 1e-06, %v1418_v17 }
 0x3ce   : > { %v3548_v14 = vpop.eup %3547  ;;  %v1613_v36 = vadd.f32 1e-06, %v1425_v30  ;;  %3555 = vrsqrt.f32 %v5227_v62  ;;  %v1432_v17 = vsel %vm1430_vm11, %v1431_v20, %v1429_v46  ;;  %vm1442_vm14 = vcmp.eq.f32.partialorder %v5227_v62, inf }
 0x3cf   : > { %v1311_v22 = vpop.xlane.xlu1 %1310  ;;  %v3550_v2 = vpop.eup %3549  ;;  %v1706_v23 = vmul.f32 %v3548_v14, %v5059_v57  ;;  %3557 = vrsqrt.f32 %v5230_v53  ;;  %vm1444_vm0 = vcmp.eq.f32.partialorder %v5227_v62, 0.0  ;;  %vm1449_vm1 = vcmp.eq.f32.partialorder %v5230_v53, inf }
 0x3d0   : > { %v3552_v52 = vpop.eup %3551  ;;  %v1434_v33 = vmul.f32 %v3550_v2, %v5216_v6  ;;  %v5246_v48 = vmul.f32 0.007874016, %v1311_v22  ;;  %3559 = vrcp.f32 %v1613_v36  ;;  %vm1451_vm4 = vcmp.eq.f32.partialorder %v5230_v53, 0.0 }
 0x3d1   : > { %v3554_v13 = vpop.eup %3553  ;;  %v1705_v12 = vmul.f32 %v3552_v52, %v5056_v54  ;;  %v1438_v54 = vand.u32 2147483648, %v5216_v6  ;;  %3561 = vrcp.f32 %v1612_v25 }
 0x3d2   : > { %v1707_v35 = vmul.f32 %v3554_v13, %v5064_v10  ;;  %v1436_v2 = vsel %vm1435_vm12, %v5216_v6, %v1434_v33  ;;  %v5243_v10 = vmul.f32 0.007874016, %v1309_v37  ;;  %v1614_v6 = vadd.f32 1e-06, %v1432_v17 }
 0x3d3   : > { %v1736_v55 = vpack.c.bf16 %v1705_v12, %v1704_v26  ;;  %v1439_v37 = vsel %vm1437_vm13, %v1438_v54, %v1436_v2  ;;  %vm1463_vm5 = vcmp.eq.f32.partialorder %v5246_v48, inf  ;;  %vm1465_vm15 = vcmp.eq.f32.partialorder %v5246_v48, 0.0 }
 0x3d4   : > { %v1313_v24 = vpop.xlane.xlu0 %1312  ;;  %v1737_v30 = vpack.c.bf16 %v1707_v35, %v1706_v23  ;;  %3563 = vrsqrt.f32 %v5243_v10  ;;  %v1615_v14 = vadd.f32 1e-06, %v1439_v37  ;;  %vm1456_vm2 = vcmp.eq.f32.partialorder %v5243_v10, inf }
 0x3d5   : > { %v5249_v60 = vmul.f32 0.007874016, %v1313_v24  ;;  %3220 = vmatprep.mubr.bf16.mxu1 %v1736_v55  ;;  %3565 = vrsqrt.f32 %v5246_v48  ;;  %vm1458_vm8 = vcmp.eq.f32.partialorder %v5243_v10, 0.0 }
 0x3d6   : > { %v1315_v63 = vpop.xlane.xlu1 %1314  ;;  %3221 = vmatmul.mubr.bf16.vlgmr.msra.gmra.mrb[16].mxu1 %v1737_v30 }
 0x3d7   : > { %v5253_v57 = vmul.f32 0.007874016, %v1315_v63  ;;  %3567 = vrsqrt.f32 %v5249_v60  ;;  %vm1470_vm6 = vcmp.eq.f32.partialorder %v5249_v60, inf }
 0x3d8   : > { %v1317_v19 = vpop.xlane.xlu0 %1316  ;;  %v3556_v13 = vpop.eup %3555 }
 0x3d9   : > { %v5256_v22 = vmul.f32 0.007874016, %v1317_v19  ;;  %3569 = vrsqrt.f32 %v5253_v57  ;;  %v3558_v12 = vpop.eup %3557  ;;  %v1445_v19 = vand.u32 2147483648, %v5227_v62  ;;  %v1441_v2 = vmul.f32 %v3556_v13, %v5227_v62 }
 0x3da   : > { %v1319_v52 = vpop.xlane.xlu1 %1318  ;;  %v3560_v46 = vpop.eup %3559  ;;  %vm1477_vm7 = vcmp.eq.f32.partialorder %v5253_v57, inf }
 0x3db   : > { %3571 = vrsqrt.f32 %v5256_v22  ;;  %v5262_v9 = vmul.f32 0.007874016, %v1319_v52  ;;  %v3562_v25 = vpop.eup %3561  ;;  %vm1484_vm9 = vcmp.eq.f32.partialorder %v5256_v22, inf }
 0x3dc   : > { %v1321_v43 = vpop.xlane.xlu0 %1320  ;;  %3573 = vrcp.f32 %v1614_v6 }
 0x3dd   : > { %v5264_v33 = vmul.f32 0.007874016, %v1321_v43  ;;  %3575 = vrcp.f32 %v1615_v14  ;;  %v1709_v43 = vmul.f32 %v3560_v46, %v5074_v27  ;;  %v1708_v27 = vmul.f32 %v3562_v25, %v5071_v8 }
 0x3de   : > { %v1323_v35 = vpop.xlane.xlu1 %1322  ;;  %3577 = vrsqrt.f32 %v5262_v9  ;;  %v3564_v55 = vpop.eup %3563  ;;  %v1443_v46 = vsel %vm1442_vm14, %v5227_v62, %v1441_v2  ;;  %vm1491_vm3 = vcmp.eq.f32.partialorder %v5262_v9, inf  ;;  %vm1472_vm14 = vcmp.eq.f32.partialorder %v5249_v60, 0.0 }
 0x3df   : > { %v5268_v20 = vmul.f32 0.007874016, %v1323_v35  ;;  %3579 = vrsqrt.f32 %v5264_v33  ;;  %v3566_v37 = vpop.eup %3565  ;;  %v1738_v8 = vpack.c.bf16 %v1709_v43, %v1708_v27  ;;  %v1446_v4 = vsel %vm1444_vm0, %v1445_v19, %v1443_v46 }
 0x3e0   : > { %v1325_v63 = vpop.xlane.xlu0 %1324  ;;  %v1462_v30 = vmul.f32 %v3566_v37, %v5246_v48  ;;  %vm1498_vm10 = vcmp.eq.f32.partialorder %v5264_v33, inf  ;;  %v6575_v40 = vand.u32 2147483648, %v5262_v9 }
 0x3e1   : > { %v5273_v23 = vmul.f32 0.007874016, %v1325_v63  ;;  %3581 = vrsqrt.f32 %v5268_v20  ;;  %v3568_v63 = vpop.eup %3567  ;;  %3224 = vmatprep.mubr.bf16.mxu1 %v1738_v8  ;;  %v6569_v8 = vand.u32 2147483648, %v5230_v53  ;;  %vm1505_vm11 = vcmp.eq.f32.partialorder %v5268_v20, inf }
 0x3e2   : > { %v1327_v24 = vpop.xlane.xlu1 %1326 }
 0x3e3   : > { %v5278_v54 = vmul.f32 0.007874016, %v1327_v24  ;;  %v1448_v24 = vmul.f32 %v3558_v12, %v5230_v53  ;;  %3583 = vrsqrt.f32 %v5273_v23  ;;  %vm1512_vm12 = vcmp.eq.f32.partialorder %v5273_v23, inf }
 0x3e4   : > { %v1329_v36 = vpop.xlane.xlu0 %1328 }
 0x3e5   : > { %v5283_v17 = vmul.f32 0.007874016, %v1329_v36  ;;  %v3570_v36 = vpop.eup %3569  ;;  %3585 = vrsqrt.f32 %v5278_v54  ;;  %v1450_v13 = vsel %vm1449_vm1, %v5230_v53, %v1448_v24  ;;  %vm1519_vm13 = vcmp.eq.f32.partialorder %v5278_v54, inf }
 0x3e6   : > { %v1331_v52 = vpop.xlane.xlu1 %1330  ;;  %v3572_v35 = vpop.eup %3571  ;;  %v1476_v28 = vmul.f32 %v3570_v36, %v5253_v57  ;;  %v1453_v24 = vsel %vm1451_vm4, %v6569_v8, %v1450_v13  ;;  %vm1479_vm1 = vcmp.eq.f32.partialorder %v5253_v57, 0.0 }
 0x3e7   : > { %v5289_v6 = vmul.f32 0.007874016, %v1331_v52  ;;  %v1455_v52 = vmul.f32 %v3564_v55, %v5243_v10  ;;  %3587 = vrsqrt.f32 %v5283_v17  ;;  %v3574_v25 = vpop.eup %3573  ;;  %v1483_v36 = vmul.f32 %v3572_v35, %v5256_v22 }
 0x3e8   : > { %v1333_v14 = vpop.xlane.xlu0 %1332  ;;  %v3576_v37 = vpop.eup %3575  ;;  %v1710_v19 = vmul.f32 %v3574_v25, %v5079_v0  ;;  %vm1526_vm0 = vcmp.eq.f32.partialorder %v5283_v17, inf }
 0x3e9   : > { %3589 = vrsqrt.f32 %v5289_v6  ;;  %v5310_v55 = vmul.f32 0.007874016, %v1333_v14  ;;  %v1457_v2 = vsel %vm1456_vm2, %v5243_v10, %v1455_v52  ;;  %v1469_v14 = vmul.f32 %v3568_v63, %v5249_v60  ;;  %v3578_v63 = vpop.eup %3577 }
 0x3ea   : > { %v1335_v12 = vpop.xlane.xlu1 %1334  ;;  %v1711_v46 = vmul.f32 %v3576_v37, %v5084_v34  ;;  %v3580_v43 = vpop.eup %3579  ;;  %v1490_v37 = vmul.f32 %v3578_v63, %v5262_v9  ;;  %vm1486_vm2 = vcmp.eq.f32.partialorder %v5256_v22, 0.0  ;;  %vm1533_vm4 = vcmp.eq.f32.partialorder %v5289_v6, inf }
 0x3eb   : > { %v5316_v27 = vmul.f32 0.007874016, %v1335_v12  ;;  %v1464_v12 = vsel %vm1463_vm5, %v5246_v48, %v1462_v30  ;;  %3591 = vrsqrt.f32 %v5310_v55  ;;  %v1616_v30 = vadd.f32 1e-06, %v1446_v4  ;;  %v3582_v35 = vpop.eup %3581 }
 0x3ec   : > { %v1337_v26 = vpop.xlane.xlu0 %1336  ;;  %v1739_v0 = vpack.c.bf16 %v1711_v46, %v1710_v19  ;;  %v5349_v25 = vsel %vm1470_vm6, %v5249_v60, %v1469_v14  ;;  %v5354_v4 = vsel %vm1477_vm7, %v5253_v57, %v1476_v28  ;;  %v1617_v19 = vadd.f32 1e-06, %v1453_v24 }
 0x3ed   : > { %v5331_v62 = vmul.f32 0.007874016, %v1337_v26  ;;  %3593 = vrsqrt.f32 %v5316_v27  ;;  %v5366_v46 = vsel %vm1484_vm9, %v5256_v22, %v1483_v36  ;;  %v1497_v8 = vmul.f32 %v3580_v43, %v5264_v33 }
 0x3ee   : > { %v1339_v18 = vpop.xlane.xlu1 %1338  ;;  %3225 = vmatmul.mubr.bf16.gmra.mrb[20].mxu1 %v1739_v0  ;;  %v6570_v24 = vand.u32 2147483648, %v5243_v10  ;;  %v6571_v36 = vand.u32 2147483648, %v5246_v48  ;;  %v1492_v10 = vsel %vm1491_vm3, %v5262_v9, %v1490_v37  ;;  %vm1493_vm5 = vcmp.eq.f32.partialorder %v5262_v9, 0.0 }
 0x3ef   : > { %v5344_v34 = vmul.f32 0.007874016, %v1339_v18  ;;  %v3584_v18 = vpop.eup %3583  ;;  %3595 = vrsqrt.f32 %v5331_v62  ;;  %vm1540_vm6 = vcmp.eq.f32.partialorder %v5310_v55, inf  ;;  %vm1547_vm7 = vcmp.eq.f32.partialorder %v5316_v27, inf }
 0x3f0   : > { %v1341_v52 = vpop.xlane.xlu0 %1340  ;;  %v3586_v28 = vpop.eup %3585  ;;  %3597 = vrcp.f32 %v1616_v30  ;;  %v1460_v0 = vsel %vm1458_vm8, %v6570_v24, %v1457_v2  ;;  %v1467_v43 = vsel %vm1465_vm15, %v6571_v36, %v1464_v12  ;;  %v1504_v30 = vmul.f32 %v3582_v35, %v5268_v20 }
 0x3f1   : > { %v3588_v26 = vpop.eup %3587  ;;  %3599 = vrsqrt.f32 %v5344_v34  ;;  %v5372_v14 = vmul.f32 0.007874016, %v1341_v52  ;;  %v1511_v48 = vmul.f32 %v3584_v18, %v5273_v23  ;;  %v1518_v2 = vmul.f32 %v3586_v28, %v5278_v54 }
 0x3f2   : > { %v1343_v13 = vpop.xlane.xlu1 %1342  ;;  %3601 = vrcp.f32 %v1617_v19  ;;  %v5398_v35 = vsel %vm1498_vm10, %v5264_v33, %v1497_v8  ;;  %v1618_v19 = vadd.f32 1e-06, %v1460_v0  ;;  %v1619_v24 = vadd.f32 1e-06, %v1467_v43 }
 0x3f3   : > { %v3590_v16 = vpop.eup %3589  ;;  %v5386_v52 = vmul.f32 0.007874016, %v1343_v13  ;;  %v1525_v36 = vmul.f32 %v3588_v26, %v5283_v17  ;;  %3603 = vrsqrt.f32 %v5372_v14  ;;  %vm1500_vm8 = vcmp.eq.f32.partialorder %v5264_v33, 0.0 }
 0x3f4   : > { %v1345_v63 = vpop.xlane.xlu0 %1344  ;;  %v1532_v37 = vmul.f32 %v3590_v16, %v5289_v6  ;;  %v5412_v8 = vsel %vm1505_vm11, %v5268_v20, %v1504_v30  ;;  %vm1507_vm15 = vcmp.eq.f32.partialorder %v5268_v20, 0.0  ;;  %v5427_v43 = vsel %vm1519_vm13, %v5278_v54, %v1518_v2 }
 0x3f5   : > { %v3592_v12 = vpop.eup %3591  ;;  %3605 = vrsqrt.f32 %v5386_v52  ;;  %v5416_v16 = vmul.f32 0.007874016, %v1345_v63  ;;  %vm1514_vm9 = vcmp.eq.f32.partialorder %v5273_v23, 0.0  ;;  %vm1554_vm3 = vcmp.eq.f32.partialorder %v5331_v62, inf }
 0x3f6   : > { %v1347_v53 = vpop.xlane.xlu1 %1346  ;;  %3607 = vrcp.f32 %v1618_v19  ;;  %vm1521_vm10 = vcmp.eq.f32.partialorder %v5278_v54, 0.0  ;;  %v5444_v19 = vsel %vm1526_vm0, %v5283_v17, %v1525_v36  ;;  %vm1561_vm11 = vcmp.eq.f32.partialorder %v5344_v34, inf }
 0x3f7   : > { %v5406_v18 = vmul.f32 0.007874016, %v1347_v53  ;;  %v3594_v0 = vpop.eup %3593  ;;  %v5422_v53 = vsel %vm1512_vm12, %v5273_v23, %v1511_v48  ;;  %3609 = vrcp.f32 %v1619_v24  ;;  %v6572_v48 = vand.u32 2147483648, %v5249_v60 }
 0x3f8   : > { %v1349_v28 = vpop.xlane.xlu0 %1348  ;;  %v5449_v24 = vsel %vm1533_vm4, %v5289_v6, %v1532_v37  ;;  %vm1528_vm12 = vcmp.eq.f32.partialorder %v5283_v17, 0.0  ;;  %vm1535_vm13 = vcmp.eq.f32.partialorder %v5289_v6, 0.0  ;;  %v6573_v37 = vand.u32 2147483648, %v5253_v57 }
 0x3f9   : > { %v5433_v26 = vmul.f32 0.007874016, %v1349_v28  ;;  %v1474_v13 = vsel %vm1472_vm14, %v6572_v48, %v5349_v25  ;;  %v3596_v5 = vpop.eup %3595  ;;  %3611 = vrsqrt.f32 %v5406_v18  ;;  %v1539_v25 = vmul.f32 %v3592_v12, %v5310_v55 }
 0x3fa   : > { %v1351_v2 = vpop.xlane.xlu1 %1350  ;;  %v3598_v60 = vpop.eup %3597  ;;  %v1546_v48 = vmul.f32 %v3594_v0, %v5316_v27  ;;  %3613 = vrsqrt.f32 %v5416_v16  ;;  %v1481_v28 = vsel %vm1479_vm1, %v6573_v37, %v5354_v4  ;;  %v1620_v30 = vadd.f32 1e-06, %v1474_v13 }
 0x3fb   : > { %v3600_v36 = vpop.eup %3599  ;;  %v5465_v61 = vmul.f32 0.007874016, %v1351_v2  ;;  %v6574_v12 = vand.u32 2147483648, %v5256_v22  ;;  %3615 = vrsqrt.f32 %v5433_v26  ;;  %v1621_v49 = vadd.f32 1e-06, %v1481_v28 }
 0x3fc   : > { %v3602_v63 = vpop.eup %3601  ;;  %v1495_v7 = vsel %vm1493_vm5, %v6575_v40, %v1492_v10  ;;  %vm1542_vm14 = vcmp.eq.f32.partialorder %v5310_v55, 0.0  ;;  %vm1549_vm0 = vcmp.eq.f32.partialorder %v5316_v27, 0.0  ;;  %v1553_v4 = vmul.f32 %v3596_v5, %v5331_v62 }
 0x3fd   : > { %v1488_v0 = vsel %vm1486_vm2, %v6574_v12, %v5366_v46  ;;  %v1712_v13 = vmul.f32 %v3598_v60, %v5091_v32  ;;  %v1713_v22 = vmul.f32 %v3602_v63, %v5094_v41  ;;  %3617 = vrcp.f32 %v1620_v30  ;;  %v3604_v10 = vpop.eup %3603 }
 0x3fe   : > { %v1622_v57 = vadd.f32 1e-06, %v1488_v0  ;;  %v1541_v46 = vsel %vm1540_vm6, %v5310_v55, %v1539_v25  ;;  %v1548_v40 = vsel %vm1547_vm7, %v5316_v27, %v1546_v48  ;;  %v1560_v9 = vmul.f32 %v3600_v36, %v5344_v34 }
 0x3ff   : > { %3619 = vrcp.f32 %v1621_v49  ;;  %vm1556_vm1 = vcmp.eq.f32.partialorder %v5331_v62, 0.0  ;;  %vm1563_vm2 = vcmp.eq.f32.partialorder %v5344_v34, 0.0  ;;  %v1740_v5 = vpack.c.bf16 %v1713_v22, %v1712_v13  ;;  %v3606_v63 = vpop.eup %3605 }
 0x400   : > { %vm1575_vm4 = vcmp.eq.f32.partialorder %v5386_v52, inf  ;;  %3621 = vrsqrt.f32 %v5465_v61  ;;  %v1623_v32 = vadd.f32 1e-06, %v1495_v7  ;;  %v6576_v41 = vand.u32 2147483648, %v5264_v33  ;;  %v3608_v25 = vpop.eup %3607 }
 0x401   : > { %v1585_v49 = vand.u32 2147483648, %v5416_v16  ;;  %3623 = vrcp.f32 %v1622_v57  ;;  %v6577_v2 = vand.u32 2147483648, %v5268_v20  ;;  %v1555_v7 = vsel %vm1554_vm3, %v5331_v62, %v1553_v4  ;;  %3228 = vmatprep.mubr.bf16.mxu1 %v1740_v5  ;;  %v3610_v36 = vpop.eup %3609 }
 0x402   : > { %v1502_v30 = vsel %vm1500_vm8, %v6576_v41, %v5398_v35  ;;  %vm1568_vm5 = vcmp.eq.f32.partialorder %v5372_v14, inf  ;;  %3625 = vrcp.f32 %v1623_v32  ;;  %v6578_v35 = vand.u32 2147483648, %v5273_v23 }
 0x403   : > { %v1509_v28 = vsel %vm1507_vm15, %v6577_v2, %v5412_v8  ;;  %v1624_v60 = vadd.f32 1e-06, %v1502_v30  ;;  %v1562_v20 = vsel %vm1561_vm11, %v5344_v34, %v1560_v9  ;;  %vm1582_vm6 = vcmp.eq.f32.partialorder %v5416_v16, inf  ;;  %v3612_v0 = vpop.eup %3611 }
 0x404   : > { %v1625_v33 = vadd.f32 1e-06, %v1509_v28  ;;  %v1516_v48 = vsel %vm1514_vm9, %v6578_v35, %v5422_v53  ;;  %v6579_v8 = vand.u32 2147483648, %v5278_v54  ;;  %vm1577_vm7 = vcmp.eq.f32.partialorder %v5386_v52, 0.0  ;;  %v3614_v4 = vpop.eup %3613 }
 0x405   : > { %3627 = vrcp.f32 %v1624_v60  ;;  %v1626_v12 = vadd.f32 1e-06, %v1516_v48  ;;  %v1714_v23 = vmul.f32 %v3608_v25, %v5099_v21  ;;  %v1715_v53 = vmul.f32 %v3610_v36, %v5104_v3  ;;  %v3616_v32 = vpop.eup %3615 }
 0x406   : > { %v1523_v37 = vsel %vm1521_vm10, %v6579_v8, %v5427_v43  ;;  %3629 = vrcp.f32 %v1625_v33  ;;  %vm1570_vm8 = vcmp.eq.f32.partialorder %v5372_v14, 0.0  ;;  %v1574_v13 = vmul.f32 %v3606_v63, %v5386_v52 }
 0x407   : > { %v1627_v57 = vadd.f32 1e-06, %v1523_v37  ;;  %3631 = vrcp.f32 %v1626_v12  ;;  %v6580_v54 = vand.u32 2147483648, %v5283_v17  ;;  %v6581_v22 = vand.u32 2147483648, %v5289_v6 }
 0x408   : > { %v1567_v3 = vmul.f32 %v3604_v10, %v5372_v14  ;;  %v1741_v9 = vpack.c.bf16 %v1715_v53, %v1714_v23  ;;  %vm1584_vm15 = vcmp.eq.f32.partialorder %v5416_v16, 0.0  ;;  %v1588_v41 = vmul.f32 %v3612_v0, %v5406_v18 }
 0x409   : > { %v1530_v43 = vsel %vm1528_vm12, %v6580_v54, %v5444_v19  ;;  %v1537_v21 = vsel %vm1535_vm13, %v6581_v22, %v5449_v24  ;;  %3633 = vrcp.f32 %v1627_v57  ;;  %v6582_v17 = vand.u32 2147483648, %v5310_v55  ;;  %v3618_v24 = vpop.eup %3617 }
 0x40a   : > { %v1628_v5 = vadd.f32 1e-06, %v1530_v43  ;;  %v1629_v30 = vadd.f32 1e-06, %v1537_v21  ;;  %v6583_v63 = vand.u32 2147483648, %v5316_v27  ;;  %v1581_v10 = vmul.f32 %v3614_v4, %v5416_v16  ;;  %3229 = vmatmul.mubr.bf16.gmra.mrb[24].mxu1 %v1741_v9  ;;  %v3620_v28 = vpop.eup %3619 }
 0x40b   : > { %v1544_v19 = vsel %vm1542_vm14, %v6582_v17, %v1541_v46  ;;  %vm1589_vm9 = vcmp.eq.f32.partialorder %v5406_v18, inf  ;;  %v1576_v60 = vsel %vm1575_vm4, %v5386_v52, %v1574_v13  ;;  %v6584_v55 = vand.u32 2147483648, %v5331_v62  ;;  %v3622_v25 = vpop.eup %3621 }
 0x40c   : > { %v1551_v6 = vsel %vm1549_vm0, %v6583_v63, %v1548_v40  ;;  %3635 = vrcp.f32 %v1628_v5  ;;  %v6585_v46 = vand.u32 2147483648, %v5344_v34  ;;  %v1716_v33 = vmul.f32 %v3618_v24, %v5111_v56  ;;  %v3624_v8 = vpop.eup %3623 }
 0x40d   : > { %v1631_v2 = vadd.f32 1e-06, %v1551_v6  ;;  %3637 = vrcp.f32 %v1629_v30  ;;  %v1558_v27 = vsel %vm1556_vm1, %v6584_v55, %v1555_v7  ;;  %v1717_v35 = vmul.f32 %v3620_v28, %v5114_v42  ;;  %v3626_v12 = vpop.eup %3625 }
 0x40e   : > { %v1565_v40 = vsel %vm1563_vm2, %v6585_v46, %v1562_v20  ;;  %v1630_v48 = vadd.f32 1e-06, %v1544_v19  ;;  %v1569_v37 = vsel %vm1568_vm5, %v5372_v14, %v1567_v3  ;;  %v1590_v62 = vsel %vm1589_vm9, %v5406_v18, %v1588_v41 }
 0x40f   : > { %v1633_v36 = vadd.f32 1e-06, %v1565_v40  ;;  %vm1591_vm3 = vcmp.eq.f32.partialorder %v5406_v18, 0.0  ;;  %v1632_v7 = vadd.f32 1e-06, %v1558_v27  ;;  %v1583_v34 = vsel %vm1582_vm6, %v5416_v16, %v1581_v10  ;;  %v3628_v20 = vpop.eup %3627 }
 0x410   : > { %v1592_v56 = vand.u32 2147483648, %v5406_v18  ;;  %v1742_v42 = vpack.c.bf16 %v1717_v35, %v1716_v33  ;;  %3639 = vrcp.f32 %v1631_v2  ;;  %v1718_v0 = vmul.f32 %v3624_v8, %v5119_v39  ;;  %v3630_v4 = vpop.eup %3629 }
 0x411   : > { %v1719_v23 = vmul.f32 %v3626_v12, %v5124_v50  ;;  %3641 = vrcp.f32 %v1633_v36  ;;  %v6586_v53 = vand.u32 2147483648, %v5386_v52  ;;  %v1602_v13 = vmul.f32 %v3622_v25, %v5465_v61  ;;  %v3632_v50 = vpop.eup %3631  ;;  %v6589_v12 = vld [vmem:[#allocation44_spill] sm:$0xff] }
 0x412   : > { %3232 = vmatprep.mubr.bf16.mxu1 %v1742_v42  ;;  %3643 = vrcp.f32 %v1630_v48  ;;  %v6587_v54 = vand.u32 2147483648, %v5372_v14  ;;  %v1593_v39 = vsel %vm1591_vm3, %v1592_v56, %v1590_v62  ;;  %v1720_v21 = vmul.f32 %v3628_v20, %v5129_v38  ;;  %v6590_v20 = vld [vmem:[#allocation46_spill] sm:$0xff] }
 0x413   : > { %v1579_v57 = vsel %vm1577_vm7, %v6586_v53, %v1576_v60  ;;  %v1743_v22 = vpack.c.bf16 %v1719_v23, %v1718_v0  ;;  %v1721_v52 = vmul.f32 %v3630_v4, %v5134_v45  ;;  %3645 = vrcp.f32 %v1632_v7  ;;  %v3634_v3 = vpop.eup %3633  ;;  %v6591_v23 = vld [vmem:[#allocation45_spill] sm:$0xff] }
 0x414   : > { %v1572_v43 = vsel %vm1570_vm8, %v6587_v54, %v1569_v37  ;;  %v1595_v9 = vmul.f32 %v3616_v32, %v5433_v26  ;;  %v1635_v5 = vadd.f32 1e-06, %v1579_v57  ;;  %v1586_v14 = vsel %vm1584_vm15, %v1585_v49, %v1583_v34 }
 0x415   : > { %vm1603_vm10 = vcmp.eq.f32.partialorder %v5465_v61, inf  ;;  %3233 = vmatmul.mubr.bf16.gmra.mrb[28].mxu1 %v1743_v22  ;;  %v1744_v18 = vpack.c.bf16 %v1721_v52, %v1720_v21  ;;  %v1723_v41 = vmul.f32 %v3634_v3, %v5144_v44  ;;  %v1637_v30 = vadd.f32 1e-06, %v1593_v39  ;;  %v6593_v3 = vld [vmem:[#allocation14_spill] sm:$0xff] }
 0x416   : > { %v3636_v38 = vpop.eup %3635  ;;  %vm1596_vm11 = vcmp.eq.f32.partialorder %v5433_v26, inf  ;;  %v1604_v45 = vsel %vm1603_vm10, %v5465_v61, %v1602_v13  ;;  %v1634_v17 = vadd.f32 1e-06, %v1572_v43  ;;  %vm1605_vm12 = vcmp.eq.f32.partialorder %v5465_v61, 0.0 }
 0x417   : > { %v3638_v32 = vpop.eup %3637  ;;  %v1606_v19 = vand.u32 2147483648, %v5465_v61  ;;  %3236 = vmatprep.mubr.bf16.mxu1 %v1744_v18  ;;  %v1722_v16 = vmul.f32 %v3632_v50, %v5139_v11  ;;  %v1636_v49 = vadd.f32 1e-06, %v1586_v14  ;;  %v1597_v63 = vsel %vm1596_vm11, %v5433_v26, %v1595_v9  ;;  %v6592_v50 = vld [vmem:[#allocation12_spill] sm:$0xff]  ;;  %v6596_v18 = vld [vmem:[#allocation13_spill] sm:$0xff] }
 0x418   : > { %v1724_v44 = vmul.f32 %v3636_v38, %v5149_v51  ;;  %v1725_v6 = vmul.f32 %v3638_v32, %v5154_v15  ;;  %3647 = vrcp.f32 %v1635_v5  ;;  %v1599_v24 = vand.u32 2147483648, %v5433_v26  ;;  %v6595_v5 = vld [vmem:[#allocation11_spill] sm:$0xff] }
 0x419   : > { %v1745_v10 = vpack.c.bf16 %v1723_v41, %v1722_v16  ;;  %3649 = vrcp.f32 %v1637_v30  ;;  %v1607_v2 = vsel %vm1605_vm12, %v1606_v19, %v1604_v45  ;;  %vm1598_vm13 = vcmp.eq.f32.partialorder %v5433_v26, 0.0  ;;  %v6598_v16 = vld [vmem:[#allocation16_spill] sm:$0xff] }
 0x41a   : > { %v3640_v28 = vpop.eup %3639  ;;  %v1746_v61 = vpack.c.bf16 %v1725_v6, %v1724_v44  ;;  %3651 = vrcp.f32 %v1634_v17  ;;  %v1600_v11 = vsel %vm1598_vm13, %v1599_v24, %v1597_v63  ;;  %v1639_v27 = vadd.f32 1e-06, %v1607_v2  ;;  %v6600_v6 = vld [vmem:[#allocation15_spill] sm:$0xff] }
 0x41b   : > { %v3642_v60 = vpop.eup %3641  ;;  %3653 = vrcp.f32 %v1636_v49  ;;  %v1727_v51 = vmul.f32 %v3640_v28, %v5164_v58  ;;  %v1638_v40 = vadd.f32 1e-06, %v1600_v11  ;;  %v6604_v28 = vld [vmem:[#allocation18_spill] sm:$0xff] }
 0x41c   : > { %v3644_v55 = vpop.eup %3643  ;;  %v1729_v15 = vmul.f32 %v3642_v60, %v5174_v31  ;;  %3655 = vrcp.f32 %v1639_v27  ;;  %v6588_v31 = vld [vmem:[#allocation43_spill] sm:$0xff] }
 0x41d   : > { %v3646_v46 = vpop.eup %3645  ;;  %3237 = vmatmul.mubr.bf16.gmra.mrb[32].mxu1 %v1745_v10  ;;  %v1726_v25 = vmul.f32 %v3644_v55, %v5159_v59  ;;  %3657 = vrcp.f32 %v1638_v40  ;;  %v6602_v10 = vld [vmem:[#allocation17_spill] sm:$0xff] }
 0x41e   : > { %3240 = vmatprep.mubr.bf16.mxu1 %v1746_v61  ;;  %v1728_v33 = vmul.f32 %v3646_v46, %v5169_v47 }
 0x41f   : > { %v1747_v26 = vpack.c.bf16 %v1727_v51, %v1726_v25 }
 0x420   : > { %v1748_v48 = vpack.c.bf16 %v1729_v15, %v1728_v33  ;;  %v6606_v15 = vld [vmem:[#allocation19_spill] sm:$0xff] }
 0x422   : > { %v3648_v35 = vpop.eup %3647 }
 0x423   : > { %v3650_v36 = vpop.eup %3649  ;;  %v1731_v62 = vmul.f32 %v3648_v35, %v5184_v29  ;;  %v5617_v29 = vld [vmem:[%s6418_s2 + $0x1] ss:$0 sm:$0xff] }
 0x424   : > { %v3652_v8 = vpop.eup %3651  ;;  %v1733_v58 = vmul.f32 %v3650_v36, %v5194_v1 }
 0x425   : > { %v3654_v37 = vpop.eup %3653  ;;  %3241 = vmatmul.mubr.bf16.gmra.mrb[36].mxu1 %v1747_v26  ;;  %v1730_v7 = vmul.f32 %v3652_v8, %v6588_v31  ;;  %v6608_v26 = vld [vmem:[#allocation20_spill] sm:$0xff] }
 0x426   : > { %3244 = vmatprep.mubr.bf16.mxu1 %v1748_v48  ;;  %v1732_v59 = vmul.f32 %v3654_v37, %v6589_v12  ;;  %v3656_v47 = vpop.eup %3655  ;;  %v6610_v48 = vld [vmem:[#allocation21_spill] sm:$0xff]  ;;  %v6612_v37 = vld [vmem:[#allocation22_spill] sm:$0xff] }
 0x427   : > { %v1749_v34 = vpack.c.bf16 %v1731_v62, %v1730_v7  ;;  %v3658_v42 = vpop.eup %3657  ;;  %v1735_v0 = vmul.f32 %v3656_v47, %v6590_v20  ;;  %v6616_v20 = vld [vmem:[#allocation24_spill] sm:$0xff] }
 0x428   : > { %v1750_v56 = vpack.c.bf16 %v1733_v58, %v1732_v59  ;;  %v1734_v53 = vmul.f32 %v3658_v42, %v6591_v23  ;;  %v6618_v23 = vld [vmem:[#allocation25_spill] sm:$0xff] }
 0x42a   : > { %v1751_v57 = vpack.c.bf16 %v1735_v0, %v1734_v53 }
 0x42d   : > { %3245 = vmatmul.mubr.bf16.gmra.mrb[40].mxu1 %v1749_v34  ;;  %v6614_v34 = vld [vmem:[#allocation23_spill] sm:$0xff] }
 0x42e   : > { %3248 = vmatprep.mubr.bf16.mxu1 %v1750_v56 }
 0x435   : > { %3249 = vmatmul.mubr.bf16.gmra.mrb[44].mxu1 %v1751_v57 }
 0x4a9   : > { %v3222_v1 = vpop.f32.mrb[16].mxu1 }
 0x4aa   : > { %v1859_v4 = vpop.f32.mrb[17].mxu1  ;;  %v1868_v39 = vadd.f32 %v3222_v1, %v5617_v29 }
 0x4ab   : > { %v1860_v13 = vadd.f32 %v5617_v29, %v1859_v4  ;;  %v3223_v54 = vpop.f32.mrb[18].mxu1  ;;  %v6620_v4 = vld [vmem:[#allocation26_spill] sm:$0xff] }
 0x4ac   : > { %v1862_v43 = vpop.f32.mrb[19].mxu1  ;;  %v1871_v52 = vadd.f32 %v3223_v54, %v5617_v29  ;;  %v5631_v14 = vadd.f32 %v1868_v39, %v6595_v5 }
 0x4ad   : > { %v5622_v22 = vadd.f32 %v1860_v13, %v6592_v50  ;;  %v1863_v21 = vadd.f32 %v5617_v29, %v1862_v43 }
 0x4ae   : > { %v5635_v41 = vadd.f32 %v1871_v52, %v6596_v18  ;;  %v6624_v18 = vld [vmem:[#allocation28_spill] sm:$0xff] }
 0x4af   : > { %v5627_v9 = vadd.f32 %v1863_v21, %v6593_v3  ;;  %2018 = vadd.xlane.f32.xlu0 %v5622_v22  ;;  %v6622_v21 = vld [vmem:[#allocation27_spill] sm:$0xff] }
 0x4b0   : > { %6597 = vst [vmem:[#allocation44_spill] sm:$0xff] %v5635_v41 }
 0x4b1   : > { %6594 = vst [vmem:[#allocation43_spill] sm:$0xff] %v5627_v9  ;;  %2020 = vadd.xlane.f32.xlu1 %v5627_v9 }
 0x4b3   : > { %2022 = vadd.xlane.f32.xlu0 %v5631_v14 }
 0x4b5   : > { %2024 = vadd.xlane.f32.xlu1 %v5635_v41 }
 0x4c1   : > { %v3226_v30 = vpop.f32.mrb[20].mxu1 }
 0x4c2   : > { %v1875_v38 = vpop.f32.mrb[21].mxu1  ;;  %v1884_v19 = vadd.f32 %v3226_v30, %v5617_v29 }
 0x4c3   : > { %v1876_v45 = vadd.f32 %v5617_v29, %v1875_v38  ;;  %v3227_v17 = vpop.f32.mrb[22].mxu1  ;;  %v6626_v38 = vld [vmem:[#allocation29_spill] sm:$0xff] }
 0x4c4   : > { %v1878_v32 = vpop.f32.mrb[23].mxu1  ;;  %v1887_v44 = vadd.f32 %v3227_v17, %v5617_v29  ;;  %v5651_v2 = vadd.f32 %v1884_v19, %v6602_v10  ;;  %v6628_v19 = vld [vmem:[#allocation30_spill] sm:$0xff] }
 0x4c5   : > { %v5642_v49 = vadd.f32 %v1876_v45, %v6598_v16  ;;  %v1879_v63 = vadd.f32 %v5617_v29, %v1878_v32 }
 0x4c6   : > { %6603 = vst [vmem:[#allocation12_spill] sm:$0xff] %v5651_v2  ;;  %v5655_v61 = vadd.f32 %v1887_v44, %v6604_v28  ;;  %v6630_v28 = vld [vmem:[#allocation31_spill] sm:$0xff] }
 0x4c7   : > { %6599 = vst [vmem:[#allocation46_spill] sm:$0xff] %v5642_v49  ;;  %v5647_v24 = vadd.f32 %v1879_v63, %v6600_v6  ;;  %2026 = vadd.xlane.f32.xlu0 %v5642_v49 }
 0x4c8   : > { %6605 = vst [vmem:[#allocation14_spill] sm:$0xff] %v5655_v61 }
 0x4c9   : > { %6601 = vst [vmem:[#allocation45_spill] sm:$0xff] %v5647_v24  ;;  %2028 = vadd.xlane.f32.xlu1 %v5647_v24 }
 0x4cb   : > { %2030 = vadd.xlane.f32.xlu0 %v5651_v2 }
 0x4cd   : > { %2032 = vadd.xlane.f32.xlu1 %v5655_v61 }
 0x4dd   : > { %v3230_v60 = vpop.f32.mrb[24].mxu1 }
 0x4de   : > { %v1891_v11 = vpop.f32.mrb[25].mxu1  ;;  %v1900_v51 = vadd.f32 %v3230_v60, %v5617_v29 }
 0x4df   : > { %v1892_v55 = vadd.f32 %v5617_v29, %v1891_v11  ;;  %v3231_v27 = vpop.f32.mrb[26].mxu1 }
 0x4e0   : > { %v1894_v46 = vpop.f32.mrb[27].mxu1  ;;  %v1903_v33 = vadd.f32 %v3231_v27, %v5617_v29  ;;  %v5671_v36 = vadd.f32 %v1900_v51, %v6610_v48  ;;  %v6632_v27 = vld [vmem:[#allocation32_spill] sm:$0xff]  ;;  %v6634_v51 = vld [vmem:[#allocation33_spill] sm:$0xff] }
 0x4e1   : > { %v5662_v40 = vadd.f32 %v1892_v55, %v6606_v15  ;;  %v1895_v25 = vadd.f32 %v5617_v29, %v1894_v46 }
 0x4e2   : > { %6611 = vst [vmem:[#allocation16_spill] sm:$0xff] %v5671_v36  ;;  %v5675_v62 = vadd.f32 %v1903_v33, %v6612_v37 }
 0x4e3   : > { %6607 = vst [vmem:[#allocation11_spill] sm:$0xff] %v5662_v40  ;;  %v5667_v35 = vadd.f32 %v1895_v25, %v6608_v26  ;;  %2034 = vadd.xlane.f32.xlu0 %v5662_v40  ;;  %v6636_v26 = vld [vmem:[#allocation34_spill] sm:$0xff] }
 0x4e4   : > { %6613 = vst [vmem:[#allocation15_spill] sm:$0xff] %v5675_v62 }
 0x4e5   : > { %6609 = vst [vmem:[#allocation13_spill] sm:$0xff] %v5667_v35  ;;  %2036 = vadd.xlane.f32.xlu1 %v5667_v35 }
 0x4e7   : > { %2038 = vadd.xlane.f32.xlu0 %v5671_v36 }
 0x4e8   : > { %v3234_v8 = vpop.f32.mrb[28].mxu1 }
 0x4e9   : > { %v1907_v58 = vpop.f32.mrb[29].mxu1  ;;  %2040 = vadd.xlane.f32.xlu1 %v5675_v62  ;;  %v1916_v59 = vadd.f32 %v3234_v8, %v5617_v29 }
 0x4ea   : > { %v1908_v31 = vadd.f32 %v5617_v29, %v1907_v58  ;;  %v3235_v7 = vpop.f32.mrb[30].mxu1 }
 0x4eb   : > { %v1910_v12 = vpop.f32.mrb[31].mxu1  ;;  %v1919_v42 = vadd.f32 %v3235_v7, %v5617_v29  ;;  %v5691_v53 = vadd.f32 %v1916_v59, %v6618_v23  ;;  %v6638_v7 = vld [vmem:[#allocation35_spill] sm:$0xff] }
 0x4ec   : > { %v5682_v47 = vadd.f32 %v1908_v31, %v6614_v34  ;;  %v1911_v56 = vadd.f32 %v5617_v29, %v1910_v12 }
 0x4ed   : > { %6619 = vst [vmem:[#allocation19_spill] sm:$0xff] %v5691_v53  ;;  %v5695_v13 = vadd.f32 %v1919_v42, %v6620_v4  ;;  %v6644_v4 = vld [vmem:[#allocation38_spill] sm:$0xff] }
 0x4ee   : > { %6615 = vst [vmem:[#allocation17_spill] sm:$0xff] %v5682_v47  ;;  %v5687_v0 = vadd.f32 %v1911_v56, %v6616_v20  ;;  %2042 = vadd.xlane.f32.xlu0 %v5682_v47  ;;  %v6640_v56 = vld [vmem:[#allocation36_spill] sm:$0xff]  ;;  %v6642_v20 = vld [vmem:[#allocation37_spill] sm:$0xff] }
 0x4ef   : > { %6621 = vst [vmem:[#allocation20_spill] sm:$0xff] %v5695_v13 }
 0x4f0   : > { %6617 = vst [vmem:[#allocation18_spill] sm:$0xff] %v5687_v0  ;;  %2044 = vadd.xlane.f32.xlu1 %v5687_v0  ;;  %v3238_v57 = vpop.f32.mrb[32].mxu1 }
 0x4f1   : > { %v1923_v1 = vpop.f32.mrb[33].mxu1  ;;  %v1932_v50 = vadd.f32 %v3238_v57, %v5617_v29 }
 0x4f2   : > { %v1924_v54 = vadd.f32 %v5617_v29, %v1923_v1  ;;  %2046 = vadd.xlane.f32.xlu0 %v5691_v53  ;;  %v3239_v43 = vpop.f32.mrb[34].mxu1 }
 0x4f3   : > { %v1926_v39 = vpop.f32.mrb[35].mxu1  ;;  %v1935_v5 = vadd.f32 %v3239_v43, %v5617_v29  ;;  %v5711_v45 = vadd.f32 %v1932_v50, %v6626_v38 }
 0x4f4   : > { %v5701_v52 = vadd.f32 %v1924_v54, %v6622_v21  ;;  %v1927_v3 = vadd.f32 %v5617_v29, %v1926_v39  ;;  %2048 = vadd.xlane.f32.xlu1 %v5695_v13 }
 0x4f5   : > { %6627 = vst [vmem:[#allocation23_spill] sm:$0xff] %v5711_v45  ;;  %v5715_v16 = vadd.f32 %v1935_v5, %v6628_v19  ;;  %v6650_v19 = vld [vmem:[#allocation41_spill] sm:$0xff] }
 0x4f6   : > { %6623 = vst [vmem:[#allocation21_spill] sm:$0xff] %v5701_v52  ;;  %v5707_v30 = vadd.f32 %v1927_v3, %v6624_v18  ;;  %2050 = vadd.xlane.f32.xlu0 %v5701_v52  ;;  %v6646_v3 = vld [vmem:[#allocation39_spill] sm:$0xff] }
 0x4f7   : > { %6629 = vst [vmem:[#allocation24_spill] sm:$0xff] %v5715_v16 }
 0x4f8   : > { %6625 = vst [vmem:[#allocation22_spill] sm:$0xff] %v5707_v30  ;;  %2052 = vadd.xlane.f32.xlu1 %v5707_v30  ;;  %v3242_v17 = vpop.f32.mrb[36].mxu1 }
 0x4f9   : > { %v1939_v32 = vpop.f32.mrb[37].mxu1  ;;  %v1948_v10 = vadd.f32 %v3242_v17, %v5617_v29  ;;  %v6648_v17 = vld [vmem:[#allocation40_spill] sm:$0xff] }
 0x4fa   : > { %v1940_v63 = vadd.f32 %v5617_v29, %v1939_v32  ;;  %2054 = vadd.xlane.f32.xlu0 %v5711_v45  ;;  %v3243_v44 = vpop.f32.mrb[38].mxu1 }
 0x4fb   : > { %v1942_v6 = vpop.f32.mrb[39].mxu1  ;;  %v1951_v55 = vadd.f32 %v3243_v44, %v5617_v29  ;;  %v5731_v15 = vadd.f32 %v1948_v10, %v6634_v51  ;;  %v6652_v44 = vld [vmem:[#allocation42_spill] sm:$0xff] }
 0x4fc   : > { %v5721_v60 = vadd.f32 %v1940_v63, %v6630_v28  ;;  %v1943_v11 = vadd.f32 %v5617_v29, %v1942_v6  ;;  %2056 = vadd.xlane.f32.xlu1 %v5715_v16 }
 0x4fd   : > { %6635 = vst [vmem:[#allocation27_spill] sm:$0xff] %v5731_v15  ;;  %v5735_v48 = vadd.f32 %v1951_v55, %v6636_v26 }
 0x4fe   : > { %6631 = vst [vmem:[#allocation25_spill] sm:$0xff] %v5721_v60  ;;  %v5727_v46 = vadd.f32 %v1943_v11, %v6632_v27  ;;  %2058 = vadd.xlane.f32.xlu0 %v5721_v60 }
 0x4ff   : > { %6637 = vst [vmem:[#allocation28_spill] sm:$0xff] %v5735_v48 }
 0x500   : > { %6633 = vst [vmem:[#allocation26_spill] sm:$0xff] %v5727_v46  ;;  %2060 = vadd.xlane.f32.xlu1 %v5727_v46  ;;  %v3246_v25 = vpop.f32.mrb[40].mxu1 }
 0x501   : > { %v1955_v33 = vpop.f32.mrb[41].mxu1  ;;  %v1964_v31 = vadd.f32 %v3246_v25, %v5617_v29 }
 0x502   : > { %v1956_v8 = vadd.f32 %v5617_v29, %v1955_v33  ;;  %2062 = vadd.xlane.f32.xlu0 %v5731_v15  ;;  %v3247_v37 = vpop.f32.mrb[42].mxu1 }
 0x503   : > { %v1958_v58 = vpop.f32.mrb[43].mxu1  ;;  %v1967_v34 = vadd.f32 %v3247_v37, %v5617_v29  ;;  %v5751_v23 = vadd.f32 %v1964_v31, %v6642_v20 }
 0x504   : > { %v5741_v12 = vadd.f32 %v1956_v8, %v6638_v7  ;;  %v1959_v59 = vadd.f32 %v5617_v29, %v1958_v58  ;;  %2064 = vadd.xlane.f32.xlu1 %v5735_v48 }
 0x505   : > { %6643 = vst [vmem:[#allocation31_spill] sm:$0xff] %v5751_v23  ;;  %v5755_v54 = vadd.f32 %v1967_v34, %v6644_v4 }
 0x506   : > { %6639 = vst [vmem:[#allocation29_spill] sm:$0xff] %v5741_v12  ;;  %v5747_v42 = vadd.f32 %v1959_v59, %v6640_v56  ;;  %2066 = vadd.xlane.f32.xlu0 %v5741_v12 }
 0x507   : > { %6645 = vst [vmem:[#allocation32_spill] sm:$0xff] %v5755_v54 }
 0x508   : > { %6641 = vst [vmem:[#allocation30_spill] sm:$0xff] %v5747_v42  ;;  %2068 = vadd.xlane.f32.xlu1 %v5747_v42  ;;  %v3250_v57 = vpop.f32.mrb[44].mxu1 }
 0x509   : > { %v1971_v1 = vpop.f32.mrb[45].mxu1  ;;  %v1980_v21 = vadd.f32 %v3250_v57, %v5617_v29 }
 0x50a   : > { %v1972_v43 = vadd.f32 %v5617_v29, %v1971_v1  ;;  %2070 = vadd.xlane.f32.xlu0 %v5751_v23  ;;  %v3251_v39 = vpop.f32.mrb[46].mxu1 }
 0x50b   : > { %v1974_v50 = vpop.f32.mrb[47].mxu1  ;;  %v1983_v38 = vadd.f32 %v3251_v39, %v5617_v29  ;;  %v5771_v63 = vadd.f32 %v1980_v21, %v6650_v19 }
 0x50c   : > { %v5761_v5 = vadd.f32 %v1972_v43, %v6646_v3  ;;  %v1975_v18 = vadd.f32 %v5617_v29, %v1974_v50  ;;  %2072 = vadd.xlane.f32.xlu1 %v5755_v54 }
 0x50d   : > { %6651 = vst [vmem:[#allocation35_spill] sm:$0xff] %v5771_v63  ;;  %v5775_v6 = vadd.f32 %v1983_v38, %v6652_v44 }
 0x50e   : > { %6647 = vst [vmem:[#allocation33_spill] sm:$0xff] %v5761_v5  ;;  %v5767_v32 = vadd.f32 %v1975_v18, %v6648_v17  ;;  %2074 = vadd.xlane.f32.xlu0 %v5761_v5 }
 0x50f   : > { %6653 = vst [vmem:[#allocation36_spill] sm:$0xff] %v5775_v6 }
 0x510   : > { %6649 = vst [vmem:[#allocation34_spill] sm:$0xff] %v5767_v32  ;;  %2076 = vadd.xlane.f32.xlu1 %v5767_v32 }
 0x512   : > { %2078 = vadd.xlane.f32.xlu0 %v5771_v63 }
 0x514   : > { %2080 = vadd.xlane.f32.xlu1 %v5775_v6 }
 0x53c   : > { %v2019_v10 = vpop.xlane.xlu0 %2018 }
 0x53d   : > { %v2082_v28 = vmul.f32 0.0078125, %v2019_v10 }
 0x53e   : > { %v2021_v29 = vpop.xlane.xlu1 %2020 }
 0x53f   : > { %v5780_v11 = vsub.f32 %v5622_v22, %v2082_v28  ;;  %v2083_v55 = vmul.f32 0.0078125, %v2021_v29  ;;  %v3395_v29 = vld [vmem:[#allocation5 + $0x80] sm:$0xff]  }
 0x540   : > { %v2023_v27 = vpop.xlane.xlu0 %2022  ;;  %3252 = vmatprep.subr.bf16.mxu0 %v3395_v29 }
 0x541   : > { %v5783_v51 = vsub.f32 %v5627_v9, %v2083_v55  ;;  %v2084_v25 = vmul.f32 0.0078125, %v2023_v27  ;;  %v2146_v33 = vmul.f32 %v5780_v11, %v5780_v11  ;;  %3253 = vmatpush3.bf16.msra.mxu0 %v3395_v29 }
 0x542   : > { %v2025_v26 = vpop.xlane.xlu1 %2024 }
 0x543   : > { %v5788_v8 = vsub.f32 %v5631_v14, %v2084_v25  ;;  %v2085_v37 = vmul.f32 0.0078125, %v2025_v26  ;;  %2178 = vadd.xlane.f32.xlu0 %v2146_v33  ;;  %v2147_v58 = vmul.f32 %v5783_v51, %v5783_v51 }
 0x545   : > { %v5793_v31 = vsub.f32 %v5635_v41, %v2085_v37  ;;  %2180 = vadd.xlane.f32.xlu1 %v2147_v58  ;;  %v2148_v7 = vmul.f32 %v5788_v8, %v5788_v8 }
 0x547   : > { %2182 = vadd.xlane.f32.xlu0 %v2148_v7  ;;  %v2149_v59 = vmul.f32 %v5793_v31, %v5793_v31 }
 0x549   : > { %2184 = vadd.xlane.f32.xlu1 %v2149_v59 }
 0x554   : > { %v2027_v34 = vpop.xlane.xlu0 %2026 }
 0x555   : > { %v2086_v56 = vmul.f32 0.0078125, %v2027_v34 }
 0x556   : > { %v2029_v20 = vpop.xlane.xlu1 %2028 }
 0x557   : > { %v5800_v57 = vsub.f32 %v5642_v49, %v2086_v56  ;;  %v2087_v1 = vmul.f32 0.0078125, %v2029_v20 }
 0x558   : > { %v2031_v4 = vpop.xlane.xlu0 %2030 }
 0x559   : > { %v5803_v43 = vsub.f32 %v5647_v24, %v2087_v1  ;;  %v2088_v39 = vmul.f32 0.0078125, %v2031_v4  ;;  %v2150_v50 = vmul.f32 %v5800_v57, %v5800_v57 }
 0x55a   : > { %v2033_v21 = vpop.xlane.xlu1 %2032 }
 0x55b   : > { %v5808_v3 = vsub.f32 %v5651_v2, %v2088_v39  ;;  %v2089_v18 = vmul.f32 0.0078125, %v2033_v21  ;;  %2186 = vadd.xlane.f32.xlu0 %v2150_v50  ;;  %v2151_v38 = vmul.f32 %v5803_v43, %v5803_v43 }
 0x55d   : > { %v5813_v17 = vsub.f32 %v5655_v61, %v2089_v18  ;;  %2188 = vadd.xlane.f32.xlu1 %v2151_v38  ;;  %v2152_v19 = vmul.f32 %v5808_v3, %v5808_v3 }
 0x55f   : > { %2190 = vadd.xlane.f32.xlu0 %v2152_v19  ;;  %v2153_v44 = vmul.f32 %v5813_v17, %v5813_v17 }
 0x561   : > { %2192 = vadd.xlane.f32.xlu1 %v2153_v44 }
 0x570   : > { %v2035_v10 = vpop.xlane.xlu0 %2034 }
 0x571   : > { %v2090_v28 = vmul.f32 0.0078125, %v2035_v10 }
 0x572   : > { %v2037_v55 = vpop.xlane.xlu1 %2036 }
 0x573   : > { %v5820_v27 = vsub.f32 %v5662_v40, %v2090_v28  ;;  %v2091_v25 = vmul.f32 0.0078125, %v2037_v55  ;;  %v3396_v55 = vld [vmem:[#allocation5 + $0x88] sm:$0xff]  }
 0x574   : > { %v2039_v33 = vpop.xlane.xlu0 %2038  ;;  %3254 = vmatprep.subr.bf16.mxu0 %v3396_v55 }
 0x575   : > { %v5823_v26 = vsub.f32 %v5667_v35, %v2091_v25  ;;  %v2092_v37 = vmul.f32 0.0078125, %v2039_v33  ;;  %v2154_v58 = vmul.f32 %v5820_v27, %v5820_v27  ;;  %3255 = vmatpush3.bf16.msra.mxu0 %v3396_v55 }
 0x576   : > { %v2041_v7 = vpop.xlane.xlu1 %2040 }
 0x577   : > { %v5828_v59 = vsub.f32 %v5671_v36, %v2092_v37  ;;  %v2093_v34 = vmul.f32 0.0078125, %v2041_v7  ;;  %2194 = vadd.xlane.f32.xlu0 %v2154_v58  ;;  %v2155_v56 = vmul.f32 %v5823_v26, %v5823_v26 }
 0x579   : > { %v5833_v20 = vsub.f32 %v5675_v62, %v2093_v34  ;;  %2196 = vadd.xlane.f32.xlu1 %v2155_v56  ;;  %v2156_v4 = vmul.f32 %v5828_v59, %v5828_v59 }
 0x57b   : > { %v2043_v1 = vpop.xlane.xlu0 %2042  ;;  %2198 = vadd.xlane.f32.xlu0 %v2156_v4  ;;  %v2157_v21 = vmul.f32 %v5833_v20, %v5833_v20  ;;  %v3397_v4 = vld [vmem:[#allocation5 + $0x90] sm:$0xff]  }
 0x57c   : > { %v2094_v39 = vmul.f32 0.0078125, %v2043_v1  ;;  %3256 = vmatprep.subr.bf16.mxu0 %v3397_v4 }
 0x57d   : > { %v2045_v50 = vpop.xlane.xlu1 %2044  ;;  %2200 = vadd.xlane.f32.xlu1 %v2157_v21  ;;  %3257 = vmatpush3.bf16.msra.mxu0 %v3397_v4 }
 0x57e   : > { %v5840_v18 = vsub.f32 %v5682_v47, %v2094_v39  ;;  %v2095_v38 = vmul.f32 0.0078125, %v2045_v50 }
 0x57f   : > { %v2047_v19 = vpop.xlane.xlu0 %2046 }
 0x580   : > { %v5843_v44 = vsub.f32 %v5687_v0, %v2095_v38  ;;  %v2096_v10 = vmul.f32 0.0078125, %v2047_v19  ;;  %v2158_v28 = vmul.f32 %v5840_v18, %v5840_v18 }
 0x581   : > { %v2049_v29 = vpop.xlane.xlu1 %2048 }
 0x582   : > { %v5848_v25 = vsub.f32 %v5691_v53, %v2096_v10  ;;  %v2097_v33 = vmul.f32 0.0078125, %v2049_v29  ;;  %2202 = vadd.xlane.f32.xlu0 %v2158_v28  ;;  %v2159_v37 = vmul.f32 %v5843_v44, %v5843_v44 }
 0x583   : > { %v2051_v58 = vpop.xlane.xlu0 %2050 }
 0x584   : > { %v5853_v7 = vsub.f32 %v5695_v13, %v2097_v33  ;;  %v2098_v34 = vmul.f32 0.0078125, %v2051_v58  ;;  %2204 = vadd.xlane.f32.xlu1 %v2159_v37  ;;  %v2160_v56 = vmul.f32 %v5848_v25, %v5848_v25 }
 0x585   : > { %v2053_v1 = vpop.xlane.xlu1 %2052 }
 0x586   : > { %v5858_v39 = vsub.f32 %v5701_v52, %v2098_v34  ;;  %v2099_v50 = vmul.f32 0.0078125, %v2053_v1  ;;  %2206 = vadd.xlane.f32.xlu0 %v2160_v56  ;;  %v2161_v21 = vmul.f32 %v5853_v7, %v5853_v7 }
 0x587   : > { %v2055_v38 = vpop.xlane.xlu0 %2054 }
 0x588   : > { %v5863_v19 = vsub.f32 %v5707_v30, %v2099_v50  ;;  %v2100_v10 = vmul.f32 0.0078125, %v2055_v38  ;;  %2208 = vadd.xlane.f32.xlu1 %v2161_v21  ;;  %v2162_v28 = vmul.f32 %v5858_v39, %v5858_v39  ;;  %v3398_v50 = vld [vmem:[#allocation5 + $0x98] sm:$0xff]  }
 0x589   : > { %v2057_v29 = vpop.xlane.xlu1 %2056  ;;  %3258 = vmatprep.subr.bf16.mxu0 %v3398_v50 }
 0x58a   : > { %v5868_v55 = vsub.f32 %v5711_v45, %v2100_v10  ;;  %v2101_v33 = vmul.f32 0.0078125, %v2057_v29  ;;  %2210 = vadd.xlane.f32.xlu0 %v2162_v28  ;;  %v2163_v37 = vmul.f32 %v5863_v19, %v5863_v19  ;;  %3259 = vmatpush3.bf16.msra.mxu0 %v3398_v50 }
 0x58b   : > { %v2059_v58 = vpop.xlane.xlu0 %2058 }
 0x58c   : > { %v5873_v34 = vsub.f32 %v5715_v16, %v2101_v33  ;;  %v2102_v56 = vmul.f32 0.0078125, %v2059_v58  ;;  %2212 = vadd.xlane.f32.xlu1 %v2163_v37  ;;  %v2164_v1 = vmul.f32 %v5868_v55, %v5868_v55  ;;  %v3399_v58 = vld [vmem:[#allocation5 + $0xa0] sm:$0xff]  }
 0x58d   : > { %v2061_v4 = vpop.xlane.xlu1 %2060  ;;  %3260 = vmatprep.subr.bf16.mxu0 %v3399_v58 }
 0x58e   : > { %v5878_v21 = vsub.f32 %v5721_v60, %v2102_v56  ;;  %v2103_v38 = vmul.f32 0.0078125, %v2061_v4  ;;  %2214 = vadd.xlane.f32.xlu0 %v2164_v1  ;;  %v2165_v10 = vmul.f32 %v5873_v34, %v5873_v34  ;;  %3261 = vmatpush3.bf16.msra.mxu0 %v3399_v58 }
 0x58f   : > { %v2063_v28 = vpop.xlane.xlu0 %2062 }
 0x590   : > { %v5883_v29 = vsub.f32 %v5727_v46, %v2103_v38  ;;  %v2104_v33 = vmul.f32 0.0078125, %v2063_v28  ;;  %2216 = vadd.xlane.f32.xlu1 %v2165_v10  ;;  %v2166_v37 = vmul.f32 %v5878_v21, %v5878_v21  ;;  %v3400_v46 = vld [vmem:[#allocation5 + $0xa8] sm:$0xff]  }
 0x591   : > { %v2065_v30 = vpop.xlane.xlu1 %2064  ;;  %3262 = vmatprep.subr.bf16.mxu0 %v3400_v46 }
 0x592   : > { %v5888_v56 = vsub.f32 %v5731_v15, %v2104_v33  ;;  %v2105_v1 = vmul.f32 0.0078125, %v2065_v30  ;;  %2218 = vadd.xlane.f32.xlu0 %v2166_v37  ;;  %v2167_v4 = vmul.f32 %v5883_v29, %v5883_v29  ;;  %3263 = vmatpush3.bf16.msra.mxu0 %v3400_v46 }
 0x593   : > { %v2067_v50 = vpop.xlane.xlu0 %2066 }
 0x594   : > { %v5893_v38 = vsub.f32 %v5735_v48, %v2105_v1  ;;  %v2106_v10 = vmul.f32 0.0078125, %v2067_v50  ;;  %2220 = vadd.xlane.f32.xlu1 %v2167_v4  ;;  %v2168_v28 = vmul.f32 %v5888_v56, %v5888_v56  ;;  %v3401_v48 = vld [vmem:[#allocation5 + $0xb0] sm:$0xff]  }
 0x595   : > { %v2069_v60 = vpop.xlane.xlu1 %2068  ;;  %3264 = vmatprep.subr.bf16.mxu0 %v3401_v48 }
 0x596   : > { %v5898_v33 = vsub.f32 %v5741_v12, %v2106_v10  ;;  %v2107_v30 = vmul.f32 0.0078125, %v2069_v60  ;;  %2222 = vadd.xlane.f32.xlu0 %v2168_v28  ;;  %v2169_v37 = vmul.f32 %v5893_v38, %v5893_v38  ;;  %3265 = vmatpush3.bf16.msra.mxu0 %v3401_v48 }
 0x597   : > { %v2071_v58 = vpop.xlane.xlu0 %2070 }
 0x598   : > { %v5903_v1 = vsub.f32 %v5747_v42, %v2107_v30  ;;  %v2108_v4 = vmul.f32 0.0078125, %v2071_v58  ;;  %2224 = vadd.xlane.f32.xlu1 %v2169_v37  ;;  %v2170_v50 = vmul.f32 %v5898_v33, %v5898_v33  ;;  %v3402_v42 = vld [vmem:[#allocation5 + $0xb8] sm:$0xff]  }
 0x599   : > { %v2073_v15 = vpop.xlane.xlu1 %2072  ;;  %3266 = vmatprep.subr.bf16.mxu0 %v3402_v42 }
 0x59a   : > { %v5908_v10 = vsub.f32 %v5751_v23, %v2108_v4  ;;  %v2109_v60 = vmul.f32 0.0078125, %v2073_v15  ;;  %2226 = vadd.xlane.f32.xlu0 %v2170_v50  ;;  %v2171_v28 = vmul.f32 %v5903_v1, %v5903_v1  ;;  %3267 = vmatpush3.bf16.msra.mxu0 %v3402_v42 }
 0x59b   : > { %v2075_v46 = vpop.xlane.xlu0 %2074 }
 0x59c   : > { %v5913_v30 = vsub.f32 %v5755_v54, %v2109_v60  ;;  %v2110_v37 = vmul.f32 0.0078125, %v2075_v46  ;;  %2228 = vadd.xlane.f32.xlu1 %v2171_v28  ;;  %v2172_v58 = vmul.f32 %v5908_v10, %v5908_v10 }
 0x59d   : > { %v2077_v12 = vpop.xlane.xlu1 %2076 }
 0x59e   : > { %v5918_v4 = vsub.f32 %v5761_v5, %v2110_v37  ;;  %v2111_v15 = vmul.f32 0.0078125, %v2077_v12  ;;  %2230 = vadd.xlane.f32.xlu0 %v2172_v58  ;;  %v2173_v50 = vmul.f32 %v5913_v30, %v5913_v30 }
 0x59f   : > { %v2079_v48 = vpop.xlane.xlu0 %2078 }
 0x5a0   : > { %v5923_v60 = vsub.f32 %v5767_v32, %v2111_v15  ;;  %v2112_v28 = vmul.f32 0.0078125, %v2079_v48  ;;  %2232 = vadd.xlane.f32.xlu1 %v2173_v50  ;;  %v2174_v46 = vmul.f32 %v5918_v4, %v5918_v4 }
 0x5a1   : > { %v2081_v54 = vpop.xlane.xlu1 %2080 }
 0x5a2   : > { %v5928_v37 = vsub.f32 %v5771_v63, %v2112_v28  ;;  %v2113_v12 = vmul.f32 0.0078125, %v2081_v54  ;;  %2234 = vadd.xlane.f32.xlu0 %v2174_v46  ;;  %v2175_v58 = vmul.f32 %v5923_v60, %v5923_v60 }
 0x5a4   : > { %v5933_v5 = vsub.f32 %v5775_v6, %v2113_v12  ;;  %2236 = vadd.xlane.f32.xlu1 %v2175_v58  ;;  %v2176_v42 = vmul.f32 %v5928_v37, %v5928_v37 }
 0x5a6   : > { %2238 = vadd.xlane.f32.xlu0 %v2176_v42  ;;  %v2177_v15 = vmul.f32 %v5933_v5, %v5933_v5 }
 0x5a8   : > { %2240 = vadd.xlane.f32.xlu1 %v2177_v15 }
 0x5d0   : > { %v2179_v50 = vpop.xlane.xlu0 %2178 }
 0x5d1   : > { %v2242_v48 = vmul.f32 0.007874016, %v2179_v50 }
 0x5d2   : > { %v2181_v28 = vpop.xlane.xlu1 %2180 }
 0x5d3   : > { %3659 = vrsqrt.f32 %v2242_v48  ;;  %v2243_v54 = vmul.f32 0.007874016, %v2181_v28  ;;  %vm2276_vm14 = vcmp.eq.f32.partialorder %v2242_v48, inf  ;;  %v2279_v42 = vand.u32 2147483648, %v2242_v48 }
 0x5d4   : > { %v2183_v46 = vpop.xlane.xlu0 %2182  ;;  %vm2278_vm0 = vcmp.eq.f32.partialorder %v2242_v48, 0.0 }
 0x5d5   : > { %v2244_v32 = vmul.f32 0.007874016, %v2183_v46  ;;  %3661 = vrsqrt.f32 %v2243_v54  ;;  %vm2283_vm1 = vcmp.eq.f32.partialorder %v2243_v54, inf  ;;  %v2286_v45 = vand.u32 2147483648, %v2243_v54 }
 0x5d6   : > { %v2185_v63 = vpop.xlane.xlu1 %2184  ;;  %vm2285_vm2 = vcmp.eq.f32.partialorder %v2243_v54, 0.0 }
 0x5d7   : > { %3663 = vrsqrt.f32 %v2244_v32  ;;  %v2245_v12 = vmul.f32 0.007874016, %v2185_v63  ;;  %vm2290_vm4 = vcmp.eq.f32.partialorder %v2244_v32, inf  ;;  %v2293_v13 = vand.u32 2147483648, %v2244_v32 }
 0x5d8   : > { %vm2292_vm5 = vcmp.eq.f32.partialorder %v2244_v32, 0.0 }
 0x5d9   : > { %3665 = vrsqrt.f32 %v2245_v12  ;;  %vm2297_vm6 = vcmp.eq.f32.partialorder %v2245_v12, inf  ;;  %vm2299_vm7 = vcmp.eq.f32.partialorder %v2245_v12, 0.0 }
 0x5dd   : > { %v3660_v58 = vpop.eup %3659 }
 0x5de   : > { %v2275_v6 = vmul.f32 %v3660_v58, %v2242_v48 }
 0x5df   : > { %v3662_v23 = vpop.eup %3661 }
 0x5e0   : > { %v2277_v16 = vsel %vm2276_vm14, %v2242_v48, %v2275_v6  ;;  %v2282_v52 = vmul.f32 %v3662_v23, %v2243_v54  ;;  %v2300_v23 = vand.u32 2147483648, %v2245_v12 }
 0x5e1   : > { %v3664_v15 = vpop.eup %3663  ;;  %v2280_v50 = vsel %vm2278_vm0, %v2279_v42, %v2277_v16 }
 0x5e2   : > { %v2289_v28 = vmul.f32 %v3664_v15, %v2244_v32  ;;  %v2498_v0 = vadd.f32 1e-06, %v2280_v50  ;;  %v2284_v46 = vsel %vm2283_vm1, %v2243_v54, %v2282_v52 }
 0x5e3   : > { %v3666_v63 = vpop.eup %3665  ;;  %v2287_v58 = vsel %vm2285_vm2, %v2286_v45, %v2284_v46 }
 0x5e4   : > { %v2291_v47 = vsel %vm2290_vm4, %v2244_v32, %v2289_v28  ;;  %v2296_v35 = vmul.f32 %v3666_v63, %v2245_v12  ;;  %v2499_v62 = vadd.f32 1e-06, %v2287_v58  ;;  %3667 = vrcp.f32 %v2498_v0 }
 0x5e5   : > { %v2294_v53 = vsel %vm2292_vm5, %v2293_v13, %v2291_v47 }
 0x5e6   : > { %v2500_v6 = vadd.f32 1e-06, %v2294_v53  ;;  %v2298_v48 = vsel %vm2297_vm6, %v2245_v12, %v2296_v35  ;;  %3669 = vrcp.f32 %v2499_v62 }
 0x5e7   : > { %v2301_v52 = vsel %vm2299_vm7, %v2300_v23, %v2298_v48 }
 0x5e8   : > { %v2187_v16 = vpop.xlane.xlu0 %2186  ;;  %3671 = vrcp.f32 %v2500_v6  ;;  %v2501_v15 = vadd.f32 1e-06, %v2301_v52 }
 0x5e9   : > { %v2246_v42 = vmul.f32 0.007874016, %v2187_v16 }
 0x5ea   : > { %v2189_v54 = vpop.xlane.xlu1 %2188 }
 0x5eb   : > { %3673 = vrsqrt.f32 %v2246_v42  ;;  %v2247_v50 = vmul.f32 0.007874016, %v2189_v54  ;;  %vm2304_vm8 = vcmp.eq.f32.partialorder %v2246_v42, inf  ;;  %v2307_v6 = vand.u32 2147483648, %v2246_v42 }
 0x5ec   : > { %v2191_v32 = vpop.xlane.xlu0 %2190  ;;  %3675 = vrcp.f32 %v2501_v15  ;;  %vm2306_vm15 = vcmp.eq.f32.partialorder %v2246_v42, 0.0 }
 0x5ed   : > { %v2248_v47 = vmul.f32 0.007874016, %v2191_v32  ;;  %3677 = vrsqrt.f32 %v2247_v50  ;;  %vm2311_vm9 = vcmp.eq.f32.partialorder %v2247_v50, inf  ;;  %vm2313_vm3 = vcmp.eq.f32.partialorder %v2247_v50, 0.0 }
 0x5ee   : > { %v2193_v13 = vpop.xlane.xlu1 %2192  ;;  %v3668_v53 = vpop.eup %3667 }
 0x5ef   : > { %3679 = vrsqrt.f32 %v2248_v47  ;;  %v2249_v0 = vmul.f32 0.007874016, %v2193_v13  ;;  %v2594_v12 = vmul.f32 %v3668_v53, %v5780_v11  ;;  %v2314_v11 = vand.u32 2147483648, %v2247_v50 }
 0x5f0   : > { %v3670_v45 = vpop.eup %3669  ;;  %vm2318_vm10 = vcmp.eq.f32.partialorder %v2248_v47, inf  ;;  %vm2320_vm11 = vcmp.eq.f32.partialorder %v2248_v47, 0.0 }
 0x5f1   : > { %3681 = vrsqrt.f32 %v2249_v0  ;;  %v2595_v62 = vmul.f32 %v3670_v45, %v5783_v51  ;;  %vm2325_vm12 = vcmp.eq.f32.partialorder %v2249_v0, inf  ;;  %vm2327_vm13 = vcmp.eq.f32.partialorder %v2249_v0, 0.0 }
 0x5f2   : > { %v3672_v35 = vpop.eup %3671 }
 0x5f3   : > { %v2626_v63 = vpack.c.bf16 %v2595_v62, %v2594_v12  ;;  %v2596_v48 = vmul.f32 %v3672_v35, %v5788_v8  ;;  %v2321_v62 = vand.u32 2147483648, %v2248_v47 }
 0x5f5   : > { %v3674_v28 = vpop.eup %3673  ;;  %3268 = vmatprep.mubr.bf16.mxu0 %v2626_v63 }
 0x5f6   : > { %v2303_v46 = vmul.f32 %v3674_v28, %v2246_v42  ;;  %v3676_v58 = vpop.eup %3675 }
 0x5f7   : > { %v3678_v23 = vpop.eup %3677  ;;  %v2597_v52 = vmul.f32 %v3676_v58, %v5793_v31  ;;  %v2328_v31 = vand.u32 2147483648, %v2249_v0 }
 0x5f8   : > { %v2305_v16 = vsel %vm2304_vm8, %v2246_v42, %v2303_v46  ;;  %v2310_v15 = vmul.f32 %v3678_v23, %v2247_v50 }
 0x5f9   : > { %v3680_v54 = vpop.eup %3679  ;;  %v2308_v32 = vsel %vm2306_vm15, %v2307_v6, %v2305_v16  ;;  %v2627_v13 = vpack.c.bf16 %v2597_v52, %v2596_v48 }
 0x5fa   : > { %v2317_v51 = vmul.f32 %v3680_v54, %v2248_v47  ;;  %v2312_v53 = vsel %vm2311_vm9, %v2247_v50, %v2310_v15  ;;  %v2502_v28 = vadd.f32 1e-06, %v2308_v32 }
 0x5fb   : > { %v3682_v45 = vpop.eup %3681  ;;  %3269 = vmatmul.mubr.bf16.vlgmr.msra.gmra.mrb[16].mxu0 %v2627_v13  ;;  %v2315_v42 = vsel %vm2313_vm3, %v2314_v11, %v2312_v53 }
 0x5fc   : > { %v2319_v12 = vsel %vm2318_vm10, %v2248_v47, %v2317_v51  ;;  %v2324_v8 = vmul.f32 %v3682_v45, %v2249_v0  ;;  %v2503_v35 = vadd.f32 1e-06, %v2315_v42 }
 0x5fd   : > { %v2322_v46 = vsel %vm2320_vm11, %v2321_v62, %v2319_v12 }
 0x5fe   : > { %v2326_v63 = vsel %vm2325_vm12, %v2249_v0, %v2324_v8  ;;  %3683 = vrcp.f32 %v2503_v35  ;;  %v2504_v23 = vadd.f32 1e-06, %v2322_v46 }
 0x5ff   : > { %3685 = vrcp.f32 %v2502_v28  ;;  %v2329_v6 = vsel %vm2327_vm13, %v2328_v31, %v2326_v63 }
 0x600   : > { %v2505_v16 = vadd.f32 1e-06, %v2329_v6 }
 0x604   : > { %v2195_v58 = vpop.xlane.xlu0 %2194 }
 0x605   : > { %v2250_v50 = vmul.f32 0.007874016, %v2195_v58 }
 0x606   : > { %v2197_v48 = vpop.xlane.xlu1 %2196 }
 0x607   : > { %3687 = vrsqrt.f32 %v2250_v50  ;;  %v2251_v52 = vmul.f32 0.007874016, %v2197_v48  ;;  %vm2332_vm14 = vcmp.eq.f32.partialorder %v2250_v50, inf  ;;  %vm2334_vm1 = vcmp.eq.f32.partialorder %v2250_v50, 0.0 }
 0x608   : > { %v2199_v54 = vpop.xlane.xlu0 %2198  ;;  %3689 = vrcp.f32 %v2505_v16  ;;  %v3684_v15 = vpop.eup %3683 }
 0x609   : > { %3691 = vrcp.f32 %v2504_v23  ;;  %v3686_v11 = vpop.eup %3685  ;;  %v5943_v51 = vmul.f32 0.007874016, %v2199_v54  ;;  %v2599_v13 = vmul.f32 %v3684_v15, %v5803_v43  ;;  %v2335_v15 = vand.u32 2147483648, %v2250_v50 }
 0x60a   : > { %3693 = vrsqrt.f32 %v2251_v52  ;;  %v2201_v47 = vpop.xlane.xlu1 %2200  ;;  %v2598_v62 = vmul.f32 %v3686_v11, %v5800_v57  ;;  %vm2339_vm0 = vcmp.eq.f32.partialorder %v2251_v52, inf  ;;  %vm2341_vm2 = vcmp.eq.f32.partialorder %v2251_v52, 0.0 }
 0x60b   : > { %v5946_v45 = vmul.f32 0.007874016, %v2201_v47  ;;  %3695 = vrsqrt.f32 %v5943_v51  ;;  %vm2346_vm4 = vcmp.eq.f32.partialorder %v5943_v51, inf  ;;  %vm2348_vm5 = vcmp.eq.f32.partialorder %v5943_v51, 0.0 }
 0x60c   : > { %v2628_v35 = vpack.c.bf16 %v2599_v13, %v2598_v62 }
 0x60d   : > { %3697 = vrsqrt.f32 %v5946_v45  ;;  %vm2353_vm6 = vcmp.eq.f32.partialorder %v5946_v45, inf  ;;  %vm2355_vm7 = vcmp.eq.f32.partialorder %v5946_v45, 0.0 }
 0x60e   : > { %3272 = vmatprep.mubr.bf16.mxu0 %v2628_v35 }
 0x60f   : > { %v2203_v32 = vpop.xlane.xlu0 %2202 }
 0x610   : > { %v5952_v58 = vmul.f32 0.007874016, %v2203_v32 }
 0x611   : > { %v2205_v0 = vpop.xlane.xlu1 %2204  ;;  %v3688_v53 = vpop.eup %3687 }
 0x612   : > { %v3690_v42 = vpop.eup %3689  ;;  %v2331_v46 = vmul.f32 %v3688_v53, %v2250_v50  ;;  %v5954_v23 = vmul.f32 0.007874016, %v2205_v0  ;;  %3699 = vrsqrt.f32 %v5952_v58  ;;  %v2342_v0 = vand.u32 2147483648, %v2251_v52 }
 0x613   : > { %v2207_v12 = vpop.xlane.xlu0 %2206  ;;  %v3692_v28 = vpop.eup %3691  ;;  %v2601_v63 = vmul.f32 %v3690_v42, %v5813_v17  ;;  %vm2360_vm8 = vcmp.eq.f32.partialorder %v5952_v58, inf  ;;  %vm2362_vm11 = vcmp.eq.f32.partialorder %v5952_v58, 0.0 }
 0x614   : > { %v3694_v31 = vpop.eup %3693  ;;  %v2600_v57 = vmul.f32 %v3692_v28, %v5808_v3  ;;  %v2333_v48 = vsel %vm2332_vm14, %v2250_v50, %v2331_v46  ;;  %v5957_v54 = vmul.f32 0.007874016, %v2207_v12  ;;  %3701 = vrsqrt.f32 %v5954_v23 }
 0x615   : > { %v2209_v8 = vpop.xlane.xlu1 %2208  ;;  %v2338_v6 = vmul.f32 %v3694_v31, %v2251_v52  ;;  %v2336_v53 = vsel %vm2334_vm1, %v2335_v15, %v2333_v48  ;;  %v3696_v12 = vpop.eup %3695  ;;  %vm2367_vm15 = vcmp.eq.f32.partialorder %v5954_v23, inf  ;;  %vm2369_vm12 = vcmp.eq.f32.partialorder %v5954_v23, 0.0 }
 0x616   : > { %v2629_v47 = vpack.c.bf16 %v2601_v63, %v2600_v57  ;;  %v5960_v17 = vmul.f32 0.007874016, %v2209_v8  ;;  %3703 = vrsqrt.f32 %v5957_v54  ;;  %v2506_v8 = vadd.f32 1e-06, %v2336_v53 }
 0x617   : > { %v2211_v43 = vpop.xlane.xlu0 %2210  ;;  %v2340_v11 = vsel %vm2339_vm0, %v2251_v52, %v2338_v6  ;;  %v3698_v35 = vpop.eup %3697  ;;  %v2345_v31 = vmul.f32 %v3696_v12, %v5943_v51  ;;  %vm2374_vm9 = vcmp.eq.f32.partialorder %v5957_v54, inf }
 0x618   : > { %3273 = vmatmul.mubr.bf16.gmra.mrb[20].mxu0 %v2629_v47  ;;  %v5963_v3 = vmul.f32 0.007874016, %v2211_v43  ;;  %3705 = vrsqrt.f32 %v5960_v17  ;;  %v2343_v28 = vsel %vm2341_vm2, %v2342_v0, %v2340_v11  ;;  %v2349_v43 = vand.u32 2147483648, %v5943_v51 }
 0x619   : > { %v2213_v16 = vpop.xlane.xlu1 %2212  ;;  %v2507_v52 = vadd.f32 1e-06, %v2343_v28  ;;  %v2347_v15 = vsel %vm2346_vm4, %v5943_v51, %v2345_v31  ;;  %vm2381_vm3 = vcmp.eq.f32.partialorder %v5960_v17, inf }
 0x61a   : > { %v5966_v62 = vmul.f32 0.007874016, %v2213_v16  ;;  %3707 = vrsqrt.f32 %v5963_v3  ;;  %v2352_v16 = vmul.f32 %v3698_v35, %v5946_v45  ;;  %vm2388_vm10 = vcmp.eq.f32.partialorder %v5963_v3, inf }
 0x61b   : > { %v2215_v32 = vpop.xlane.xlu0 %2214 }
 0x61c   : > { %v5969_v42 = vmul.f32 0.007874016, %v2215_v32  ;;  %3709 = vrsqrt.f32 %v5966_v62  ;;  %v3700_v47 = vpop.eup %3699  ;;  %v2356_v32 = vand.u32 2147483648, %v5946_v45  ;;  %v2354_v35 = vsel %vm2353_vm6, %v5946_v45, %v2352_v16 }
 0x61d   : > { %v2217_v13 = vpop.xlane.xlu1 %2216  ;;  %vm2395_vm13 = vcmp.eq.f32.partialorder %v5966_v62, inf  ;;  %vm2383_vm6 = vcmp.eq.f32.partialorder %v5960_v17, 0.0 }
 0x61e   : > { %v5973_v46 = vmul.f32 0.007874016, %v2217_v13  ;;  %3711 = vrsqrt.f32 %v5969_v42  ;;  %v3702_v13 = vpop.eup %3701  ;;  %vm2402_vm14 = vcmp.eq.f32.partialorder %v5969_v42, inf }
 0x61f   : > { %v2219_v50 = vpop.xlane.xlu0 %2218  ;;  %3713 = vrcp.f32 %v2506_v8 }
 0x620   : > { %v5981_v6 = vmul.f32 0.007874016, %v2219_v50  ;;  %3715 = vrsqrt.f32 %v5973_v46  ;;  %v3704_v8 = vpop.eup %3703  ;;  %v2366_v50 = vmul.f32 %v3702_v13, %v5954_v23  ;;  %v2357_v13 = vsel %vm2355_vm7, %v2356_v32, %v2354_v35 }
 0x621   : > { %v2221_v63 = vpop.xlane.xlu1 %2220  ;;  %3717 = vrcp.f32 %v2507_v52  ;;  %vm2409_vm0 = vcmp.eq.f32.partialorder %v5973_v46, inf  ;;  %vm2390_vm7 = vcmp.eq.f32.partialorder %v5963_v3, 0.0 }
 0x622   : > { %v5985_v48 = vmul.f32 0.007874016, %v2221_v63  ;;  %3719 = vrsqrt.f32 %v5981_v6  ;;  %v2350_v63 = vsel %vm2348_vm5, %v2349_v43, %v2347_v15  ;;  %v3706_v52 = vpop.eup %3705  ;;  %v2373_v43 = vmul.f32 %v3704_v8, %v5957_v54 }
 0x623   : > { %v2223_v57 = vpop.xlane.xlu0 %2222  ;;  %v2380_v16 = vmul.f32 %v3706_v52, %v5960_v17  ;;  %v2368_v45 = vsel %vm2367_vm15, %v5954_v23, %v2366_v50  ;;  %vm2416_vm1 = vcmp.eq.f32.partialorder %v5981_v6, inf  ;;  %vm2376_vm5 = vcmp.eq.f32.partialorder %v5957_v54, 0.0 }
 0x624   : > { %v5990_v11 = vmul.f32 0.007874016, %v2223_v57  ;;  %3721 = vrsqrt.f32 %v5985_v48  ;;  %v2359_v57 = vmul.f32 %v3700_v47, %v5952_v58  ;;  %v3708_v51 = vpop.eup %3707  ;;  %v2509_v47 = vadd.f32 1e-06, %v2357_v13 }
 0x625   : > { %v2225_v0 = vpop.xlane.xlu1 %2224  ;;  %v2387_v52 = vmul.f32 %v3708_v51, %v5963_v3  ;;  %v6042_v50 = vsel %vm2374_vm9, %v5957_v54, %v2373_v43  ;;  %vm2423_vm2 = vcmp.eq.f32.partialorder %v5985_v48, inf  ;;  %vm2404_vm15 = vcmp.eq.f32.partialorder %v5969_v42, 0.0 }
 0x626   : > { %v6003_v31 = vmul.f32 0.007874016, %v2225_v0  ;;  %3723 = vrsqrt.f32 %v5990_v11  ;;  %v3710_v40 = vpop.eup %3709  ;;  %v2361_v8 = vsel %vm2360_vm8, %v5952_v58, %v2359_v57  ;;  %vm2430_vm4 = vcmp.eq.f32.partialorder %v5990_v11, inf }
 0x627   : > { %v2227_v28 = vpop.xlane.xlu0 %2226  ;;  %v2394_v13 = vmul.f32 %v3710_v40, %v5966_v62  ;;  %v6066_v40 = vsel %vm2388_vm10, %v5963_v3, %v2387_v52  ;;  %vm2397_vm8 = vcmp.eq.f32.partialorder %v5966_v62, 0.0  ;;  %vm2411_vm9 = vcmp.eq.f32.partialorder %v5973_v46, 0.0 }
 0x628   : > { %v6010_v12 = vmul.f32 0.007874016, %v2227_v28  ;;  %v2508_v28 = vadd.f32 1e-06, %v2350_v63  ;;  %3725 = vrsqrt.f32 %v6003_v31  ;;  %v3712_v36 = vpop.eup %3711 }
 0x629   : > { %v2229_v53 = vpop.xlane.xlu1 %2228  ;;  %v3714_v63 = vpop.eup %3713 }
 0x62a   : > { %v6015_v0 = vmul.f32 0.007874016, %v2229_v53  ;;  %3727 = vrsqrt.f32 %v6010_v12  ;;  %v3716_v57 = vpop.eup %3715  ;;  %v6050_v53 = vsel %vm2381_vm3, %v5960_v17, %v2380_v16  ;;  %v2602_v32 = vmul.f32 %v3714_v63, %v5820_v27 }
 0x62b   : > { %v2231_v15 = vpop.xlane.xlu0 %2230  ;;  %v3718_v51 = vpop.eup %3717  ;;  %v2408_v27 = vmul.f32 %v3716_v57, %v5973_v46  ;;  %vm2437_vm3 = vcmp.eq.f32.partialorder %v6003_v31, inf  ;;  %vm2444_vm10 = vcmp.eq.f32.partialorder %v6010_v12, inf }
 0x62c   : > { %3729 = vrsqrt.f32 %v6015_v0  ;;  %v6055_v61 = vmul.f32 0.007874016, %v2231_v15  ;;  %v3720_v49 = vpop.eup %3719  ;;  %v2401_v15 = vmul.f32 %v3712_v36, %v5969_v42  ;;  %v6654_v36 = vand.u32 2147483648, %v5952_v58 }
 0x62d   : > { %v2233_v35 = vpop.xlane.xlu1 %2232  ;;  %3731 = vrcp.f32 %v2508_v28  ;;  %v2603_v28 = vmul.f32 %v3718_v51, %v5823_v26  ;;  %v2415_v52 = vmul.f32 %v3720_v49, %v5981_v6  ;;  %v6655_v51 = vand.u32 2147483648, %v5954_v23 }
 0x62e   : > { %v6060_v2 = vmul.f32 0.007874016, %v2233_v35  ;;  %v3722_v16 = vpop.eup %3721  ;;  %3733 = vrcp.f32 %v2509_v47  ;;  %v2364_v47 = vsel %vm2362_vm11, %v6654_v36, %v2361_v8  ;;  %v2403_v8 = vsel %vm2402_vm14, %v5969_v42, %v2401_v15 }
 0x62f   : > { %v2235_v24 = vpop.xlane.xlu0 %2234  ;;  %v2630_v35 = vpack.c.bf16 %v2603_v28, %v2602_v32  ;;  %3735 = vrsqrt.f32 %v6055_v61  ;;  %v2371_v57 = vsel %vm2369_vm12, %v6655_v51, %v2368_v45  ;;  %v2422_v49 = vmul.f32 %v3722_v16, %v5985_v48 }
 0x630   : > { %v6069_v43 = vmul.f32 0.007874016, %v2235_v24  ;;  %v3724_v41 = vpop.eup %3723  ;;  %3737 = vrsqrt.f32 %v6060_v2  ;;  %v2511_v15 = vadd.f32 1e-06, %v2371_v57  ;;  %v2417_v51 = vsel %vm2416_vm1, %v5981_v6, %v2415_v52 }
 0x631   : > { %v2237_v9 = vpop.xlane.xlu1 %2236  ;;  %3276 = vmatprep.mubr.bf16.mxu0 %v2630_v35  ;;  %v2429_v23 = vmul.f32 %v3724_v41, %v5990_v11  ;;  %v2510_v35 = vadd.f32 1e-06, %v2364_v47  ;;  %v2410_v41 = vsel %vm2409_vm0, %v5973_v46, %v2408_v27  ;;  %vm2418_vm11 = vcmp.eq.f32.partialorder %v5981_v6, 0.0 }
 0x632   : > { %v6075_v63 = vmul.f32 0.007874016, %v2237_v9  ;;  %v2396_v9 = vsel %vm2395_vm13, %v5966_v62, %v2394_v13  ;;  %v3726_v58 = vpop.eup %3725  ;;  %3739 = vrsqrt.f32 %v6069_v43  ;;  %vm2425_vm12 = vcmp.eq.f32.partialorder %v5985_v48, 0.0 }
 0x633   : > { %v2239_v24 = vpop.xlane.xlu0 %2238  ;;  %vm2451_vm13 = vcmp.eq.f32.partialorder %v6015_v0, inf  ;;  %v2424_v47 = vsel %vm2423_vm2, %v5985_v48, %v2422_v49  ;;  %v2431_v52 = vsel %vm2430_vm4, %v5990_v11, %v2429_v23  ;;  %v2436_v26 = vmul.f32 %v3726_v58, %v6003_v31 }
 0x634   : > { %v3728_v28 = vpop.eup %3727  ;;  %3741 = vrsqrt.f32 %v6075_v63  ;;  %v6105_v16 = vmul.f32 0.007874016, %v2239_v24  ;;  %vm2439_vm14 = vcmp.eq.f32.partialorder %v6003_v31, 0.0  ;;  %vm2432_vm0 = vcmp.eq.f32.partialorder %v5990_v11, 0.0 }
 0x635   : > { %v2241_v13 = vpop.xlane.xlu1 %2240  ;;  %3743 = vrcp.f32 %v2510_v35  ;;  %v2443_v49 = vmul.f32 %v3728_v28, %v6010_v12  ;;  %vm2446_vm1 = vcmp.eq.f32.partialorder %v6010_v12, 0.0  ;;  %v6658_v24 = vand.u32 2147483648, %v5963_v3 }
 0x636   : > { %v3730_v36 = vpop.eup %3729  ;;  %v6121_v27 = vmul.f32 0.007874016, %v2241_v13  ;;  %3745 = vrcp.f32 %v2511_v15  ;;  %v6656_v13 = vand.u32 2147483648, %v5957_v54  ;;  %v6657_v15 = vand.u32 2147483648, %v5960_v17 }
 0x637   : > { %v3732_v45 = vpop.eup %3731  ;;  %v2450_v57 = vmul.f32 %v3730_v36, %v6015_v0  ;;  %3747 = vrsqrt.f32 %v6105_v16  ;;  %v2392_v32 = vsel %vm2390_vm7, %v6658_v24, %v6066_v40  ;;  %vm2453_vm2 = vcmp.eq.f32.partialorder %v6015_v0, 0.0 }
 0x638   : > { %v2378_v23 = vsel %vm2376_vm5, %v6656_v13, %v6042_v50  ;;  %v3734_v58 = vpop.eup %3733  ;;  %v2604_v35 = vmul.f32 %v3732_v45, %v5828_v59  ;;  %v2385_v28 = vsel %vm2383_vm6, %v6657_v15, %v6050_v53  ;;  %3749 = vrsqrt.f32 %v6121_v27 }
 0x639   : > { %v2512_v36 = vadd.f32 1e-06, %v2378_v23  ;;  %v2605_v54 = vmul.f32 %v3734_v58, %v5833_v20  ;;  %v2513_v59 = vadd.f32 1e-06, %v2385_v28  ;;  %v6659_v50 = vand.u32 2147483648, %v5966_v62  ;;  %v3736_v53 = vpop.eup %3735 }
 0x63a   : > { %vm2465_vm4 = vcmp.eq.f32.partialorder %v6060_v2, inf  ;;  %v2514_v45 = vadd.f32 1e-06, %v2392_v32  ;;  %v6660_v3 = vand.u32 2147483648, %v5969_v42  ;;  %v3738_v20 = vpop.eup %3737  ;;  %v2438_v24 = vsel %vm2437_vm3, %v6003_v31, %v2436_v26 }
 0x63b   : > { %v2399_v17 = vsel %vm2397_vm8, %v6659_v50, %v2396_v9  ;;  %3751 = vrcp.f32 %v2512_v36  ;;  %vm2458_vm5 = vcmp.eq.f32.partialorder %v6055_v61, inf  ;;  %v2631_v62 = vpack.c.bf16 %v2605_v54, %v2604_v35 }
 0x63c   : > { %v2515_v13 = vadd.f32 1e-06, %v2399_v17  ;;  %v2406_v40 = vsel %vm2404_vm15, %v6660_v3, %v2403_v8  ;;  %3753 = vrcp.f32 %v2513_v59  ;;  %v6661_v9 = vand.u32 2147483648, %v5973_v46  ;;  %v3740_v23 = vpop.eup %3739 }
 0x63d   : > { %v2445_v42 = vsel %vm2444_vm10, %v6010_v12, %v2443_v49  ;;  %3755 = vrcp.f32 %v2514_v45  ;;  %v2516_v8 = vadd.f32 1e-06, %v2406_v40  ;;  %v2452_v26 = vsel %vm2451_vm13, %v6015_v0, %v2450_v57  ;;  %3277 = vmatmul.mubr.bf16.gmra.mrb[24].mxu0 %v2631_v62 }
 0x63e   : > { %v2413_v32 = vsel %vm2411_vm9, %v6661_v9, %v2410_v41  ;;  %v3742_v15 = vpop.eup %3741  ;;  %vm2467_vm6 = vcmp.eq.f32.partialorder %v6060_v2, 0.0  ;;  %3757 = vrcp.f32 %v2515_v13  ;;  %v6662_v46 = vand.u32 2147483648, %v5981_v6 }
 0x63f   : > { %v2517_v58 = vadd.f32 1e-06, %v2413_v32  ;;  %v6663_v35 = vand.u32 2147483648, %v5985_v48  ;;  %v2457_v28 = vmul.f32 %v3736_v53, %v6055_v61  ;;  %vm2460_vm7 = vcmp.eq.f32.partialorder %v6055_v61, 0.0  ;;  %v3744_v54 = vpop.eup %3743 }
 0x640   : > { %v2420_v41 = vsel %vm2418_vm11, %v6662_v46, %v2417_v51  ;;  %3759 = vrcp.f32 %v2516_v8  ;;  %v2464_v59 = vmul.f32 %v3738_v20, %v6060_v2  ;;  %v2471_v50 = vmul.f32 %v3740_v23, %v6069_v43  ;;  %v3746_v48 = vpop.eup %3745 }
 0x641   : > { %v2427_v49 = vsel %vm2425_vm12, %v6663_v35, %v2424_v47  ;;  %v2518_v57 = vadd.f32 1e-06, %v2420_v41  ;;  %3761 = vrcp.f32 %v2517_v58  ;;  %v6664_v6 = vand.u32 2147483648, %v6003_v31  ;;  %v3748_v13 = vpop.eup %3747 }
 0x642   : > { %v2519_v36 = vadd.f32 1e-06, %v2427_v49  ;;  %v2478_v47 = vmul.f32 %v3742_v15, %v6075_v63  ;;  %v2606_v17 = vmul.f32 %v3744_v54, %v5840_v18  ;;  %v6665_v53 = vand.u32 2147483648, %v5990_v11 }
 0x643   : > { %v2441_v51 = vsel %vm2439_vm14, %v6664_v6, %v2438_v24  ;;  %3763 = vrcp.f32 %v2518_v57  ;;  %v2607_v3 = vmul.f32 %v3746_v48, %v5843_v44  ;;  %v6666_v20 = vand.u32 2147483648, %v6010_v12 }
 0x644   : > { %v2434_v45 = vsel %vm2432_vm0, %v6665_v53, %v2431_v52  ;;  %3765 = vrcp.f32 %v2519_v36  ;;  %v2521_v40 = vadd.f32 1e-06, %v2441_v51  ;;  %vm2472_vm8 = vcmp.eq.f32.partialorder %v6069_v43, inf  ;;  %v3750_v52 = vpop.eup %3749 }
 0x645   : > { %v2448_v31 = vsel %vm2446_vm1, %v6666_v20, %v2445_v42  ;;  %vm2474_vm15 = vcmp.eq.f32.partialorder %v6069_v43, 0.0  ;;  %vm2479_vm9 = vcmp.eq.f32.partialorder %v6075_v63, inf  ;;  %v6667_v18 = vand.u32 2147483648, %v6015_v0  ;;  %v3752_v9 = vpop.eup %3751 }
 0x646   : > { %v2466_v44 = vsel %vm2465_vm4, %v6060_v2, %v2464_v59  ;;  %v2632_v24 = vpack.c.bf16 %v2607_v3, %v2606_v17  ;;  %v2520_v62 = vadd.f32 1e-06, %v2434_v45  ;;  %v2459_v32 = vsel %vm2458_vm5, %v6055_v61, %v2457_v28  ;;  %v3754_v0 = vpop.eup %3753 }
 0x647   : > { %v2455_v11 = vsel %vm2453_vm2, %v6667_v18, %v2452_v26  ;;  %v2475_v23 = vand.u32 2147483648, %v6069_v43  ;;  %v2480_v42 = vsel %vm2479_vm9, %v6075_v63, %v2478_v47  ;;  %v2522_v8 = vadd.f32 1e-06, %v2448_v31  ;;  %v3756_v26 = vpop.eup %3755 }
 0x648   : > { %v2523_v12 = vadd.f32 1e-06, %v2455_v11  ;;  %v2473_v58 = vsel %vm2472_vm8, %v6069_v43, %v2471_v50  ;;  %vm2481_vm3 = vcmp.eq.f32.partialorder %v6075_v63, 0.0  ;;  %v2482_v15 = vand.u32 2147483648, %v6075_v63  ;;  %3280 = vmatprep.mubr.bf16.mxu0 %v2632_v24  ;;  %v3758_v28 = vpop.eup %3757 }
 0x649   : > { %3767 = vrcp.f32 %v2521_v40  ;;  %v2608_v46 = vmul.f32 %v3752_v9, %v5848_v25  ;;  %v2609_v41 = vmul.f32 %v3754_v0, %v5853_v7  ;;  %v6668_v35 = vand.u32 2147483648, %v6060_v2 }
 0x64a   : > { %3769 = vrcp.f32 %v2523_v12  ;;  %v2492_v57 = vmul.f32 %v3750_v52, %v6121_v27  ;;  %v6669_v36 = vand.u32 2147483648, %v6055_v61  ;;  %v2483_v54 = vsel %vm2481_vm3, %v2482_v15, %v2480_v42  ;;  %v3760_v59 = vpop.eup %3759 }
 0x64b   : > { %v2469_v49 = vsel %vm2467_vm6, %v6668_v35, %v2466_v44  ;;  %3771 = vrcp.f32 %v2520_v62  ;;  %v2633_v25 = vpack.c.bf16 %v2609_v41, %v2608_v46  ;;  %v2610_v7 = vmul.f32 %v3756_v26, %v5858_v39  ;;  %v3762_v6 = vpop.eup %3761 }
 0x64c   : > { %v2462_v63 = vsel %vm2460_vm7, %v6669_v36, %v2459_v32  ;;  %v2611_v50 = vmul.f32 %v3758_v28, %v5863_v19  ;;  %3773 = vrcp.f32 %v2522_v8  ;;  %v2485_v2 = vmul.f32 %v3748_v13, %v6105_v16 }
 0x64d   : > { %v2525_v51 = vadd.f32 1e-06, %v2469_v49  ;;  %v2476_v48 = vsel %vm2474_vm15, %v2475_v23, %v2473_v58  ;;  %v3764_v47 = vpop.eup %3763  ;;  %vm2493_vm10 = vcmp.eq.f32.partialorder %v6121_v27, inf  ;;  %3281 = vmatmul.mubr.bf16.gmra.mrb[28].mxu0 %v2633_v25  ;;  %v2613_v17 = vmul.f32 %v3762_v6, %v5873_v34 }
 0x64e   : > { %v2634_v61 = vpack.c.bf16 %v2611_v50, %v2610_v7  ;;  %v2527_v53 = vadd.f32 1e-06, %v2483_v54  ;;  %v3766_v45 = vpop.eup %3765  ;;  %vm2486_vm11 = vcmp.eq.f32.partialorder %v6105_v16, inf  ;;  %v2494_v39 = vsel %vm2493_vm10, %v6121_v27, %v2492_v57  ;;  %v6670_v7 = vld [vmem:[#allocation44_spill] sm:$0xff] }
 0x64f   : > { %v2524_v19 = vadd.f32 1e-06, %v2462_v63  ;;  %v2496_v13 = vand.u32 2147483648, %v6121_v27  ;;  %v2612_v43 = vmul.f32 %v3760_v59, %v5868_v55  ;;  %v2615_v3 = vmul.f32 %v3766_v45, %v5883_v29 }
 0x650   : > { %3284 = vmatprep.mubr.bf16.mxu0 %v2634_v61  ;;  %v2526_v40 = vadd.f32 1e-06, %v2476_v48  ;;  %v2487_v20 = vsel %vm2486_vm11, %v6105_v16, %v2485_v2  ;;  %vm2495_vm12 = vcmp.eq.f32.partialorder %v6121_v27, 0.0  ;;  %v2614_v34 = vmul.f32 %v3764_v47, %v5878_v21  ;;  %v6672_v61 = vld [vmem:[#allocation12_spill] sm:$0xff] }
 0x651   : > { %3775 = vrcp.f32 %v2525_v51  ;;  %v2489_v31 = vand.u32 2147483648, %v6105_v16  ;;  %v2635_v18 = vpack.c.bf16 %v2613_v17, %v2612_v43  ;;  %v2497_v11 = vsel %vm2495_vm12, %v2496_v13, %v2494_v39  ;;  %v6673_v39 = vld [vmem:[#allocation46_spill] sm:$0xff] }
 0x652   : > { %3777 = vrcp.f32 %v2527_v53  ;;  %vm2488_vm13 = vcmp.eq.f32.partialorder %v6105_v16, 0.0  ;;  %v2636_v44 = vpack.c.bf16 %v2615_v3, %v2614_v34  ;;  %v2529_v62 = vadd.f32 1e-06, %v2497_v11  ;;  %v6674_v43 = vld [vmem:[#allocation14_spill] sm:$0xff] }
 0x653   : > { %v3768_v52 = vpop.eup %3767  ;;  %3779 = vrcp.f32 %v2524_v19  ;;  %v2490_v29 = vsel %vm2488_vm13, %v2489_v31, %v2487_v20 }
 0x654   : > { %v3770_v55 = vpop.eup %3769  ;;  %3781 = vrcp.f32 %v2526_v40  ;;  %v2617_v21 = vmul.f32 %v3768_v52, %v5893_v38  ;;  %v2528_v9 = vadd.f32 1e-06, %v2490_v29  ;;  %v6675_v40 = vld [vmem:[#allocation45_spill] sm:$0xff] }
 0x655   : > { %v3772_v24 = vpop.eup %3771  ;;  %3285 = vmatmul.mubr.bf16.gmra.mrb[32].mxu0 %v2635_v18  ;;  %v2619_v27 = vmul.f32 %v3770_v55, %v5903_v1  ;;  %3783 = vrcp.f32 %v2529_v62  ;;  %v6677_v62 = vld [vmem:[#allocation11_spill] sm:$0xff] }
 0x656   : > { %v3774_v12 = vpop.eup %3773  ;;  %3288 = vmatprep.mubr.bf16.mxu0 %v2636_v44  ;;  %v2616_v32 = vmul.f32 %v3772_v24, %v5888_v56  ;;  %3785 = vrcp.f32 %v2528_v9  ;;  %v6676_v44 = vld [vmem:[#allocation16_spill] sm:$0xff] }
 0x657   : > { %v2618_v23 = vmul.f32 %v3774_v12, %v5898_v33 }
 0x658   : > { %v2637_v16 = vpack.c.bf16 %v2617_v21, %v2616_v32  ;;  %v6679_v32 = vld [vmem:[#allocation13_spill] sm:$0xff] }
 0x659   : > { %v2638_v8 = vpack.c.bf16 %v2619_v27, %v2618_v23  ;;  %v6678_v27 = vld [vmem:[#allocation15_spill] sm:$0xff] }
 0x65b   : > { %v3776_v42 = vpop.eup %3775 }
 0x65c   : > { %v3778_v0 = vpop.eup %3777  ;;  %v2621_v26 = vmul.f32 %v3776_v42, %v5913_v30  ;;  %v6263_v30 = vld [vmem:[%s6418_s2 + $0x2] ss:$0 sm:$0xff] }
 0x65d   : > { %v3780_v58 = vpop.eup %3779  ;;  %3289 = vmatmul.mubr.bf16.gmra.mrb[36].mxu0 %v2637_v16  ;;  %v2623_v38 = vmul.f32 %v3778_v0, %v5923_v60 }
 0x65e   : > { %v3782_v15 = vpop.eup %3781  ;;  %3292 = vmatprep.mubr.bf16.mxu0 %v2638_v8  ;;  %v2620_v1 = vmul.f32 %v3780_v58, %v5908_v10 }
 0x65f   : > { %v2622_v56 = vmul.f32 %v3782_v15, %v5918_v4  ;;  %v3784_v33 = vpop.eup %3783  ;;  %v6680_v15 = vld [vmem:[#allocation19_spill] sm:$0xff] }
 0x660   : > { %v2639_v46 = vpack.c.bf16 %v2621_v26, %v2620_v1  ;;  %v3786_v35 = vpop.eup %3785  ;;  %v2625_v49 = vmul.f32 %v3784_v33, %v5933_v5 }
 0x661   : > { %v2640_v41 = vpack.c.bf16 %v2623_v38, %v2622_v56  ;;  %v2624_v28 = vmul.f32 %v3786_v35, %v5928_v37  ;;  %v6681_v56 = vld [vmem:[#allocation17_spill] sm:$0xff] }
 0x663   : > { %v2641_v57 = vpack.c.bf16 %v2625_v49, %v2624_v28  ;;  %v6683_v49 = vld [vmem:[#allocation18_spill] sm:$0xff] }
 0x665   : > { %3293 = vmatmul.mubr.bf16.gmra.mrb[40].mxu0 %v2639_v46 }
 0x666   : > { %3296 = vmatprep.mubr.bf16.mxu0 %v2640_v41  ;;  %v6682_v41 = vld [vmem:[#allocation20_spill] sm:$0xff] }
 0x66d   : > { %3297 = vmatmul.mubr.bf16.gmra.mrb[44].mxu0 %v2641_v57 }
 0x6ce   : > { %v3270_v10 = vpop.f32.mrb[16].mxu0 }
 0x6cf   : > { %v2758_v4 = vadd.f32 %v3270_v10, %v6263_v30  ;;  %v2749_v60 = vpop.f32.mrb[17].mxu0 }
 0x6d0   : > { %v2750_v36 = vadd.f32 %v6263_v30, %v2749_v60  ;;  %v3271_v63 = vpop.f32.mrb[18].mxu0 }
 0x6d1   : > { %v2878_v5 = vadd.f32 %v2758_v4, %v5631_v14  ;;  %v2761_v54 = vadd.f32 %v3271_v63, %v6263_v30  ;;  %v2752_v59 = vpop.f32.mrb[19].mxu0  ;;  %v6671_v14 = vld [vmem:[#allocation43_spill] sm:$0xff] }
 0x6d2   : > { %v2876_v37 = vadd.f32 %v2750_v36, %v5622_v22  ;;  %v2753_v25 = vadd.f32 %v6263_v30, %v2752_v59  ;;  %v6684_v63 = vld [vmem:[#allocation23_spill] sm:$0xff] }
 0x6d3   : > { %2910 = vst [vmem:[%s6273_s10 + $0x10] sm:$0xff] %v2878_v5  ;;  %v2879_v50 = vadd.f32 %v2761_v54, %v6670_v7 }
 0x6d4   : > { %2908 = vst [vmem:[%s6273_s10] sm:$0xff] %v2876_v37  ;;  %v2877_v6 = vadd.f32 %v2753_v25, %v6671_v14  ;;  %v6685_v37 = vld [vmem:[#allocation21_spill] sm:$0xff] }
 0x6d5   : > { %2911 = vst [vmem:[%s6273_s10 + $0x18] sm:$0xff] %v2879_v50  ;;  %v6686_v50 = vld [vmem:[#allocation24_spill] sm:$0xff] }
 0x6d6   : > { %2909 = vst [vmem:[%s6273_s10 + $0x8] sm:$0xff] %v2877_v6  ;;  %v6687_v6 = vld [vmem:[#allocation22_spill] sm:$0xff] }
 0x6eb   : > { %v3274_v22 = vpop.f32.mrb[20].mxu0 }
 0x6ec   : > { %v2774_v2 = vadd.f32 %v3274_v22, %v6263_v30  ;;  %v2765_v51 = vpop.f32.mrb[21].mxu0 }
 0x6ed   : > { %v2766_v48 = vadd.f32 %v6263_v30, %v2765_v51  ;;  %v3275_v47 = vpop.f32.mrb[22].mxu0 }
 0x6ee   : > { %v2882_v17 = vadd.f32 %v2774_v2, %v6672_v61  ;;  %v2777_v53 = vadd.f32 %v3275_v47, %v6263_v30  ;;  %v2768_v45 = vpop.f32.mrb[23].mxu0 }
 0x6ef   : > { %v2880_v19 = vadd.f32 %v2766_v48, %v6673_v39  ;;  %v2769_v13 = vadd.f32 %v6263_v30, %v2768_v45 }
 0x6f0   : > { %2914 = vst [vmem:[%s6273_s10 + $0x30] sm:$0xff] %v2882_v17  ;;  %v2883_v3 = vadd.f32 %v2777_v53, %v6674_v43  ;;  %v6688_v17 = vld [vmem:[#allocation27_spill] sm:$0xff] }
 0x6f1   : > { %2912 = vst [vmem:[%s6273_s10 + $0x20] sm:$0xff] %v2880_v19  ;;  %v2881_v20 = vadd.f32 %v2769_v13, %v6675_v40  ;;  %v6689_v19 = vld [vmem:[#allocation25_spill] sm:$0xff] }
 0x6f2   : > { %2915 = vst [vmem:[%s6273_s10 + $0x38] sm:$0xff] %v2883_v3  ;;  %v6690_v3 = vld [vmem:[#allocation28_spill] sm:$0xff] }
 0x6f3   : > { %2913 = vst [vmem:[%s6273_s10 + $0x28] sm:$0xff] %v2881_v20  ;;  %v6691_v20 = vld [vmem:[#allocation26_spill] sm:$0xff] }
 0x710   : > { %v3278_v34 = vpop.f32.mrb[24].mxu0 }
 0x711   : > { %v2790_v31 = vadd.f32 %v3278_v34, %v6263_v30  ;;  %v2781_v18 = vpop.f32.mrb[25].mxu0 }
 0x712   : > { %v2782_v11 = vadd.f32 %v6263_v30, %v2781_v18  ;;  %v3279_v52 = vpop.f32.mrb[26].mxu0 }
 0x713   : > { %v2886_v55 = vadd.f32 %v2790_v31, %v6676_v44  ;;  %v2793_v29 = vadd.f32 %v3279_v52, %v6263_v30  ;;  %v2784_v24 = vpop.f32.mrb[27].mxu0 }
 0x714   : > { %v2884_v12 = vadd.f32 %v2782_v11, %v6677_v62  ;;  %v2785_v21 = vadd.f32 %v6263_v30, %v2784_v24 }
 0x715   : > { %2918 = vst [vmem:[%s6273_s10 + $0x50] sm:$0xff] %v2886_v55  ;;  %v2887_v9 = vadd.f32 %v2793_v29, %v6678_v27  ;;  %v6692_v55 = vld [vmem:[#allocation31_spill] sm:$0xff] }
 0x716   : > { %2916 = vst [vmem:[%s6273_s10 + $0x40] sm:$0xff] %v2884_v12  ;;  %v2885_v23 = vadd.f32 %v2785_v21, %v6679_v32  ;;  %v6693_v12 = vld [vmem:[#allocation29_spill] sm:$0xff] }
 0x717   : > { %2919 = vst [vmem:[%s6273_s10 + $0x58] sm:$0xff] %v2887_v9  ;;  %v6694_v9 = vld [vmem:[#allocation32_spill] sm:$0xff] }
 0x718   : > { %2917 = vst [vmem:[%s6273_s10 + $0x48] sm:$0xff] %v2885_v23  ;;  %v6695_v23 = vld [vmem:[#allocation30_spill] sm:$0xff] }
 0x720   : > { %v3282_v16 = vpop.f32.mrb[28].mxu0 }
 0x721   : > { %v2806_v42 = vadd.f32 %v3282_v16, %v6263_v30  ;;  %v2797_v8 = vpop.f32.mrb[29].mxu0 }
 0x722   : > { %v2798_v0 = vadd.f32 %v6263_v30, %v2797_v8  ;;  %v3283_v58 = vpop.f32.mrb[30].mxu0 }
 0x723   : > { %v2890_v26 = vadd.f32 %v2806_v42, %v6680_v15  ;;  %v2809_v38 = vadd.f32 %v3283_v58, %v6263_v30  ;;  %v2800_v1 = vpop.f32.mrb[31].mxu0 }
 0x724   : > { %v2888_v46 = vadd.f32 %v2798_v0, %v6681_v56  ;;  %v2801_v33 = vadd.f32 %v6263_v30, %v2800_v1 }
 0x725   : > { %2922 = vst [vmem:[%s6273_s10 + $0x70] sm:$0xff] %v2890_v26  ;;  %v2891_v35 = vadd.f32 %v2809_v38, %v6682_v41  ;;  %v6696_v26 = vld [vmem:[#allocation35_spill] sm:$0xff] }
 0x726   : > { %2920 = vst [vmem:[%s6273_s10 + $0x60] sm:$0xff] %v2888_v46  ;;  %v2889_v28 = vadd.f32 %v2801_v33, %v6683_v49  ;;  %v6697_v46 = vld [vmem:[#allocation33_spill] sm:$0xff] }
 0x727   : > { %2923 = vst [vmem:[%s6273_s10 + $0x78] sm:$0xff] %v2891_v35  ;;  %v6698_v35 = vld [vmem:[#allocation36_spill] sm:$0xff] }
 0x728   : > { %2921 = vst [vmem:[%s6273_s10 + $0x68] sm:$0xff] %v2889_v28  ;;  %v3286_v57 = vpop.f32.mrb[32].mxu0  ;;  %v6699_v28 = vld [vmem:[#allocation34_spill] sm:$0xff] }
 0x729   : > { %v2822_v10 = vadd.f32 %v3286_v57, %v6263_v30  ;;  %v2813_v4 = vpop.f32.mrb[33].mxu0 }
 0x72a   : > { %v2814_v60 = vadd.f32 %v6263_v30, %v2813_v4  ;;  %v3287_v36 = vpop.f32.mrb[34].mxu0 }
 0x72b   : > { %v2894_v5 = vadd.f32 %v2822_v10, %v6684_v63  ;;  %v2825_v54 = vadd.f32 %v3287_v36, %v6263_v30  ;;  %v2816_v59 = vpop.f32.mrb[35].mxu0 }
 0x72c   : > { %v2892_v25 = vadd.f32 %v2814_v60, %v6685_v37  ;;  %v2817_v7 = vadd.f32 %v6263_v30, %v2816_v59 }
 0x72d   : > { %2926 = vst [vmem:[%s6273_s10 + $0x90] sm:$0xff] %v2894_v5  ;;  %v2895_v14 = vadd.f32 %v2825_v54, %v6686_v50 }
 0x72e   : > { %2924 = vst [vmem:[%s6273_s10 + $0x80] sm:$0xff] %v2892_v25  ;;  %v2893_v22 = vadd.f32 %v2817_v7, %v6687_v6 }
 0x72f   : > { %2927 = vst [vmem:[%s6273_s10 + $0x98] sm:$0xff] %v2895_v14 }
 0x730   : > { %2925 = vst [vmem:[%s6273_s10 + $0x88] sm:$0xff] %v2893_v22  ;;  %v3290_v2 = vpop.f32.mrb[36].mxu0 }
 0x731   : > { %v2838_v51 = vadd.f32 %v3290_v2, %v6263_v30  ;;  %v2829_v48 = vpop.f32.mrb[37].mxu0 }
 0x732   : > { %v2830_v47 = vadd.f32 %v6263_v30, %v2829_v48  ;;  %v3291_v61 = vpop.f32.mrb[38].mxu0 }
 0x733   : > { %v2898_v53 = vadd.f32 %v2838_v51, %v6688_v17  ;;  %v2841_v45 = vadd.f32 %v3291_v61, %v6263_v30  ;;  %v2832_v39 = vpop.f32.mrb[39].mxu0 }
 0x734   : > { %v2896_v13 = vadd.f32 %v2830_v47, %v6689_v19  ;;  %v2833_v43 = vadd.f32 %v6263_v30, %v2832_v39 }
 0x735   : > { %2930 = vst [vmem:[%s6273_s10 + $0xb0] sm:$0xff] %v2898_v53  ;;  %v2899_v40 = vadd.f32 %v2841_v45, %v6690_v3 }
 0x736   : > { %2928 = vst [vmem:[%s6273_s10 + $0xa0] sm:$0xff] %v2896_v13  ;;  %v2897_v34 = vadd.f32 %v2833_v43, %v6691_v20 }
 0x737   : > { %2931 = vst [vmem:[%s6273_s10 + $0xb8] sm:$0xff] %v2899_v40 }
 0x738   : > { %2929 = vst [vmem:[%s6273_s10 + $0xa8] sm:$0xff] %v2897_v34  ;;  %v3294_v31 = vpop.f32.mrb[40].mxu0 }
 0x739   : > { %v2854_v18 = vadd.f32 %v3294_v31, %v6263_v30  ;;  %v2845_v11 = vpop.f32.mrb[41].mxu0 }
 0x73a   : > { %v2846_v52 = vadd.f32 %v6263_v30, %v2845_v11  ;;  %v3295_v44 = vpop.f32.mrb[42].mxu0 }
 0x73b   : > { %v2902_v29 = vadd.f32 %v2854_v18, %v6692_v55  ;;  %v2857_v24 = vadd.f32 %v3295_v44, %v6263_v30  ;;  %v2848_v62 = vpop.f32.mrb[43].mxu0 }
 0x73c   : > { %v2900_v21 = vadd.f32 %v2846_v52, %v6693_v12  ;;  %v2849_v27 = vadd.f32 %v6263_v30, %v2848_v62 }
 0x73d   : > { %2934 = vst [vmem:[%s6273_s10 + $0xd0] sm:$0xff] %v2902_v29  ;;  %v2903_v32 = vadd.f32 %v2857_v24, %v6694_v9 }
 0x73e   : > { %2932 = vst [vmem:[%s6273_s10 + $0xc0] sm:$0xff] %v2900_v21  ;;  %v2901_v16 = vadd.f32 %v2849_v27, %v6695_v23 }
 0x73f   : > { %2935 = vst [vmem:[%s6273_s10 + $0xd8] sm:$0xff] %v2903_v32 }
 0x740   : > { %2933 = vst [vmem:[%s6273_s10 + $0xc8] sm:$0xff] %v2901_v16  ;;  %v3298_v42 = vpop.f32.mrb[44].mxu0 }
 0x741   : > { %v2870_v8 = vadd.f32 %v3298_v42, %v6263_v30  ;;  %v2861_v0 = vpop.f32.mrb[45].mxu0 }
 0x742   : > { %v2862_v58 = vadd.f32 %v6263_v30, %v2861_v0  ;;  %v3299_v15 = vpop.f32.mrb[46].mxu0 }
 0x743   : > { %v2906_v38 = vadd.f32 %v2870_v8, %v6696_v26  ;;  %v2873_v1 = vadd.f32 %v3299_v15, %v6263_v30  ;;  %v2864_v56 = vpop.f32.mrb[47].mxu0 }
 0x744   : > { %v2904_v33 = vadd.f32 %v2862_v58, %v6697_v46  ;;  %v2865_v41 = vadd.f32 %v6263_v30, %v2864_v56 }
 0x745   : > { %2938 = vst [vmem:[%s6273_s10 + $0xf0] sm:$0xff] %v2906_v38  ;;  %v2907_v49 = vadd.f32 %v2873_v1, %v6698_v35 }
 0x746   : > { %2936 = vst [vmem:[%s6273_s10 + $0xe0] sm:$0xff] %v2904_v33  ;;  %v2905_v57 = vadd.f32 %v2865_v41, %v6699_v28 }
 0x747   : > { %2939 = vst [vmem:[%s6273_s10 + $0xf8] sm:$0xff] %v2907_v49 }
 0x748   : > { %2937 = vst [vmem:[%s6273_s10 + $0xe8] sm:$0xff] %v2905_v57 }
 0x749   : > { %3890 = shalt.err (!%p3887_p7)
}
 0x74a   : > { %s3891_s9 = scalar_lea.hbm %s6366_s23, 4096  ;;  %s3895_s4 = scalar_lea.hbm %s6419_s3, 8192 }
 0x74b   : > { %p3892_p9 = scmp.ne.s32.totalorder %s6366_s23, %s3891_s9  ;;  %p3896_p5 = scmp.lt.u32.totalorder %s6366_s23, %s6419_s3 }
 0x74c   : > { %p3897_p11 = scmp.lt.u32.totalorder %s3895_s4, %s3891_s9  ;;  %p3899_p4 = scmp.lt.u32.totalorder %s3891_s9, %s6366_s23 }
 0x74d   : > { %p3893_p2 = pnand %p3892_p9, %p4069_p12 }
 0x74e   : > { %p3898_p1 = por %p3897_p11, %p3896_p5 }
 0x74f   : > { %p3894_p0 = pneg %p3893_p2 }
 0x750   : > { %p3900_p6 = por %p3899_p4, %p3898_p1 }
 0x752   : > { %p3901_p8 = pnand %p3900_p6, %p3894_p0 }
 0x754   : > { %3904 = shalt.err (!%p3901_p8)
}
 0x755   : > { %s3956_s5 = smov 128   ;;  %s3957_s10 = smov 8  }
 0x756   : > { %3322 = dma.vmem_to_hbm [thread:$0]  (%p4069_p12), %s6368_s27, 4096, %s6366_s23, %s2941_s16, %s3956_s5, %s3956_s5, %s3957_s10  }
 0x757 PF: > { %s2969_s11 = sand.u32 1, %s3935_s12   ;;  %p6700_p10 = scmp.ne.s32.totalorder %s6496_s19, 0 }
 0x758   : > { %p6701_p13 = scmp.ge.s32.totalorder %s3947_s15, 2  ;;  %s2970_s28 = scalar_lea.sflag [#allocation4], %s2969_s11 }
 0x75a   : > { %p3333_p3 = pnand %p6701_p13, %p6700_p10 }
 0x75c   : > { %3930 = dma.done.wait (!%p3333_p3), %s2970_s28, 4096  }
 0x75d   : > { %3932 = vsyncadd (!%p3333_p3), %s2970_s28, 4294963200  ;;  %p17_p7 = scmp.ge.s32.totalorder %s4034_s24, 4   ;;  %s6702_s12 = smov %s3939_s13 }
 0x75e   : > { %s6703_s13 = smov %s3943_s14  ;;  %s6704_s14 = smov %s4065_s17 }
 0x75f   : > { %s6705_s15 = smov %s4034_s24  ;;  %19 = sbr.rel (!%p17_p7) target bundleno = 6 (0x6), region = 85 }
 0x766   :  { %2975 = vsyncpa [#allocation3], 1 }
 0x767   :  { %2977 = vsyncpa [#allocation3 + $0x1], 1 }
 0x768   :  { %2978 = vsyncpa [#allocation6], 1 }
 0x769   :  { %2979 = vsyncpa [#allocation4], 1 }
 0x76a   :  { %2981 = vsyncpa [#allocation4 + $0x1], 1 }

</bundles_post_ra>
